<compile_context>
chip_gen: v7x
topology: tpu7x:2x2x1
jax: 0.10.0
libtpu: 0.0.40
codegen_flags: <defaults>
</compile_context>

<pallas_src>
import jax
import jax.numpy as jnp
from jax.experimental import pallas as pl
from jax.experimental.pallas import tpu as pltpu


def oversize_conv2d_kernel(x_ref, wh_ref, ww_ref, bh_ref, bw_ref, o_ref,
                           ph_ref, pw_ref):
    _, H, W, Cb = o_ref.shape
    K = wh_ref.shape[0]
    pad = K // 2
    f32 = jnp.float32

    # Zero only the halo rows/cols of the padded scratch buffers; the interiors
    # are fully overwritten every step.  (Done per step, not once, so the
    # kernel stays correct when the parallel grid axes are split across
    # TensorCores, each with its own scratch instance.)
    ph_ref[0:pad, :, :] = jnp.zeros((pad, W, Cb), f32)
    ph_ref[pad + H:2 * pad + H, :, :] = jnp.zeros((pad, W, Cb), f32)
    pw_ref[:, 0:pad, :] = jnp.zeros((H, pad, Cb), f32)
    pw_ref[:, pad + W:2 * pad + W, :] = jnp.zeros((H, pad, Cb), f32)

    # ---- conv_h: depthwise (K, 1) conv, padding (K//2, 0), + bias -----------
    # Channels ride the lane axis, so each tap is one lane-dense broadcast-FMA
    # over the whole (H, W, C_blk) block.  H is the un-tiled major axis, so the
    # shifted reads below are tile-aligned (no (8,128) crossings).
    ph_ref[pad:pad + H, :, :] = x_ref[0, :, :, :].astype(f32)
    wh = wh_ref[...].astype(f32)                       # (K, 1, C_blk)
    acc = jnp.broadcast_to(bh_ref[...].astype(f32), (H, W, Cb))
    for k in range(K):                                 # K static taps, unrolled
        acc = acc + wh[k:k + 1] * ph_ref[k:k + H, :, :]

    # ---- conv_w: depthwise (1, K) conv, padding (0, K//2), + bias -----------
    # W sits on sublanes; the shifted reads are sublane shifts (XLU), leaving
    # the store slot with just one interior write per step.
    pw_ref[:, pad:pad + W, :] = acc
    ww = ww_ref[...].astype(f32)                       # (K, 1, C_blk)
    out = jnp.broadcast_to(bw_ref[...].astype(f32), (H, W, Cb))
    for k in range(K):
        out = out + ww[k:k + 1] * pw_ref[:, k:k + W, :]

    o_ref[0, :, :, :] = out.astype(o_ref.dtype)


def oversize_conv2d(x, conv_h_weight, conv_w_weight, conv_h_bias, conv_w_bias):
    """OversizeConv2d forward (interpolate=False), channels-last layout.

    x:              (B, H, W, C) float32 (NHWC: TPU-native, no transpose glue)
    conv_h_weight:  (C, K)  -- squeezed torch weight (C, 1, K, 1)
    conv_w_weight:  (C, K)  -- squeezed torch weight (C, 1, 1, K)
    conv_h_bias / conv_w_bias: (C,)
    """
    B, H, W, C = x.shape
    K = conv_h_weight.shape[1]
    assert conv_w_weight.shape == (C, K)
    assert K % 2 == 1
    pad = K // 2

    # Channel blocking: lane-dense 128-channel groups at real dims; full C for
    # small C (block then equals the full array dim, satisfying tiling rules).
    c_block = 128 if (C % 128 == 0) else C
    grid = (B, C // c_block)

    # Weights as (K, 1, C) lane vectors so each tap broadcasts across (H, W)
    # for a whole channel block (VMEM, not SMEM; avoids SMEM padding blowup).
    wh = conv_h_weight.T.reshape(K, 1, C).astype(jnp.float32)
    ww = conv_w_weight.T.reshape(K, 1, C).astype(jnp.float32)
    bh = conv_h_bias.reshape(1, 1, C).astype(jnp.float32)
    bw = conv_w_bias.reshape(1, 1, C).astype(jnp.float32)

    blk_bytes = H * W * c_block * 4
    scratch_bytes = ((H + 2 * pad) * W + H * (W + 2 * pad)) * c_block * 4
    vmem_limit = int(min(64 << 20, max(16 << 20, 16 * blk_bytes + 2 * scratch_bytes)))

    cost = pl.CostEstimate(
        flops=4 * B * H * W * C * K,                       # 2 passes * (mul+add) * K taps
        transcendentals=0,
        bytes_accessed=4 * (2 * B * H * W * C + 2 * C * K + 2 * C),
    )

    return pl.pallas_call(
        oversize_conv2d_kernel,
        out_shape=jax.ShapeDtypeStruct((B, H, W, C), x.dtype),
        grid=grid,
        in_specs=[
            pl.BlockSpec((1, H, W, c_block), lambda b, g: (b, 0, 0, g)),   # x
            pl.BlockSpec((K, 1, c_block), lambda b, g: (0, 0, g)),         # wh
            pl.BlockSpec((K, 1, c_block), lambda b, g: (0, 0, g)),         # ww
            pl.BlockSpec((1, 1, c_block), lambda b, g: (0, 0, g)),         # bh
            pl.BlockSpec((1, 1, c_block), lambda b, g: (0, 0, g)),         # bw
        ],
        out_specs=pl.BlockSpec((1, H, W, c_block), lambda b, g: (b, 0, 0, g)),
        scratch_shapes=[
            pltpu.VMEM((H + 2 * pad, W, c_block), jnp.float32),   # H-padded (conv_h)
            pltpu.VMEM((H, W + 2 * pad, c_block), jnp.float32),   # W-padded (conv_w)
        ],
        compiler_params=pltpu.CompilerParams(
            dimension_semantics=("parallel", "parallel"),
            vmem_limit_bytes=vmem_limit,
        ),
        cost_estimate=cost,
    )(x, wh, ww, bh, bw)


def oversize_conv2d_reference(x, conv_h_weight, conv_w_weight, conv_h_bias, conv_w_bias):
    """Plain-JAX (lax) reference mirroring the PyTorch forward, channels-last."""
    B, H, W, C = x.shape
    K = conv_h_weight.shape[1]
    pad = K // 2
    dn = ('NHWC', 'HWIO', 'NHWC')
    conv = jax.lax.conv_general_dilated
    y = conv(x, conv_h_weight.T.reshape(K, 1, 1, C), (1, 1),
             [(pad, pad), (0, 0)], dimension_numbers=dn, feature_group_count=C)
    y = y + conv_h_bias.reshape(1, 1, 1, C)
    z = conv(y, conv_w_weight.T.reshape(1, K, 1, C), (1, 1),
             [(0, 0), (pad, pad)], dimension_numbers=dn, feature_group_count=C)
    z = z + conv_w_bias.reshape(1, 1, 1, C)
    return z


if __name__ == "__main__":
    B, H, W, C = 2, 16, 16, 4     # small example shapes
    K = 13                        # oversized global kernel size

    key = jax.random.PRNGKey(0)
    kx, kh, kw, kbh, kbw = jax.random.split(key, 5)
    x = jax.random.normal(kx, (B, H, W, C), jnp.float32)
    conv_h_weight = 0.25 * jax.random.normal(kh, (C, K), jnp.float32)
    conv_w_weight = 0.25 * jax.random.normal(kw, (C, K), jnp.float32)
    conv_h_bias = 0.1 * jax.random.normal(kbh, (C,), jnp.float32)
    conv_w_bias = 0.1 * jax.random.normal(kbw, (C,), jnp.float32)

    out = jax.block_until_ready(
        oversize_conv2d(x, conv_h_weight, conv_w_weight, conv_h_bias, conv_w_bias))
    ref = jax.block_until_ready(
        oversize_conv2d_reference(x, conv_h_weight, conv_w_weight, conv_h_bias, conv_w_bias))

    assert out.shape == (B, H, W, C), out.shape
    max_err = float(jnp.max(jnp.abs(out - ref)))
    if max_err > 1e-4:
        raise AssertionError(f"kernel/reference mismatch: max abs err = {max_err}")
    print("KERNEL_OK")
</pallas_src>

<mosaic_0001>
module attributes {stable_mosaic.version = 11 : i64} {
  func.func @oversize_conv2d_kernel(%arg0: i32, %arg1: i32, %arg2: memref<1x16x16x4xf32, #tpu.memory_space<vmem>>, %arg3: memref<13x1x4xf32, #tpu.memory_space<vmem>>, %arg4: memref<13x1x4xf32, #tpu.memory_space<vmem>>, %arg5: memref<1x1x4xf32, #tpu.memory_space<vmem>>, %arg6: memref<1x1x4xf32, #tpu.memory_space<vmem>>, %arg7: memref<1x16x16x4xf32, #tpu.memory_space<vmem>>, %arg8: memref<28x16x4xf32, #tpu.memory_space<vmem>>, %arg9: memref<16x28x4xf32, #tpu.memory_space<vmem>>) attributes {dimension_semantics = [#tpu.dimension_semantics<parallel>, #tpu.dimension_semantics<parallel>], iteration_bounds = array<i64: 2, 1>, scalar_prefetch = 0 : i64, scratch_operands = 2 : i64, tpu.core_type = #tpu.core_type<tc>, window_params = [{transform_indices = @transform_0, window_bounds = array<i64: 1, 16, 16, 4>}, {transform_indices = @transform_1, window_bounds = array<i64: 13, 1, 4>}, {transform_indices = @transform_2, window_bounds = array<i64: 13, 1, 4>}, {transform_indices = @transform_3, window_bounds = array<i64: 1, 1, 4>}, {transform_indices = @transform_4, window_bounds = array<i64: 1, 1, 4>}, {transform_indices = @transform_5, window_bounds = array<i64: 1, 16, 16, 4>}]} {
    %cst = arith.constant 0.000000e+00 : f32
    %0 = vector.broadcast %cst : f32 to vector<6x16x4xf32>
    %c0 = arith.constant 0 : index
    %c0_0 = arith.constant 0 : index
    %c0_1 = arith.constant 0 : index
    %1 = vector.load %arg8[%c0, %c0_0, %c0_1] : memref<28x16x4xf32, #tpu.memory_space<vmem>>, vector<6x16x4xf32>
    tpu.vector_store %arg8[%c0, %c0_0, %c0_1], %0 {strides = array<i32>} : memref<28x16x4xf32, #tpu.memory_space<vmem>>, vector<6x16x4xf32>,
    %cst_2 = arith.constant 0.000000e+00 : f32
    %2 = vector.broadcast %cst_2 : f32 to vector<6x16x4xf32>
    %c22 = arith.constant 22 : index
    %c0_3 = arith.constant 0 : index
    %c0_4 = arith.constant 0 : index
    %3 = vector.load %arg8[%c22, %c0_3, %c0_4] : memref<28x16x4xf32, #tpu.memory_space<vmem>>, vector<6x16x4xf32>
    tpu.vector_store %arg8[%c22, %c0_3, %c0_4], %2 {strides = array<i32>} : memref<28x16x4xf32, #tpu.memory_space<vmem>>, vector<6x16x4xf32>,
    %cst_5 = arith.constant 0.000000e+00 : f32
    %4 = vector.broadcast %cst_5 : f32 to vector<16x6x4xf32>
    %c0_6 = arith.constant 0 : index
    %c0_7 = arith.constant 0 : index
    %c0_8 = arith.constant 0 : index
    %5 = vector.load %arg9[%c0_6, %c0_7, %c0_8] : memref<16x28x4xf32, #tpu.memory_space<vmem>>, vector<16x6x4xf32>
    tpu.vector_store %arg9[%c0_6, %c0_7, %c0_8], %4 {strides = array<i32>} : memref<16x28x4xf32, #tpu.memory_space<vmem>>, vector<16x6x4xf32>,
    %cst_9 = arith.constant 0.000000e+00 : f32
    %6 = vector.broadcast %cst_9 : f32 to vector<16x6x4xf32>
    %c0_10 = arith.constant 0 : index
    %c22_11 = arith.constant 22 : index
    %c0_12 = arith.constant 0 : index
    %7 = vector.load %arg9[%c0_10, %c22_11, %c0_12] : memref<16x28x4xf32, #tpu.memory_space<vmem>>, vector<16x6x4xf32>
    tpu.vector_store %arg9[%c0_10, %c22_11, %c0_12], %6 {strides = array<i32>} : memref<16x28x4xf32, #tpu.memory_space<vmem>>, vector<16x6x4xf32>,
    %c0_13 = arith.constant 0 : index
    %c0_14 = arith.constant 0 : index
    %c0_15 = arith.constant 0 : index
    %c0_16 = arith.constant 0 : index
    %8 = vector.load %arg2[%c0_13, %c0_14, %c0_15, %c0_16] : memref<1x16x16x4xf32, #tpu.memory_space<vmem>>, vector<1x16x16x4xf32>
    %9 = vector.shape_cast %8 : vector<1x16x16x4xf32> to vector<16x16x4xf32>
    %c6 = arith.constant 6 : index
    %c0_17 = arith.constant 0 : index
    %c0_18 = arith.constant 0 : index
    %10 = vector.load %arg8[%c6, %c0_17, %c0_18] : memref<28x16x4xf32, #tpu.memory_space<vmem>>, vector<16x16x4xf32>
    tpu.vector_store %arg8[%c6, %c0_17, %c0_18], %9 {strides = array<i32>} : memref<28x16x4xf32, #tpu.memory_space<vmem>>, vector<16x16x4xf32>,
    %c0_19 = arith.constant 0 : index
    %c0_20 = arith.constant 0 : index
    %c0_21 = arith.constant 0 : index
    %11 = vector.load %arg3[%c0_19, %c0_20, %c0_21] : memref<13x1x4xf32, #tpu.memory_space<vmem>>, vector<13x1x4xf32>
    %c0_22 = arith.constant 0 : index
    %c0_23 = arith.constant 0 : index
    %c0_24 = arith.constant 0 : index
    %12 = vector.load %arg5[%c0_22, %c0_23, %c0_24] : memref<1x1x4xf32, #tpu.memory_space<vmem>>, vector<1x1x4xf32>
    %13 = vector.shape_cast %12 : vector<1x1x4xf32> to vector<1x1x4xf32>
    %14 = vector.broadcast %13 : vector<1x1x4xf32> to vector<16x16x4xf32>
    %15 = vector.extract_strided_slice %11 {offsets = [0, 0, 0], sizes = [1, 1, 4], strides = [1, 1, 1]} : vector<13x1x4xf32> to vector<1x1x4xf32>
    %c0_25 = arith.constant 0 : index
    %c0_26 = arith.constant 0 : index
    %c0_27 = arith.constant 0 : index
    %16 = vector.load %arg8[%c0_25, %c0_26, %c0_27] : memref<28x16x4xf32, #tpu.memory_space<vmem>>, vector<16x16x4xf32>
    %17 = vector.broadcast %15 : vector<1x1x4xf32> to vector<16x16x4xf32>
    %18 = arith.mulf %17, %16 : vector<16x16x4xf32>
    %19 = arith.addf %14, %18 : vector<16x16x4xf32>
    %20 = vector.extract_strided_slice %11 {offsets = [1, 0, 0], sizes = [1, 1, 4], strides = [1, 1, 1]} : vector<13x1x4xf32> to vector<1x1x4xf32>
    %c1 = arith.constant 1 : index
    %c0_28 = arith.constant 0 : index
    %c0_29 = arith.constant 0 : index
    %21 = vector.load %arg8[%c1, %c0_28, %c0_29] : memref<28x16x4xf32, #tpu.memory_space<vmem>>, vector<16x16x4xf32>
    %22 = vector.broadcast %20 : vector<1x1x4xf32> to vector<16x16x4xf32>
    %23 = arith.mulf %22, %21 : vector<16x16x4xf32>
    %24 = arith.addf %19, %23 : vector<16x16x4xf32>
    %25 = vector.extract_strided_slice %11 {offsets = [2, 0, 0], sizes = [1, 1, 4], strides = [1, 1, 1]} : vector<13x1x4xf32> to vector<1x1x4xf32>
    %c2 = arith.constant 2 : index
    %c0_30 = arith.constant 0 : index
    %c0_31 = arith.constant 0 : index
    %26 = vector.load %arg8[%c2, %c0_30, %c0_31] : memref<28x16x4xf32, #tpu.memory_space<vmem>>, vector<16x16x4xf32>
    %27 = vector.broadcast %25 : vector<1x1x4xf32> to vector<16x16x4xf32>
    %28 = arith.mulf %27, %26 : vector<16x16x4xf32>
    %29 = arith.addf %24, %28 : vector<16x16x4xf32>
    %30 = vector.extract_strided_slice %11 {offsets = [3, 0, 0], sizes = [1, 1, 4], strides = [1, 1, 1]} : vector<13x1x4xf32> to vector<1x1x4xf32>
    %c3 = arith.constant 3 : index
    %c0_32 = arith.constant 0 : index
    %c0_33 = arith.constant 0 : index
    %31 = vector.load %arg8[%c3, %c0_32, %c0_33] : memref<28x16x4xf32, #tpu.memory_space<vmem>>, vector<16x16x4xf32>
    %32 = vector.broadcast %30 : vector<1x1x4xf32> to vector<16x16x4xf32>
    %33 = arith.mulf %32, %31 : vector<16x16x4xf32>
    %34 = arith.addf %29, %33 : vector<16x16x4xf32>
    %35 = vector.extract_strided_slice %11 {offsets = [4, 0, 0], sizes = [1, 1, 4], strides = [1, 1, 1]} : vector<13x1x4xf32> to vector<1x1x4xf32>
    %c4 = arith.constant 4 : index
    %c0_34 = arith.constant 0 : index
    %c0_35 = arith.constant 0 : index
    %36 = vector.load %arg8[%c4, %c0_34, %c0_35] : memref<28x16x4xf32, #tpu.memory_space<vmem>>, vector<16x16x4xf32>
    %37 = vector.broadcast %35 : vector<1x1x4xf32> to vector<16x16x4xf32>
    %38 = arith.mulf %37, %36 : vector<16x16x4xf32>
    %39 = arith.addf %34, %38 : vector<16x16x4xf32>
    %40 = vector.extract_strided_slice %11 {offsets = [5, 0, 0], sizes = [1, 1, 4], strides = [1, 1, 1]} : vector<13x1x4xf32> to vector<1x1x4xf32>
    %c5 = arith.constant 5 : index
    %c0_36 = arith.constant 0 : index
    %c0_37 = arith.constant 0 : index
    %41 = vector.load %arg8[%c5, %c0_36, %c0_37] : memref<28x16x4xf32, #tpu.memory_space<vmem>>, vector<16x16x4xf32>
    %42 = vector.broadcast %40 : vector<1x1x4xf32> to vector<16x16x4xf32>
    %43 = arith.mulf %42, %41 : vector<16x16x4xf32>
    %44 = arith.addf %39, %43 : vector<16x16x4xf32>
    %45 = vector.extract_strided_slice %11 {offsets = [6, 0, 0], sizes = [1, 1, 4], strides = [1, 1, 1]} : vector<13x1x4xf32> to vector<1x1x4xf32>
    %c6_38 = arith.constant 6 : index
    %c0_39 = arith.constant 0 : index
    %c0_40 = arith.constant 0 : index
    %46 = vector.load %arg8[%c6_38, %c0_39, %c0_40] : memref<28x16x4xf32, #tpu.memory_space<vmem>>, vector<16x16x4xf32>
    %47 = vector.broadcast %45 : vector<1x1x4xf32> to vector<16x16x4xf32>
    %48 = arith.mulf %47, %46 : vector<16x16x4xf32>
    %49 = arith.addf %44, %48 : vector<16x16x4xf32>
    %50 = vector.extract_strided_slice %11 {offsets = [7, 0, 0], sizes = [1, 1, 4], strides = [1, 1, 1]} : vector<13x1x4xf32> to vector<1x1x4xf32>
    %c7 = arith.constant 7 : index
    %c0_41 = arith.constant 0 : index
    %c0_42 = arith.constant 0 : index
    %51 = vector.load %arg8[%c7, %c0_41, %c0_42] : memref<28x16x4xf32, #tpu.memory_space<vmem>>, vector<16x16x4xf32>
    %52 = vector.broadcast %50 : vector<1x1x4xf32> to vector<16x16x4xf32>
    %53 = arith.mulf %52, %51 : vector<16x16x4xf32>
    %54 = arith.addf %49, %53 : vector<16x16x4xf32>
    %55 = vector.extract_strided_slice %11 {offsets = [8, 0, 0], sizes = [1, 1, 4], strides = [1, 1, 1]} : vector<13x1x4xf32> to vector<1x1x4xf32>
    %c8 = arith.constant 8 : index
    %c0_43 = arith.constant 0 : index
    %c0_44 = arith.constant 0 : index
    %56 = vector.load %arg8[%c8, %c0_43, %c0_44] : memref<28x16x4xf32, #tpu.memory_space<vmem>>, vector<16x16x4xf32>
    %57 = vector.broadcast %55 : vector<1x1x4xf32> to vector<16x16x4xf32>
    %58 = arith.mulf %57, %56 : vector<16x16x4xf32>
    %59 = arith.addf %54, %58 : vector<16x16x4xf32>
    %60 = vector.extract_strided_slice %11 {offsets = [9, 0, 0], sizes = [1, 1, 4], strides = [1, 1, 1]} : vector<13x1x4xf32> to vector<1x1x4xf32>
    %c9 = arith.constant 9 : index
    %c0_45 = arith.constant 0 : index
    %c0_46 = arith.constant 0 : index
    %61 = vector.load %arg8[%c9, %c0_45, %c0_46] : memref<28x16x4xf32, #tpu.memory_space<vmem>>, vector<16x16x4xf32>
    %62 = vector.broadcast %60 : vector<1x1x4xf32> to vector<16x16x4xf32>
    %63 = arith.mulf %62, %61 : vector<16x16x4xf32>
    %64 = arith.addf %59, %63 : vector<16x16x4xf32>
    %65 = vector.extract_strided_slice %11 {offsets = [10, 0, 0], sizes = [1, 1, 4], strides = [1, 1, 1]} : vector<13x1x4xf32> to vector<1x1x4xf32>
    %c10 = arith.constant 10 : index
    %c0_47 = arith.constant 0 : index
    %c0_48 = arith.constant 0 : index
    %66 = vector.load %arg8[%c10, %c0_47, %c0_48] : memref<28x16x4xf32, #tpu.memory_space<vmem>>, vector<16x16x4xf32>
    %67 = vector.broadcast %65 : vector<1x1x4xf32> to vector<16x16x4xf32>
    %68 = arith.mulf %67, %66 : vector<16x16x4xf32>
    %69 = arith.addf %64, %68 : vector<16x16x4xf32>
    %70 = vector.extract_strided_slice %11 {offsets = [11, 0, 0], sizes = [1, 1, 4], strides = [1, 1, 1]} : vector<13x1x4xf32> to vector<1x1x4xf32>
    %c11 = arith.constant 11 : index
    %c0_49 = arith.constant 0 : index
    %c0_50 = arith.constant 0 : index
    %71 = vector.load %arg8[%c11, %c0_49, %c0_50] : memref<28x16x4xf32, #tpu.memory_space<vmem>>, vector<16x16x4xf32>
    %72 = vector.broadcast %70 : vector<1x1x4xf32> to vector<16x16x4xf32>
    %73 = arith.mulf %72, %71 : vector<16x16x4xf32>
    %74 = arith.addf %69, %73 : vector<16x16x4xf32>
    %75 = vector.extract_strided_slice %11 {offsets = [12, 0, 0], sizes = [1, 1, 4], strides = [1, 1, 1]} : vector<13x1x4xf32> to vector<1x1x4xf32>
    %c12 = arith.constant 12 : index
    %c0_51 = arith.constant 0 : index
    %c0_52 = arith.constant 0 : index
    %76 = vector.load %arg8[%c12, %c0_51, %c0_52] : memref<28x16x4xf32, #tpu.memory_space<vmem>>, vector<16x16x4xf32>
    %77 = vector.broadcast %75 : vector<1x1x4xf32> to vector<16x16x4xf32>
    %78 = arith.mulf %77, %76 : vector<16x16x4xf32>
    %79 = arith.addf %74, %78 : vector<16x16x4xf32>
    %c0_53 = arith.constant 0 : index
    %c6_54 = arith.constant 6 : index
    %c0_55 = arith.constant 0 : index
    %80 = vector.load %arg9[%c0_53, %c6_54, %c0_55] : memref<16x28x4xf32, #tpu.memory_space<vmem>>, vector<16x16x4xf32>
    tpu.vector_store %arg9[%c0_53, %c6_54, %c0_55], %79 {strides = array<i32>} : memref<16x28x4xf32, #tpu.memory_space<vmem>>, vector<16x16x4xf32>,
    %c0_56 = arith.constant 0 : index
    %c0_57 = arith.constant 0 : index
    %c0_58 = arith.constant 0 : index
    %81 = vector.load %arg4[%c0_56, %c0_57, %c0_58] : memref<13x1x4xf32, #tpu.memory_space<vmem>>, vector<13x1x4xf32>
    %c0_59 = arith.constant 0 : index
    %c0_60 = arith.constant 0 : index
    %c0_61 = arith.constant 0 : index
    %82 = vector.load %arg6[%c0_59, %c0_60, %c0_61] : memref<1x1x4xf32, #tpu.memory_space<vmem>>, vector<1x1x4xf32>
    %83 = vector.shape_cast %82 : vector<1x1x4xf32> to vector<1x1x4xf32>
    %84 = vector.broadcast %83 : vector<1x1x4xf32> to vector<16x16x4xf32>
    %85 = vector.extract_strided_slice %81 {offsets = [0, 0, 0], sizes = [1, 1, 4], strides = [1, 1, 1]} : vector<13x1x4xf32> to vector<1x1x4xf32>
    %c0_62 = arith.constant 0 : index
    %c0_63 = arith.constant 0 : index
    %c0_64 = arith.constant 0 : index
    %86 = vector.load %arg9[%c0_62, %c0_63, %c0_64] : memref<16x28x4xf32, #tpu.memory_space<vmem>>, vector<16x16x4xf32>
    %87 = vector.broadcast %85 : vector<1x1x4xf32> to vector<16x16x4xf32>
    %88 = arith.mulf %87, %86 : vector<16x16x4xf32>
    %89 = arith.addf %84, %88 : vector<16x16x4xf32>
    %90 = vector.extract_strided_slice %81 {offsets = [1, 0, 0], sizes = [1, 1, 4], strides = [1, 1, 1]} : vector<13x1x4xf32> to vector<1x1x4xf32>
    %c0_65 = arith.constant 0 : index
    %c1_66 = arith.constant 1 : index
    %c0_67 = arith.constant 0 : index
    %91 = vector.load %arg9[%c0_65, %c1_66, %c0_67] : memref<16x28x4xf32, #tpu.memory_space<vmem>>, vector<16x16x4xf32>
    %92 = vector.broadcast %90 : vector<1x1x4xf32> to vector<16x16x4xf32>
    %93 = arith.mulf %92, %91 : vector<16x16x4xf32>
    %94 = arith.addf %89, %93 : vector<16x16x4xf32>
    %95 = vector.extract_strided_slice %81 {offsets = [2, 0, 0], sizes = [1, 1, 4], strides = [1, 1, 1]} : vector<13x1x4xf32> to vector<1x1x4xf32>
    %c0_68 = arith.constant 0 : index
    %c2_69 = arith.constant 2 : index
    %c0_70 = arith.constant 0 : index
    %96 = vector.load %arg9[%c0_68, %c2_69, %c0_70] : memref<16x28x4xf32, #tpu.memory_space<vmem>>, vector<16x16x4xf32>
    %97 = vector.broadcast %95 : vector<1x1x4xf32> to vector<16x16x4xf32>
    %98 = arith.mulf %97, %96 : vector<16x16x4xf32>
    %99 = arith.addf %94, %98 : vector<16x16x4xf32>
    %100 = vector.extract_strided_slice %81 {offsets = [3, 0, 0], sizes = [1, 1, 4], strides = [1, 1, 1]} : vector<13x1x4xf32> to vector<1x1x4xf32>
    %c0_71 = arith.constant 0 : index
    %c3_72 = arith.constant 3 : index
    %c0_73 = arith.constant 0 : index
    %101 = vector.load %arg9[%c0_71, %c3_72, %c0_73] : memref<16x28x4xf32, #tpu.memory_space<vmem>>, vector<16x16x4xf32>
    %102 = vector.broadcast %100 : vector<1x1x4xf32> to vector<16x16x4xf32>
    %103 = arith.mulf %102, %101 : vector<16x16x4xf32>
    %104 = arith.addf %99, %103 : vector<16x16x4xf32>
    %105 = vector.extract_strided_slice %81 {offsets = [4, 0, 0], sizes = [1, 1, 4], strides = [1, 1, 1]} : vector<13x1x4xf32> to vector<1x1x4xf32>
    %c0_74 = arith.constant 0 : index
    %c4_75 = arith.constant 4 : index
    %c0_76 = arith.constant 0 : index
    %106 = vector.load %arg9[%c0_74, %c4_75, %c0_76] : memref<16x28x4xf32, #tpu.memory_space<vmem>>, vector<16x16x4xf32>
    %107 = vector.broadcast %105 : vector<1x1x4xf32> to vector<16x16x4xf32>
    %108 = arith.mulf %107, %106 : vector<16x16x4xf32>
    %109 = arith.addf %104, %108 : vector<16x16x4xf32>
    %110 = vector.extract_strided_slice %81 {offsets = [5, 0, 0], sizes = [1, 1, 4], strides = [1, 1, 1]} : vector<13x1x4xf32> to vector<1x1x4xf32>
    %c0_77 = arith.constant 0 : index
    %c5_78 = arith.constant 5 : index
    %c0_79 = arith.constant 0 : index
    %111 = vector.load %arg9[%c0_77, %c5_78, %c0_79] : memref<16x28x4xf32, #tpu.memory_space<vmem>>, vector<16x16x4xf32>
    %112 = vector.broadcast %110 : vector<1x1x4xf32> to vector<16x16x4xf32>
    %113 = arith.mulf %112, %111 : vector<16x16x4xf32>
    %114 = arith.addf %109, %113 : vector<16x16x4xf32>
    %115 = vector.extract_strided_slice %81 {offsets = [6, 0, 0], sizes = [1, 1, 4], strides = [1, 1, 1]} : vector<13x1x4xf32> to vector<1x1x4xf32>
    %c0_80 = arith.constant 0 : index
    %c6_81 = arith.constant 6 : index
    %c0_82 = arith.constant 0 : index
    %116 = vector.load %arg9[%c0_80, %c6_81, %c0_82] : memref<16x28x4xf32, #tpu.memory_space<vmem>>, vector<16x16x4xf32>
    %117 = vector.broadcast %115 : vector<1x1x4xf32> to vector<16x16x4xf32>
    %118 = arith.mulf %117, %116 : vector<16x16x4xf32>
    %119 = arith.addf %114, %118 : vector<16x16x4xf32>
    %120 = vector.extract_strided_slice %81 {offsets = [7, 0, 0], sizes = [1, 1, 4], strides = [1, 1, 1]} : vector<13x1x4xf32> to vector<1x1x4xf32>
    %c0_83 = arith.constant 0 : index
    %c7_84 = arith.constant 7 : index
    %c0_85 = arith.constant 0 : index
    %121 = vector.load %arg9[%c0_83, %c7_84, %c0_85] : memref<16x28x4xf32, #tpu.memory_space<vmem>>, vector<16x16x4xf32>
    %122 = vector.broadcast %120 : vector<1x1x4xf32> to vector<16x16x4xf32>
    %123 = arith.mulf %122, %121 : vector<16x16x4xf32>
    %124 = arith.addf %119, %123 : vector<16x16x4xf32>
    %125 = vector.extract_strided_slice %81 {offsets = [8, 0, 0], sizes = [1, 1, 4], strides = [1, 1, 1]} : vector<13x1x4xf32> to vector<1x1x4xf32>
    %c0_86 = arith.constant 0 : index
    %c8_87 = arith.constant 8 : index
    %c0_88 = arith.constant 0 : index
    %126 = vector.load %arg9[%c0_86, %c8_87, %c0_88] : memref<16x28x4xf32, #tpu.memory_space<vmem>>, vector<16x16x4xf32>
    %127 = vector.broadcast %125 : vector<1x1x4xf32> to vector<16x16x4xf32>
    %128 = arith.mulf %127, %126 : vector<16x16x4xf32>
    %129 = arith.addf %124, %128 : vector<16x16x4xf32>
    %130 = vector.extract_strided_slice %81 {offsets = [9, 0, 0], sizes = [1, 1, 4], strides = [1, 1, 1]} : vector<13x1x4xf32> to vector<1x1x4xf32>
    %c0_89 = arith.constant 0 : index
    %c9_90 = arith.constant 9 : index
    %c0_91 = arith.constant 0 : index
    %131 = vector.load %arg9[%c0_89, %c9_90, %c0_91] : memref<16x28x4xf32, #tpu.memory_space<vmem>>, vector<16x16x4xf32>
    %132 = vector.broadcast %130 : vector<1x1x4xf32> to vector<16x16x4xf32>
    %133 = arith.mulf %132, %131 : vector<16x16x4xf32>
    %134 = arith.addf %129, %133 : vector<16x16x4xf32>
    %135 = vector.extract_strided_slice %81 {offsets = [10, 0, 0], sizes = [1, 1, 4], strides = [1, 1, 1]} : vector<13x1x4xf32> to vector<1x1x4xf32>
    %c0_92 = arith.constant 0 : index
    %c10_93 = arith.constant 10 : index
    %c0_94 = arith.constant 0 : index
    %136 = vector.load %arg9[%c0_92, %c10_93, %c0_94] : memref<16x28x4xf32, #tpu.memory_space<vmem>>, vector<16x16x4xf32>
    %137 = vector.broadcast %135 : vector<1x1x4xf32> to vector<16x16x4xf32>
    %138 = arith.mulf %137, %136 : vector<16x16x4xf32>
    %139 = arith.addf %134, %138 : vector<16x16x4xf32>
    %140 = vector.extract_strided_slice %81 {offsets = [11, 0, 0], sizes = [1, 1, 4], strides = [1, 1, 1]} : vector<13x1x4xf32> to vector<1x1x4xf32>
    %c0_95 = arith.constant 0 : index
    %c11_96 = arith.constant 11 : index
    %c0_97 = arith.constant 0 : index
    %141 = vector.load %arg9[%c0_95, %c11_96, %c0_97] : memref<16x28x4xf32, #tpu.memory_space<vmem>>, vector<16x16x4xf32>
    %142 = vector.broadcast %140 : vector<1x1x4xf32> to vector<16x16x4xf32>
    %143 = arith.mulf %142, %141 : vector<16x16x4xf32>
    %144 = arith.addf %139, %143 : vector<16x16x4xf32>
    %145 = vector.extract_strided_slice %81 {offsets = [12, 0, 0], sizes = [1, 1, 4], strides = [1, 1, 1]} : vector<13x1x4xf32> to vector<1x1x4xf32>
    %c0_98 = arith.constant 0 : index
    %c12_99 = arith.constant 12 : index
    %c0_100 = arith.constant 0 : index
    %146 = vector.load %arg9[%c0_98, %c12_99, %c0_100] : memref<16x28x4xf32, #tpu.memory_space<vmem>>, vector<16x16x4xf32>
    %147 = vector.broadcast %145 : vector<1x1x4xf32> to vector<16x16x4xf32>
    %148 = arith.mulf %147, %146 : vector<16x16x4xf32>
    %149 = arith.addf %144, %148 : vector<16x16x4xf32>
    %c0_101 = arith.constant 0 : index
    %c0_102 = arith.constant 0 : index
    %c0_103 = arith.constant 0 : index
    %c0_104 = arith.constant 0 : index
    %150 = vector.load %arg7[%c0_101, %c0_102, %c0_103, %c0_104] : memref<1x16x16x4xf32, #tpu.memory_space<vmem>>, vector<1x16x16x4xf32>
    %151 = vector.shape_cast %150 : vector<1x16x16x4xf32> to vector<16x16x4xf32>
    %152 = vector.shape_cast %149 : vector<16x16x4xf32> to vector<1x16x16x4xf32>
    tpu.vector_store %arg7[%c0_101, %c0_102, %c0_103, %c0_104], %152 {strides = array<i32>} : memref<1x16x16x4xf32, #tpu.memory_space<vmem>>, vector<1x16x16x4xf32>,
    return
  }
  func.func @transform_0(%arg0: i32, %arg1: i32) -> (i32, i32, i32, i32) {
    %c0_i32 = arith.constant 0 : i32
    %c0_i32_0 = arith.constant 0 : i32
    %c0_i32_1 = arith.constant 0 : i32
    return %arg0, %c0_i32, %c0_i32_0, %arg1 : i32, i32, i32, i32
  }
  func.func @transform_1(%arg0: i32, %arg1: i32) -> (i32, i32, i32) {
    %c0_i32 = arith.constant 0 : i32
    %c0_i32_0 = arith.constant 0 : i32
    %c0_i32_1 = arith.constant 0 : i32
    return %c0_i32, %c0_i32_0, %arg1 : i32, i32, i32
  }
  func.func @transform_2(%arg0: i32, %arg1: i32) -> (i32, i32, i32) {
    %c0_i32 = arith.constant 0 : i32
    %c0_i32_0 = arith.constant 0 : i32
    %c0_i32_1 = arith.constant 0 : i32
    return %c0_i32, %c0_i32_0, %arg1 : i32, i32, i32
  }
  func.func @transform_3(%arg0: i32, %arg1: i32) -> (i32, i32, i32) {
    %c0_i32 = arith.constant 0 : i32
    %c0_i32_0 = arith.constant 0 : i32
    %c0_i32_1 = arith.constant 0 : i32
    return %c0_i32, %c0_i32_0, %arg1 : i32, i32, i32
  }
  func.func @transform_4(%arg0: i32, %arg1: i32) -> (i32, i32, i32) {
    %c0_i32 = arith.constant 0 : i32
    %c0_i32_0 = arith.constant 0 : i32
    %c0_i32_1 = arith.constant 0 : i32
    return %c0_i32, %c0_i32_0, %arg1 : i32, i32, i32
  }
  func.func @transform_5(%arg0: i32, %arg1: i32) -> (i32, i32, i32, i32) {
    %c0_i32 = arith.constant 0 : i32
    %c0_i32_0 = arith.constant 0 : i32
    %c0_i32_1 = arith.constant 0 : i32
    return %arg0, %c0_i32, %c0_i32_0, %arg1 : i32, i32, i32, i32
  }
}

</mosaic_0001>

<bundles_post_ra>
// kernel: tpu_custom_call.1
= control target key start
LH: loop header
LB: loop body
LE: loop exit
PB: predicated region body
PF: predicated region fallthrough
CT: control target
= control target key end

     0   :  { %s3422_s18 = smov 0   ;;  %s3424_s19 = smov 0   ;;  %s5837_s0 = inlined_call_operand.vmem [shape: f32[2,16,16,4], index: 0, kind: input, shape index: {}]   ;;  %s5838_s1 = inlined_call_operand.vmem [shape: f32[13,1,4], index: 1, kind: input, shape index: {}]   ;;  %s5839_s2 = inlined_call_operand.vmem [shape: f32[13,1,4], index: 2, kind: input, shape index: {}]   ;;  %s5840_s3 = inlined_call_operand.vmem [shape: f32[1,1,4], index: 3, kind: input, shape index: {}]   ;;  %s5841_s4 = inlined_call_operand.vmem [shape: f32[1,1,4], index: 4, kind: input, shape index: {}]   ;;  %s5842_s5 = inlined_call_operand.vmem [shape: f32[2,16,16,4], index: 5, kind: output, shape index: {}]  }
   0x1   :  { %s3426_s20 = smov 0  }
   0x2 LB: > { %s27_s21 = sadd.s32 1, %s3385_s19  ;;  %p3263_p0 = scmp.ge.s32.totalorder %s3389_s20, 1  ;;  %s3389_s20 = sphi %s3426_s20, %s15_s20   ;;  %s3385_s19 = sphi %s3424_s19, %s5889_s19   ;;  %s3381_s18 = sphi %s3422_s18, %s5888_s18  }
   0x3   : > { %p29_p1 = scmp.ge.s32.totalorder %s27_s21, 2  ;;  %p238_p2 = scmp.lt.s32.totalorder %s3389_s20, 3 }
   0x5   : > { %s5891_s21 = smov (%p29_p1, %s27_s21), 0  ;;  %p239_p3 = pnand %p3263_p0, %p238_p2 }
   0x7   : > { %242 = sbr.rel (%p239_p3) target bundleno = 478 (0x1de), region = 40 }
   0xe   : > { %vm312_vm0 = vcmask 31744   ;;  %p284_p4 = scmp.lt.s32.totalorder %s3381_s18, 1  ;;  %vm338_vm1 = vcmask 29696   ;;  %v3391_v0 = vmov 0.0   ;;  %v3554_v22 = vld [vmem:[%s5838_s1] ss:$0 sm:$0xff] }
   0xf   : > { %313 = vst.msk [vmem:[#allocation2] sm:$0xff] %vm312_vm0, %v3391_v0  ;;  %314 = vst.msk [vmem:[#allocation2 + $0x8] sm:$0xff] %vm312_vm0, %v3391_v0  ;;  %v3565_v26 = vld [vmem:[%s5838_s1 + $0x1] ss:$0 sm:$0xff]  ;;  %v3576_v30 = vld [vmem:[%s5838_s1 + $0x2] ss:$0 sm:$0xff] }
  0x10   : > { %315 = vst.msk [vmem:[#allocation2 + $0x10] sm:$0xff] %vm312_vm0, %v3391_v0  ;;  %316 = vst.msk [vmem:[#allocation2 + $0x18] sm:$0xff] %vm312_vm0, %v3391_v0  ;;  %s5893_s18 = smov (!%p284_p4, %s3381_s18), 1  ;;  %v3581_v31 = vld [vmem:[%s5840_s3] ss:$0 sm:$0xff] }
  0x11   : > { %317 = vst.msk [vmem:[#allocation2 + $0x20] sm:$0xff] %vm312_vm0, %v3391_v0  ;;  %318 = vst.msk [vmem:[#allocation2 + $0x28] sm:$0xff] %vm312_vm0, %v3391_v0  ;;  %s3298_s22 = sshll.u32 %s5893_s18, 8  ;;  %v3599_v38 = vld [vmem:[%s5838_s1 + $0x3] ss:$0 sm:$0xff] }
  0x12   : > { %319 = vst.msk [vmem:[#allocation2 + $0x30] sm:$0xff] %vm312_vm0, %v3391_v0  ;;  %320 = vst.msk [vmem:[#allocation2 + $0x38] sm:$0xff] %vm312_vm0, %v3391_v0  ;;  %s3510_s25 = scalar_lea.vmem %s5837_s0, %s3298_s22  ;;  %v3604_v39 = vld [vmem:[%s5838_s1 + $0x4] ss:$0 sm:$0xff]  ;;  %v3610_v42 = vld [vmem:[%s5838_s1 + $0x5] ss:$0 sm:$0xff]  ;;  %s4947_s7 = scalar_lea.vmem %s5842_s5, %s3298_s22 }
  0x13   : > { %321 = vst.msk [vmem:[#allocation2 + $0x40] sm:$0xff] %vm312_vm0, %v3391_v0  ;;  %322 = vst.msk [vmem:[#allocation2 + $0x48] sm:$0xff] %vm312_vm0, %v3391_v0  ;;  %v371_v1 = vld [vmem:[%s3510_s25] sm:$0xff]  ;;  %v372_v2 = vld [vmem:[%s3510_s25 + $0x8] sm:$0xff] }
  0x14   : > { %323 = vst.msk [vmem:[#allocation2 + $0x50] sm:$0xff] %vm312_vm0, %v3391_v0  ;;  %324 = vst.msk [vmem:[#allocation2 + $0x58] sm:$0xff] %vm312_vm0, %v3391_v0  ;;  %v373_v3 = vld [vmem:[%s3510_s25 + $0x10] sm:$0xff]  ;;  %v374_v4 = vld [vmem:[%s3510_s25 + $0x18] sm:$0xff] }
  0x15   : > { %326 = vst.msk [vmem:[#allocation2 + $0x160] sm:$0xff] %vm312_vm0, %v3391_v0  ;;  %327 = vst.msk [vmem:[#allocation2 + $0x168] sm:$0xff] %vm312_vm0, %v3391_v0  ;;  %v375_v5 = vld [vmem:[%s3510_s25 + $0x20] sm:$0xff]  ;;  %v376_v6 = vld [vmem:[%s3510_s25 + $0x28] sm:$0xff] }
  0x16   : > { %328 = vst.msk [vmem:[#allocation2 + $0x170] sm:$0xff] %vm312_vm0, %v3391_v0  ;;  %329 = vst.msk [vmem:[#allocation2 + $0x178] sm:$0xff] %vm312_vm0, %v3391_v0  ;;  %v377_v7 = vld [vmem:[%s3510_s25 + $0x30] sm:$0xff]  ;;  %v378_v8 = vld [vmem:[%s3510_s25 + $0x38] sm:$0xff] }
  0x17   : > { %330 = vst.msk [vmem:[#allocation2 + $0x180] sm:$0xff] %vm312_vm0, %v3391_v0  ;;  %331 = vst.msk [vmem:[#allocation2 + $0x188] sm:$0xff] %vm312_vm0, %v3391_v0  ;;  %v379_v9 = vld [vmem:[%s3510_s25 + $0x40] sm:$0xff]  ;;  %v380_v10 = vld [vmem:[%s3510_s25 + $0x48] sm:$0xff] }
  0x18   : > { %332 = vst.msk [vmem:[#allocation2 + $0x190] sm:$0xff] %vm312_vm0, %v3391_v0  ;;  %333 = vst.msk [vmem:[#allocation2 + $0x198] sm:$0xff] %vm312_vm0, %v3391_v0  ;;  %v381_v11 = vld [vmem:[%s3510_s25 + $0x50] sm:$0xff]  ;;  %v382_v12 = vld [vmem:[%s3510_s25 + $0x58] sm:$0xff] }
  0x19   : > { %334 = vst.msk [vmem:[#allocation2 + $0x1a0] sm:$0xff] %vm312_vm0, %v3391_v0  ;;  %335 = vst.msk [vmem:[#allocation2 + $0x1a8] sm:$0xff] %vm312_vm0, %v3391_v0  ;;  %v383_v13 = vld [vmem:[%s3510_s25 + $0x60] sm:$0xff]  ;;  %v384_v14 = vld [vmem:[%s3510_s25 + $0x68] sm:$0xff] }
  0x1a   : > { %336 = vst.msk [vmem:[#allocation2 + $0x1b0] sm:$0xff] %vm312_vm0, %v3391_v0  ;;  %337 = vst.msk [vmem:[#allocation2 + $0x1b8] sm:$0xff] %vm312_vm0, %v3391_v0  ;;  %v385_v15 = vld [vmem:[%s3510_s25 + $0x70] sm:$0xff]  ;;  %v386_v16 = vld [vmem:[%s3510_s25 + $0x78] sm:$0xff] }
  0x1b   : > { %339 = vst.msk [vmem:[#allocation3] sm:$0x3f] %vm338_vm1, %v3391_v0  ;;  %340 = vst.msk [vmem:[#allocation3 + $0x20] sm:$0x3f] %vm338_vm1, %v3391_v0  ;;  %v387_v17 = vld [vmem:[%s3510_s25 + $0x80] sm:$0xff]  ;;  %v388_v18 = vld [vmem:[%s3510_s25 + $0x88] sm:$0xff] }
  0x1c   : > { %341 = vst.msk [vmem:[#allocation3 + $0x40] sm:$0x3f] %vm338_vm1, %v3391_v0  ;;  %342 = vst.msk [vmem:[#allocation3 + $0x60] sm:$0x3f] %vm338_vm1, %v3391_v0  ;;  %v389_v19 = vld [vmem:[%s3510_s25 + $0x90] sm:$0xff]  ;;  %v390_v20 = vld [vmem:[%s3510_s25 + $0x98] sm:$0xff] }
  0x1d   : > { %343 = vst.msk [vmem:[#allocation3 + $0x80] sm:$0x3f] %vm338_vm1, %v3391_v0  ;;  %344 = vst.msk [vmem:[#allocation3 + $0xa0] sm:$0x3f] %vm338_vm1, %v3391_v0  ;;  %v391_v21 = vld [vmem:[%s3510_s25 + $0xa0] sm:$0xff]  ;;  %v392_v23 = vld [vmem:[%s3510_s25 + $0xa8] sm:$0xff] }
  0x1e   : > { %345 = vst.msk [vmem:[#allocation3 + $0xc0] sm:$0x3f] %vm338_vm1, %v3391_v0  ;;  %346 = vst.msk [vmem:[#allocation3 + $0xe0] sm:$0x3f] %vm338_vm1, %v3391_v0  ;;  %v393_v24 = vld [vmem:[%s3510_s25 + $0xb0] sm:$0xff]  ;;  %v394_v25 = vld [vmem:[%s3510_s25 + $0xb8] sm:$0xff] }
  0x1f   : > { %347 = vst.msk [vmem:[#allocation3 + $0x100] sm:$0x3f] %vm338_vm1, %v3391_v0  ;;  %348 = vst.msk [vmem:[#allocation3 + $0x120] sm:$0x3f] %vm338_vm1, %v3391_v0  ;;  %v395_v27 = vld [vmem:[%s3510_s25 + $0xc0] sm:$0xff]  ;;  %v396_v28 = vld [vmem:[%s3510_s25 + $0xc8] sm:$0xff] }
  0x20   : > { %349 = vst.msk [vmem:[#allocation3 + $0x140] sm:$0x3f] %vm338_vm1, %v3391_v0  ;;  %350 = vst.msk [vmem:[#allocation3 + $0x160] sm:$0x3f] %vm338_vm1, %v3391_v0  ;;  %v397_v29 = vld [vmem:[%s3510_s25 + $0xd0] sm:$0xff]  ;;  %v398_v32 = vld [vmem:[%s3510_s25 + $0xd8] sm:$0xff] }
  0x21   : > { %351 = vst.msk [vmem:[#allocation3 + $0x180] sm:$0x3f] %vm338_vm1, %v3391_v0  ;;  %352 = vst.msk [vmem:[#allocation3 + $0x1a0] sm:$0x3f] %vm338_vm1, %v3391_v0  ;;  %v399_v33 = vld [vmem:[%s3510_s25 + $0xe0] sm:$0xff]  ;;  %v400_v34 = vld [vmem:[%s3510_s25 + $0xe8] sm:$0xff] }
  0x22   : > { %353 = vst.msk [vmem:[#allocation3 + $0x1c0] sm:$0x3f] %vm338_vm1, %v3391_v0  ;;  %354 = vst.msk [vmem:[#allocation3 + $0x1e0] sm:$0x3f] %vm338_vm1, %v3391_v0  ;;  %v401_v35 = vld [vmem:[%s3510_s25 + $0xf0] sm:$0xff]  ;;  %v402_v36 = vld [vmem:[%s3510_s25 + $0xf8] sm:$0xff] }
  0x23   : > { %355 = vst.msk [vmem:[#allocation3 + $0x16] sm:$0x3f] %vm338_vm1, %v3391_v0  ;;  %356 = vst.msk [vmem:[#allocation3 + $0x36] sm:$0x3f] %vm338_vm1, %v3391_v0  ;;  %v456_v37 = vld [vmem:[#allocation2] sm:$0xff]  ;;  %v559_v41 = vld [vmem:[#allocation2 + $0x10] sm:$0xff] }
  0x24   : > { %357 = vst.msk [vmem:[#allocation3 + $0x56] sm:$0x3f] %vm338_vm1, %v3391_v0  ;;  %358 = vst.msk [vmem:[#allocation3 + $0x76] sm:$0x3f] %vm338_vm1, %v3391_v0  ;;  %v494_v40 = vmul.f32 %v3554_v22, %v456_v37  ;;  %v3615_v43 = vld [vmem:[%s5838_s1 + $0x6] ss:$0 sm:$0xff]  ;;  %v597_v45 = vmul.f32 %v3565_v26, %v559_v41  ;;  %v496_v47 = vmul.f32 %v3554_v22, %v559_v41 }
  0x25   : > { %359 = vst.msk [vmem:[#allocation3 + $0x96] sm:$0x3f] %vm338_vm1, %v3391_v0  ;;  %360 = vst.msk [vmem:[#allocation3 + $0xb6] sm:$0x3f] %vm338_vm1, %v3391_v0  ;;  %v3620_v44 = vld [vmem:[%s5838_s1 + $0x7] ss:$0 sm:$0xff] }
  0x26   : > { %361 = vst.msk [vmem:[#allocation3 + $0xd6] sm:$0x3f] %vm338_vm1, %v3391_v0  ;;  %362 = vst.msk [vmem:[#allocation3 + $0xf6] sm:$0x3f] %vm338_vm1, %v3391_v0  ;;  %v3623_v46 = vld [vmem:[#allocation2 + $0x20] sm:$0xff]  ;;  %v526_v50 = vadd.f32 %v3581_v31, %v494_v40  ;;  %v3639_v52 = vld [vmem:[#allocation2 + $0x30] sm:$0xff] }
  0x27   : > { %363 = vst.msk [vmem:[#allocation3 + $0x116] sm:$0x3f] %vm338_vm1, %v3391_v0  ;;  %364 = vst.msk [vmem:[#allocation3 + $0x136] sm:$0x3f] %vm338_vm1, %v3391_v0  ;;  %v3629_v48 = vld [vmem:[%s5838_s1 + $0x8] ss:$0 sm:$0xff]  ;;  %v700_v51 = vmul.f32 %v3576_v30, %v3623_v46  ;;  %v803_v62 = vmul.f32 %v3599_v38, %v3639_v52  ;;  %v702_v40 = vmul.f32 %v3576_v30, %v3639_v52 }
  0x28   : > { %365 = vst.msk [vmem:[#allocation3 + $0x156] sm:$0x3f] %vm338_vm1, %v3391_v0  ;;  %366 = vst.msk [vmem:[#allocation3 + $0x176] sm:$0x3f] %vm338_vm1, %v3391_v0  ;;  %v3634_v49 = vld [vmem:[%s5838_s1 + $0x9] ss:$0 sm:$0xff]  ;;  %v629_v61 = vadd.f32 %v597_v45, %v526_v50 }
  0x29   : > { %367 = vst.msk [vmem:[#allocation3 + $0x196] sm:$0x3f] %vm338_vm1, %v3391_v0  ;;  %368 = vst.msk [vmem:[#allocation3 + $0x1b6] sm:$0x3f] %vm338_vm1, %v3391_v0  ;;  %v3641_v53 = vld [vmem:[#allocation2 + $0x40] sm:$0xff]  ;;  %v3658_v57 = vld [vmem:[#allocation2 + $0x50] sm:$0xff] }
  0x2a   : > { %369 = vst.msk [vmem:[#allocation3 + $0x1d6] sm:$0x3f] %vm338_vm1, %v3391_v0  ;;  %370 = vst.msk [vmem:[#allocation3 + $0x1f6] sm:$0x3f] %vm338_vm1, %v3391_v0  ;;  %v3646_v54 = vld [vmem:[%s5838_s1 + $0xa] ss:$0 sm:$0xff]  ;;  %v906_v63 = vmul.f32 %v3604_v39, %v3641_v53 }
  0x2b   : > { %404 = vst.msk [vmem:[#allocation2 + $0x60] sm:$0xff] %vm312_vm0, %v371_v1  ;;  %405 = vst.msk [vmem:[#allocation2 + $0x68] sm:$0xff] %vm312_vm0, %v372_v2  ;;  %v3651_v55 = vld [vmem:[%s5838_s1 + $0xb] ss:$0 sm:$0xff]  ;;  %v3656_v56 = vld [vmem:[%s5838_s1 + $0xc] ss:$0 sm:$0xff] }
  0x2c   : > { %406 = vst.msk [vmem:[#allocation2 + $0x70] sm:$0xff] %vm312_vm0, %v373_v3  ;;  %407 = vst.msk [vmem:[#allocation2 + $0x78] sm:$0xff] %vm312_vm0, %v374_v4  ;;  %v457_v1 = vld [vmem:[#allocation2 + $0x8] sm:$0xff]  ;;  %v560_v2 = vld [vmem:[#allocation2 + $0x18] sm:$0xff] }
  0x2d   : > { %408 = vst.msk [vmem:[#allocation2 + $0x80] sm:$0xff] %vm312_vm0, %v375_v5  ;;  %409 = vst.msk [vmem:[#allocation2 + $0x88] sm:$0xff] %vm312_vm0, %v376_v6  ;;  %v495_v6 = vmul.f32 %v3554_v22, %v457_v1 }
  0x2e   : > { %410 = vst.msk [vmem:[#allocation2 + $0x90] sm:$0xff] %vm312_vm0, %v377_v7  ;;  %411 = vst.msk [vmem:[#allocation2 + $0x98] sm:$0xff] %vm312_vm0, %v378_v8  ;;  %v598_v7 = vmul.f32 %v3565_v26, %v560_v2  ;;  %v528_v8 = vadd.f32 %v3581_v31, %v496_v47 }
  0x2f   : > { %412 = vst.msk [vmem:[#allocation2 + $0xa0] sm:$0xff] %vm312_vm0, %v379_v9  ;;  %413 = vst.msk [vmem:[#allocation2 + $0xa8] sm:$0xff] %vm312_vm0, %v380_v10  ;;  %v599_v9 = vmul.f32 %v3565_v26, %v3623_v46  ;;  %v732_v10 = vadd.f32 %v700_v51, %v629_v61  ;;  %v805_v51 = vmul.f32 %v3599_v38, %v3641_v53 }
  0x30   : > { %414 = vst.msk [vmem:[#allocation2 + $0xb0] sm:$0xff] %vm312_vm0, %v381_v11  ;;  %415 = vst.msk [vmem:[#allocation2 + $0xb8] sm:$0xff] %vm312_vm0, %v382_v12  ;;  %v1009_v11 = vmul.f32 %v3610_v42, %v3658_v57 }
  0x31   : > { %416 = vst.msk [vmem:[#allocation2 + $0xc0] sm:$0xff] %vm312_vm0, %v383_v13  ;;  %417 = vst.msk [vmem:[#allocation2 + $0xc8] sm:$0xff] %vm312_vm0, %v384_v14  ;;  %v3689_v14 = vld [vmem:[#allocation2 + $0x28] sm:$0xff]  ;;  %v631_v37 = vadd.f32 %v599_v9, %v528_v8 }
  0x32   : > { %418 = vst.msk [vmem:[#allocation2 + $0xd0] sm:$0xff] %vm312_vm0, %v385_v15  ;;  %419 = vst.msk [vmem:[#allocation2 + $0xd8] sm:$0xff] %vm312_vm0, %v386_v16  ;;  %v3660_v58 = vld [vmem:[#allocation2 + $0x60] sm:$0xff] }
  0x33   : > { %420 = vst.msk [vmem:[#allocation2 + $0xe0] sm:$0xff] %vm312_vm0, %v387_v17  ;;  %421 = vst.msk [vmem:[#allocation2 + $0xe8] sm:$0xff] %vm312_vm0, %v388_v18  ;;  %v3662_v59 = vld [vmem:[#allocation2 + $0x70] sm:$0xff]  ;;  %v1111_v12 = vmul.f32 %v3615_v43, %v3660_v58  ;;  %v527_v17 = vadd.f32 %v3581_v31, %v495_v6  ;;  %v701_v18 = vmul.f32 %v3576_v30, %v3689_v14 }
  0x34   : > { %422 = vst.msk [vmem:[#allocation2 + $0xf0] sm:$0xff] %vm312_vm0, %v389_v19  ;;  %423 = vst.msk [vmem:[#allocation2 + $0xf8] sm:$0xff] %vm312_vm0, %v390_v20  ;;  %v3664_v60 = vld [vmem:[#allocation2 + $0x80] sm:$0xff]  ;;  %v1214_v13 = vmul.f32 %v3620_v44, %v3662_v59  ;;  %v3698_v19 = vld [vmem:[#allocation2 + $0x38] sm:$0xff] }
  0x35   : > { %424 = vst.msk [vmem:[#allocation2 + $0x100] sm:$0xff] %vm312_vm0, %v391_v21  ;;  %425 = vst.msk [vmem:[#allocation2 + $0x108] sm:$0xff] %vm312_vm0, %v392_v23  ;;  %v3670_v0 = vld [vmem:[#allocation2 + $0x90] sm:$0xff]  ;;  %v1317_v15 = vmul.f32 %v3629_v48, %v3664_v60  ;;  %v3700_v20 = vld [vmem:[#allocation2 + $0x48] sm:$0xff]  ;;  %v835_v21 = vadd.f32 %v803_v62, %v732_v10 }
  0x36   : > { %426 = vst.msk [vmem:[#allocation2 + $0x110] sm:$0xff] %vm312_vm0, %v393_v24  ;;  %427 = vst.msk [vmem:[#allocation2 + $0x118] sm:$0xff] %vm312_vm0, %v394_v25  ;;  %v3672_v3 = vld [vmem:[#allocation2 + $0xa0] sm:$0xff]  ;;  %v1420_v16 = vmul.f32 %v3634_v49, %v3670_v0  ;;  %v907_v45 = vmul.f32 %v3604_v39, %v3700_v20 }
  0x37   : > { %428 = vst.msk [vmem:[#allocation2 + $0x120] sm:$0xff] %vm312_vm0, %v395_v27  ;;  %429 = vst.msk [vmem:[#allocation2 + $0x128] sm:$0xff] %vm312_vm0, %v396_v28  ;;  %v3674_v4 = vld [vmem:[#allocation2 + $0xb0] sm:$0xff]  ;;  %v3704_v23 = vmul.f32 %v3646_v54, %v3672_v3  ;;  %v3714_v27 = vld [vmem:[#allocation2 + $0x58] sm:$0xff]  ;;  %v938_v41 = vadd.f32 %v906_v63, %v835_v21  ;;  %v734_v63 = vadd.f32 %v702_v40, %v631_v37 }
  0x38   : > { %430 = vst.msk [vmem:[#allocation2 + $0x130] sm:$0xff] %vm312_vm0, %v397_v29  ;;  %431 = vst.msk [vmem:[#allocation2 + $0x138] sm:$0xff] %vm312_vm0, %v398_v32  ;;  %v3676_v5 = vld [vmem:[#allocation2 + $0xc0] sm:$0xff]  ;;  %v3708_v24 = vmul.f32 %v3651_v55, %v3674_v4  ;;  %v3716_v28 = vld [vmem:[#allocation2 + $0x68] sm:$0xff]  ;;  %v630_v32 = vadd.f32 %v598_v7, %v527_v17  ;;  %v1010_v47 = vmul.f32 %v3610_v42, %v3714_v27 }
  0x39   : > { %432 = vst.msk [vmem:[#allocation2 + $0x140] sm:$0xff] %vm312_vm0, %v399_v33  ;;  %433 = vst.msk [vmem:[#allocation2 + $0x148] sm:$0xff] %vm312_vm0, %v400_v34  ;;  %v3712_v25 = vmul.f32 %v3656_v56, %v3676_v5  ;;  %v3718_v29 = vld [vmem:[#allocation2 + $0x78] sm:$0xff]  ;;  %v804_v33 = vmul.f32 %v3599_v38, %v3698_v19  ;;  %v3722_v34 = vld [vmem:[#allocation2 + $0x88] sm:$0xff]  ;;  %v1112_v62 = vmul.f32 %v3615_v43, %v3716_v28 }
  0x3a   : > { %434 = vst.msk [vmem:[#allocation2 + $0x150] sm:$0xff] %vm312_vm0, %v401_v35  ;;  %435 = vst.msk [vmem:[#allocation2 + $0x158] sm:$0xff] %vm312_vm0, %v402_v36  ;;  %v3724_v35 = vld [vmem:[#allocation2 + $0x98] sm:$0xff]  ;;  %v3726_v36 = vld [vmem:[#allocation2 + $0xa8] sm:$0xff]  ;;  %v733_v61 = vadd.f32 %v701_v18, %v630_v32  ;;  %v1215_v1 = vmul.f32 %v3620_v44, %v3718_v29  ;;  %v1041_v7 = vadd.f32 %v1009_v11, %v938_v41 }
  0x3b   : > { %5861 = vst [vmem:[#allocation4_spill] sm:$0xff] %v3660_v58  ;;  %5862 = vst [vmem:[#allocation5_spill] sm:$0xff] %v3662_v59  ;;  %v3734_v50 = vld [vmem:[#allocation2 + $0xb8] sm:$0xff]  ;;  %v3742_v6 = vld [vmem:[#allocation2 + $0xc8] sm:$0xff]  ;;  %v1318_v8 = vmul.f32 %v3629_v48, %v3722_v34  ;;  %v1421_v9 = vmul.f32 %v3634_v49, %v3724_v35  ;;  %v1524_v10 = vmul.f32 %v3646_v54, %v3726_v36 }
  0x3c   : > { %5863 = vst [vmem:[#allocation6_spill] sm:$0xff] %v3664_v60  ;;  %5864 = vst [vmem:[#allocation7_spill] sm:$0xff] %v3712_v25  ;;  %v836_v17 = vadd.f32 %v804_v33, %v733_v61  ;;  %v3752_v18 = vmul.f32 %v3651_v55, %v3734_v50  ;;  %v837_v21 = vadd.f32 %v805_v51, %v734_v63 }
  0x3d   : > { %5865 = vst [vmem:[#allocation8_spill] sm:$0xff] %v3724_v35  ;;  %5866 = vst [vmem:[#allocation9_spill] sm:$0xff] %v3726_v36  ;;  %v908_v32 = vmul.f32 %v3604_v39, %v3658_v57  ;;  %v1143_v37 = vadd.f32 %v1111_v12, %v1041_v7  ;;  %v3758_v11 = vmul.f32 %v3656_v56, %v3742_v6  ;;  %v3769_v7 = vld [vmem:[#allocation2 + $0xd0] sm:$0xff] }
  0x3e   : > { %5867 = vst [vmem:[#allocation10_spill] sm:$0xff] %v3734_v50  ;;  %5868 = vst [vmem:[#allocation11_spill] sm:$0xff] %v3752_v18  ;;  %v497_v40 = vmul.f32 %v3554_v22, %v560_v2  ;;  %v600_v41 = vmul.f32 %v3565_v26, %v3689_v14  ;;  %v939_v25 = vadd.f32 %v907_v45, %v836_v17 }
  0x3f   : > { %5869 = vst [vmem:[#allocation12_spill] sm:$0xff] %v3758_v11  ;;  %v940_v33 = vadd.f32 %v908_v32, %v837_v21  ;;  %v1011_v61 = vmul.f32 %v3610_v42, %v3660_v58  ;;  %v1113_v51 = vmul.f32 %v3615_v43, %v3662_v59  ;;  %v1246_v63 = vadd.f32 %v1214_v13, %v1143_v37 }
  0x40   : > { %v1216_v12 = vmul.f32 %v3620_v44, %v3664_v60  ;;  %v529_v11 = vadd.f32 %v3581_v31, %v497_v40  ;;  %v703_v2 = vmul.f32 %v3576_v30, %v3698_v19  ;;  %v1042_v18 = vadd.f32 %v1010_v47, %v939_v25 }
  0x41   : > { %v1043_v45 = vadd.f32 %v1011_v61, %v940_v33  ;;  %v1319_v17 = vmul.f32 %v3629_v48, %v3670_v0  ;;  %v1422_v21 = vmul.f32 %v3634_v49, %v3672_v3  ;;  %v1349_v32 = vadd.f32 %v1317_v15, %v1246_v63 }
  0x42   : > { %v1525_v13 = vmul.f32 %v3646_v54, %v3674_v4  ;;  %v632_v37 = vadd.f32 %v600_v41, %v529_v11  ;;  %v806_v60 = vmul.f32 %v3599_v38, %v3700_v20  ;;  %v1144_v40 = vadd.f32 %v1112_v62, %v1042_v18 }
  0x43   : > { %v1145_v59 = vadd.f32 %v1113_v51, %v1043_v45  ;;  %v1628_v25 = vmul.f32 %v3651_v55, %v3676_v5  ;;  %v1731_v47 = vmul.f32 %v3656_v56, %v3769_v7  ;;  %v1452_v33 = vadd.f32 %v1420_v16, %v1349_v32 }
  0x44   : > { %v735_v61 = vadd.f32 %v703_v2, %v632_v37  ;;  %v498_v15 = vmul.f32 %v3554_v22, %v3623_v46  ;;  %v601_v63 = vmul.f32 %v3565_v26, %v3639_v52  ;;  %v1247_v11 = vadd.f32 %v1215_v1, %v1144_v40 }
  0x45   : > { %v1248_v41 = vadd.f32 %v1216_v12, %v1145_v59  ;;  %v909_v62 = vmul.f32 %v3604_v39, %v3714_v27  ;;  %v1012_v18 = vmul.f32 %v3610_v42, %v3716_v28  ;;  %v1555_v51 = vadd.f32 %v3704_v23, %v1452_v33 }
  0x46   : > { %v838_v45 = vadd.f32 %v806_v60, %v735_v61  ;;  %v530_v16 = vadd.f32 %v3581_v31, %v498_v15  ;;  %v704_v2 = vmul.f32 %v3576_v30, %v3641_v53  ;;  %v1350_v46 = vadd.f32 %v1318_v8, %v1247_v11 }
  0x47   : > { %v1351_v32 = vadd.f32 %v1319_v17, %v1248_v41  ;;  %v1114_v1 = vmul.f32 %v3615_v43, %v3718_v29  ;;  %v1217_v59 = vmul.f32 %v3620_v44, %v3722_v34  ;;  %v1658_v12 = vadd.f32 %v3708_v24, %v1555_v51  ;;  %v5870_v17 = vld [vmem:[#allocation7_spill] sm:$0xff] }
  0x48   : > { %v941_v37 = vadd.f32 %v909_v62, %v838_v45  ;;  %v633_v40 = vadd.f32 %v601_v63, %v530_v16  ;;  %v807_v60 = vmul.f32 %v3599_v38, %v3658_v57  ;;  %v1453_v23 = vadd.f32 %v1421_v9, %v1350_v46  ;;  %v3812_v24 = vld [vmem:[#allocation2 + $0xd8] sm:$0xff] }
  0x49   : > { %v1454_v33 = vadd.f32 %v1422_v21, %v1351_v32  ;;  %v1320_v61 = vmul.f32 %v3629_v48, %v3724_v35  ;;  %v1423_v8 = vmul.f32 %v3634_v49, %v3726_v36  ;;  %v1761_v15 = vadd.f32 %v5870_v17, %v1658_v12  ;;  %v5871_v32 = vld [vmem:[#allocation11_spill] sm:$0xff]  ;;  %v5872_v12 = vld [vmem:[#allocation5_spill] sm:$0xff] }
  0x4a   : > { %v1044_v11 = vadd.f32 %v1012_v18, %v941_v37  ;;  %v1526_v41 = vmul.f32 %v3646_v54, %v3734_v50  ;;  %v736_v63 = vadd.f32 %v704_v2, %v633_v40  ;;  %v1556_v62 = vadd.f32 %v1524_v10, %v1453_v23 }
  0x4b   : > { %v1557_v51 = vadd.f32 %v1525_v13, %v1454_v33  ;;  %v1629_v9 = vmul.f32 %v3651_v55, %v3742_v6  ;;  %v910_v21 = vmul.f32 %v3604_v39, %v3660_v58  ;;  %1793 = vst.msk [vmem:[#allocation3 + $0x6] sm:$0xff] %vm312_vm0, %v1761_v15  ;;  %v499_v18 = vmul.f32 %v3554_v22, %v3689_v14  ;;  %v5873_v14 = vld [vmem:[#allocation12_spill] sm:$0xff]  ;;  %v5874_v15 = vld [vmem:[#allocation6_spill] sm:$0xff] }
  0x4c   : > { %v1146_v45 = vadd.f32 %v1114_v1, %v1044_v11  ;;  %v839_v16 = vadd.f32 %v807_v60, %v736_v63  ;;  %v602_v46 = vmul.f32 %v3565_v26, %v3698_v19  ;;  %v1659_v2 = vadd.f32 %v5871_v32, %v1556_v62  ;;  %v3836_v63 = vld [vmem:[#allocation2 + $0xe0] sm:$0xff] }
  0x4d   : > { %v1660_v10 = vadd.f32 %v1628_v25, %v1557_v51  ;;  %v1732_v13 = vmul.f32 %v3656_v56, %v3812_v24  ;;  %v1013_v37 = vmul.f32 %v3610_v42, %v5872_v12  ;;  %v531_v1 = vadd.f32 %v3581_v31, %v499_v18  ;;  %5875 = vst [vmem:[#allocation7_spill] sm:$0xff] %v3836_v63 }
  0x4e   : > { %v1249_v40 = vadd.f32 %v1217_v59, %v1146_v45  ;;  %v942_v23 = vadd.f32 %v910_v21, %v839_v16  ;;  %v705_v60 = vmul.f32 %v3576_v30, %v3700_v20  ;;  %v1762_v33 = vadd.f32 %v5873_v14, %v1659_v2 }
  0x4f   : > { %v1763_v17 = vadd.f32 %v1731_v47, %v1660_v10  ;;  %v1115_v11 = vmul.f32 %v3615_v43, %v5874_v15  ;;  %v1218_v25 = vmul.f32 %v3620_v44, %v3670_v0  ;;  %v634_v59 = vadd.f32 %v602_v46, %v531_v1 }
  0x50   : > { %v1352_v62 = vadd.f32 %v1320_v61, %v1249_v40  ;;  %v1045_v51 = vadd.f32 %v1013_v37, %v942_v23  ;;  %v808_v21 = vmul.f32 %v3599_v38, %v3714_v27  ;;  %1794 = vst.msk [vmem:[#allocation3 + $0xe] sm:$0xff] %vm312_vm0, %v1762_v33  ;;  %v1321_v47 = vmul.f32 %v3629_v48, %v3672_v3 }
  0x51   : > { %1795 = vst.msk [vmem:[#allocation3 + $0x26] sm:$0xff] %vm312_vm0, %v1763_v17  ;;  %v1424_v45 = vmul.f32 %v3634_v49, %v3674_v4  ;;  %v1527_v16 = vmul.f32 %v3646_v54, %v3676_v5  ;;  %v1630_v61 = vmul.f32 %v3651_v55, %v3769_v7  ;;  %v1733_v32 = vmul.f32 %v3656_v56, %v3836_v63 }
  0x52   : > { %v1455_v18 = vadd.f32 %v1423_v8, %v1352_v62  ;;  %v1147_v46 = vadd.f32 %v1115_v11, %v1045_v51  ;;  %v737_v2 = vadd.f32 %v705_v60, %v634_v59  ;;  %v911_v10 = vmul.f32 %v3604_v39, %v3716_v28  ;;  %v3866_v11 = vld [vmem:[#allocation2 + $0xe8] sm:$0xff] }
  0x53   : > { %v1014_v37 = vmul.f32 %v3610_v42, %v3718_v29  ;;  %v500_v40 = vmul.f32 %v3554_v22, %v3639_v52  ;;  %v603_v23 = vmul.f32 %v3565_v26, %v3641_v53  ;;  %v1116_v33 = vmul.f32 %v3615_v43, %v3722_v34 }
  0x54   : > { %v1558_v1 = vadd.f32 %v1526_v41, %v1455_v18  ;;  %v1250_v14 = vadd.f32 %v1218_v25, %v1147_v46  ;;  %v840_v8 = vadd.f32 %v808_v21, %v737_v2  ;;  %v1219_v60 = vmul.f32 %v3620_v44, %v3724_v35 }
  0x55   : > { %v1322_v17 = vmul.f32 %v3629_v48, %v3726_v36  ;;  %v532_v62 = vadd.f32 %v3581_v31, %v500_v40  ;;  %v706_v52 = vmul.f32 %v3576_v30, %v3658_v57  ;;  %v1425_v59 = vmul.f32 %v3634_v49, %v3734_v50 }
  0x56   : > { %v1661_v51 = vadd.f32 %v1629_v9, %v1558_v1  ;;  %v1353_v41 = vadd.f32 %v1321_v47, %v1250_v14  ;;  %v943_v25 = vadd.f32 %v911_v10, %v840_v8  ;;  %v1528_v21 = vmul.f32 %v3646_v54, %v3742_v6 }
  0x57   : > { %v1631_v18 = vmul.f32 %v3651_v55, %v3812_v24  ;;  %v635_v46 = vadd.f32 %v603_v23, %v532_v62  ;;  %v809_v2 = vmul.f32 %v3599_v38, %v3660_v58  ;;  %v1734_v9 = vmul.f32 %v3656_v56, %v3866_v11 }
  0x58   : > { %v1764_v40 = vadd.f32 %v1732_v13, %v1661_v51  ;;  %v1456_v36 = vadd.f32 %v1424_v45, %v1353_v41  ;;  %v1046_v35 = vadd.f32 %v1014_v37, %v943_v25  ;;  %v912_v10 = vmul.f32 %v3604_v39, %v5872_v12 }
  0x59   : > { %v738_v47 = vadd.f32 %v706_v52, %v635_v46  ;;  %v501_v1 = vmul.f32 %v3554_v22, %v3698_v19  ;;  %v604_v14 = vmul.f32 %v3565_v26, %v3700_v20  ;;  %v1015_v13 = vmul.f32 %v3610_v42, %v5874_v15  ;;  %v3894_v52 = vld [vmem:[#allocation2 + $0xf0] sm:$0xff] }
  0x5a   : > { %1796 = vst.msk [vmem:[#allocation3 + $0x2e] sm:$0xff] %vm312_vm0, %v1764_v40  ;;  %v1559_v23 = vadd.f32 %v1527_v16, %v1456_v36  ;;  %v1148_v8 = vadd.f32 %v1116_v33, %v1046_v35  ;;  %v1117_v45 = vmul.f32 %v3615_v43, %v3670_v0  ;;  %v1220_v62 = vmul.f32 %v3620_v44, %v3672_v3 }
  0x5b   : > { %v841_v37 = vadd.f32 %v809_v2, %v738_v47  ;;  %5876 = vst [vmem:[#allocation11_spill] sm:$0xff] %v3894_v52  ;;  %v533_v19 = vadd.f32 %v3581_v31, %v501_v1  ;;  %v707_v51 = vmul.f32 %v3576_v30, %v3714_v27  ;;  %v1323_v35 = vmul.f32 %v3629_v48, %v3674_v4 }
  0x5c   : > { %v1662_v41 = vadd.f32 %v1630_v61, %v1559_v23  ;;  %v1251_v36 = vadd.f32 %v1219_v60, %v1148_v8  ;;  %v1426_v16 = vmul.f32 %v3634_v49, %v3676_v5  ;;  %v1529_v25 = vmul.f32 %v3646_v54, %v3769_v7 }
  0x5d   : > { %v944_v33 = vadd.f32 %v912_v10, %v841_v37  ;;  %v636_v46 = vadd.f32 %v604_v14, %v533_v19  ;;  %v810_v2 = vmul.f32 %v3599_v38, %v3716_v28  ;;  %v1632_v61 = vmul.f32 %v3651_v55, %v3836_v63  ;;  %v5877_v37 = vld [vmem:[#allocation8_spill] sm:$0xff] }
  0x5e   : > { %v1765_v40 = vadd.f32 %v1733_v32, %v1662_v41  ;;  %v1354_v47 = vadd.f32 %v1322_v17, %v1251_v36  ;;  %v1735_v60 = vmul.f32 %v3656_v56, %v3894_v52  ;;  %v502_v10 = vmul.f32 %v3554_v22, %v3641_v53  ;;  %v3922_v41 = vld [vmem:[#allocation2 + $0xf8] sm:$0xff] }
  0x5f   : > { %v1047_v1 = vadd.f32 %v1015_v13, %v944_v33  ;;  %v739_v23 = vadd.f32 %v707_v51, %v636_v46  ;;  %v605_v8 = vmul.f32 %v3565_v26, %v3658_v57  ;;  %v913_v32 = vmul.f32 %v3604_v39, %v3718_v29 }
  0x60   : > { %1797 = vst.msk [vmem:[#allocation3 + $0x46] sm:$0xff] %vm312_vm0, %v1765_v40  ;;  %v1457_v14 = vadd.f32 %v1425_v59, %v1354_v47  ;;  %v1016_v17 = vmul.f32 %v3610_v42, %v3722_v34  ;;  %v1118_v19 = vmul.f32 %v3615_v43, %v5877_v37  ;;  %v534_v53 = vadd.f32 %v3581_v31, %v502_v10  ;;  %v5878_v59 = vld [vmem:[#allocation9_spill] sm:$0xff] }
  0x61   : > { %v1149_v13 = vadd.f32 %v1117_v45, %v1047_v1  ;;  %v842_v51 = vadd.f32 %v810_v2, %v739_v23  ;;  %v708_v36 = vmul.f32 %v3576_v30, %v3660_v58  ;;  %v1221_v46 = vmul.f32 %v3620_v44, %v5878_v59 }
  0x62   : > { %v1560_v33 = vadd.f32 %v1528_v21, %v1457_v14  ;;  %v1324_v40 = vmul.f32 %v3629_v48, %v3734_v50  ;;  %v1427_v47 = vmul.f32 %v3634_v49, %v3742_v6  ;;  %v1530_v2 = vmul.f32 %v3646_v54, %v3812_v24 }
  0x63   : > { %v1252_v37 = vadd.f32 %v1220_v62, %v1149_v13  ;;  %v945_v45 = vadd.f32 %v913_v32, %v842_v51  ;;  %v637_v1 = vadd.f32 %v605_v8, %v534_v53  ;;  %v1633_v10 = vmul.f32 %v3651_v55, %v3866_v11 }
  0x64   : > { %v1663_v23 = vadd.f32 %v1631_v18, %v1560_v33  ;;  %v1736_v21 = vmul.f32 %v3656_v56, %v3922_v41  ;;  %v811_v14 = vmul.f32 %v3599_v38, %v5872_v12  ;;  %v503_v62 = vmul.f32 %v3554_v22, %v3700_v20 }
  0x65   : > { %v1355_v50 = vadd.f32 %v1323_v35, %v1252_v37  ;;  %v1048_v59 = vadd.f32 %v1016_v17, %v945_v45  ;;  %v740_v58 = vadd.f32 %v708_v36, %v637_v1  ;;  %v914_v8 = vmul.f32 %v3604_v39, %v5874_v15 }
  0x66   : > { %v1766_v32 = vadd.f32 %v1734_v9, %v1663_v23  ;;  %v606_v18 = vmul.f32 %v3565_v26, %v3714_v27  ;;  %v709_v13 = vmul.f32 %v3576_v30, %v3716_v28  ;;  %v535_v35 = vadd.f32 %v3581_v31, %v503_v62 }
  0x67   : > { %v1458_v51 = vadd.f32 %v1426_v16, %v1355_v50  ;;  %v1150_v53 = vadd.f32 %v1118_v19, %v1048_v59  ;;  %v843_v33 = vadd.f32 %v811_v14, %v740_v58  ;;  %v1017_v20 = vmul.f32 %v3610_v42, %v3670_v0  ;;  %v3959_v58 = vld [vmem:[#allocation2 + $0x100] sm:$0xff] }
  0x68   : > { %1798 = vst.msk [vmem:[#allocation3 + $0x4e] sm:$0xff] %vm312_vm0, %v1766_v32  ;;  %v1119_v9 = vmul.f32 %v3615_v43, %v3672_v3  ;;  %v1222_v17 = vmul.f32 %v3620_v44, %v3674_v4  ;;  %v1325_v37 = vmul.f32 %v3629_v48, %v3676_v5  ;;  %v638_v19 = vadd.f32 %v606_v18, %v535_v35 }
  0x69   : > { %v1561_v36 = vadd.f32 %v1529_v25, %v1458_v51  ;;  %v1253_v50 = vadd.f32 %v1221_v46, %v1150_v53  ;;  %v946_v16 = vadd.f32 %v914_v8, %v843_v33  ;;  %v1428_v59 = vmul.f32 %v3634_v49, %v3769_v7  ;;  %v5879_v51 = vld [vmem:[#allocation4_spill] sm:$0xff] }
  0x6a   : > { %v1531_v45 = vmul.f32 %v3646_v54, %v3836_v63  ;;  %v1634_v1 = vmul.f32 %v3651_v55, %v3894_v52  ;;  %v812_v23 = vmul.f32 %v3599_v38, %v3718_v29  ;;  %v741_v46 = vadd.f32 %v709_v13, %v638_v19  ;;  %v5881_v13 = vld [vmem:[#allocation9_spill] sm:$0xff] }
  0x6b   : > { %v1664_v14 = vadd.f32 %v1632_v61, %v1561_v36  ;;  %v1356_v62 = vadd.f32 %v1324_v40, %v1253_v50  ;;  %v1049_v25 = vadd.f32 %v1017_v20, %v946_v16  ;;  %v1737_v32 = vmul.f32 %v3656_v56, %v3959_v58  ;;  %v5880_v61 = vld [vmem:[#allocation8_spill] sm:$0xff]  ;;  %v5882_v36 = vld [vmem:[#allocation10_spill] sm:$0xff] }
  0x6c   : > { %v915_v8 = vmul.f32 %v3604_v39, %v3722_v34  ;;  %v504_v18 = vmul.f32 %v3554_v22, %v3658_v57  ;;  %v607_v53 = vmul.f32 %v3565_v26, %v5879_v51  ;;  %v844_v63 = vadd.f32 %v812_v23, %v741_v46 }
  0x6d   : > { %v1767_v33 = vadd.f32 %v1735_v60, %v1664_v14  ;;  %v1459_v35 = vadd.f32 %v1427_v47, %v1356_v62  ;;  %v1151_v52 = vadd.f32 %v1119_v9, %v1049_v25  ;;  %v1018_v40 = vmul.f32 %v3610_v42, %v5880_v61  ;;  %v3987_v47 = vld [vmem:[#allocation2 + $0x108] sm:$0xff] }
  0x6e   : > { %v1120_v20 = vmul.f32 %v3615_v43, %v5881_v13  ;;  %v1223_v50 = vmul.f32 %v3620_v44, %v5882_v36  ;;  %v536_v16 = vadd.f32 %v3581_v31, %v504_v18  ;;  %v947_v51 = vadd.f32 %v915_v8, %v844_v63 }
  0x6f   : > { %1799 = vst.msk [vmem:[#allocation3 + $0x66] sm:$0xff] %vm312_vm0, %v1767_v33  ;;  %v1562_v57 = vadd.f32 %v1530_v2, %v1459_v35  ;;  %v1254_v19 = vadd.f32 %v1222_v17, %v1151_v52  ;;  %v1326_v60 = vmul.f32 %v3629_v48, %v3742_v6  ;;  %v1429_v9 = vmul.f32 %v3634_v49, %v3812_v24 }
  0x70   : > { %v1532_v23 = vmul.f32 %v3646_v54, %v3866_v11  ;;  %v639_v14 = vadd.f32 %v607_v53, %v536_v16  ;;  %v710_v62 = vmul.f32 %v3576_v30, %v5872_v12  ;;  %v1050_v2 = vadd.f32 %v1018_v40, %v947_v51 }
  0x71   : > { %v1665_v25 = vadd.f32 %v1633_v10, %v1562_v57  ;;  %v1357_v46 = vadd.f32 %v1325_v37, %v1254_v19  ;;  %v1635_v63 = vmul.f32 %v3651_v55, %v3922_v41  ;;  %v1738_v52 = vmul.f32 %v3656_v56, %v3987_v47 }
  0x72   : > { %v742_v17 = vadd.f32 %v710_v62, %v639_v14  ;;  %v813_v8 = vmul.f32 %v3599_v38, %v5874_v15  ;;  %v505_v18 = vmul.f32 %v3554_v22, %v3714_v27  ;;  %v1152_v35 = vadd.f32 %v1120_v20, %v1050_v2  ;;  %v4017_v14 = vld [vmem:[#allocation2 + $0x110] sm:$0xff] }
  0x73   : > { %v1768_v53 = vadd.f32 %v1736_v21, %v1665_v25  ;;  %v1460_v33 = vadd.f32 %v1428_v59, %v1357_v46  ;;  %v608_v10 = vmul.f32 %v3565_v26, %v3716_v28  ;;  %v916_v51 = vmul.f32 %v3604_v39, %v3670_v0 }
  0x74   : > { %v845_v37 = vadd.f32 %v813_v8, %v742_v17  ;;  %v1019_v40 = vmul.f32 %v3610_v42, %v3672_v3  ;;  %v537_v16 = vadd.f32 %v3581_v31, %v505_v18  ;;  %v1255_v19 = vadd.f32 %v1223_v50, %v1152_v35  ;;  %v5884_v17 = vld [vmem:[#allocation11_spill] sm:$0xff] }
  0x75   : > { %1800 = vst.msk [vmem:[#allocation3 + $0x6e] sm:$0xff] %vm312_vm0, %v1768_v53  ;;  %v1563_v57 = vadd.f32 %v1531_v45, %v1460_v33  ;;  %v1121_v27 = vmul.f32 %v3615_v43, %v3674_v4  ;;  %v1224_v21 = vmul.f32 %v3620_v44, %v3676_v5  ;;  %v1327_v20 = vmul.f32 %v3629_v48, %v3769_v7  ;;  %v5883_v45 = vld [vmem:[#allocation7_spill] sm:$0xff] }
  0x76   : > { %v948_v59 = vadd.f32 %v916_v51, %v845_v37  ;;  %v640_v62 = vadd.f32 %v608_v10, %v537_v16  ;;  %v711_v25 = vmul.f32 %v3576_v30, %v3718_v29  ;;  %v1358_v2 = vadd.f32 %v1326_v60, %v1255_v19  ;;  %v5885_v60 = vld [vmem:[#allocation4_spill] sm:$0xff] }
  0x77   : > { %v1666_v46 = vadd.f32 %v1634_v1, %v1563_v57  ;;  %v1430_v50 = vmul.f32 %v3634_v49, %v5883_v45  ;;  %v1533_v8 = vmul.f32 %v3646_v54, %v5884_v17  ;;  %v1636_v53 = vmul.f32 %v3651_v55, %v3959_v58 }
  0x78   : > { %v1051_v18 = vadd.f32 %v1019_v40, %v948_v59  ;;  %v743_v33 = vadd.f32 %v711_v25, %v640_v62  ;;  %v814_v35 = vmul.f32 %v3599_v38, %v3722_v34  ;;  %v1461_v37 = vadd.f32 %v1429_v9, %v1358_v2 }
  0x79   : > { %v1769_v10 = vadd.f32 %v1737_v32, %v1666_v46  ;;  %v1739_v1 = vmul.f32 %v3656_v56, %v4017_v14  ;;  %v506_v51 = vmul.f32 %v3554_v22, %v5885_v60  ;;  %v917_v40 = vmul.f32 %v3604_v39, %v5880_v61 }
  0x7a   : > { %v1153_v16 = vadd.f32 %v1121_v27, %v1051_v18  ;;  %v846_v57 = vadd.f32 %v814_v35, %v743_v33  ;;  %v1020_v19 = vmul.f32 %v3610_v42, %v5881_v13  ;;  %v1564_v59 = vadd.f32 %v1532_v23, %v1461_v37  ;;  %v4047_v18 = vld [vmem:[#allocation2 + $0x118] sm:$0xff] }
  0x7b   : > { %1801 = vst.msk [vmem:[#allocation3 + $0x86] sm:$0xff] %vm312_vm0, %v1769_v10  ;;  %v1122_v32 = vmul.f32 %v3615_v43, %v5882_v36  ;;  %v538_v9 = vadd.f32 %v3581_v31, %v506_v51  ;;  %v609_v62 = vmul.f32 %v3565_v26, %v5872_v12  ;;  %v1225_v46 = vmul.f32 %v3620_v44, %v3742_v6 }
  0x7c   : > { %v1256_v25 = vadd.f32 %v1224_v21, %v1153_v16  ;;  %v949_v27 = vadd.f32 %v917_v40, %v846_v57  ;;  %v1328_v2 = vmul.f32 %v3629_v48, %v3812_v24  ;;  %v1667_v33 = vadd.f32 %v1635_v63, %v1564_v59 }
  0x7d   : > { %v1431_v23 = vmul.f32 %v3634_v49, %v3866_v11  ;;  %v641_v35 = vadd.f32 %v609_v62, %v538_v9  ;;  %v712_v10 = vmul.f32 %v3576_v30, %v5874_v15  ;;  %v1534_v21 = vmul.f32 %v3646_v54, %v3922_v41  ;;  %v4072_v62 = vld [vmem:[#allocation2 + $0x120] sm:$0xff] }
  0x7e   : > { %v1359_v37 = vadd.f32 %v1327_v20, %v1256_v25  ;;  %v1052_v12 = vadd.f32 %v1020_v19, %v949_v27  ;;  %v1637_v60 = vmul.f32 %v3651_v55, %v3987_v47  ;;  %v1770_v51 = vadd.f32 %v1738_v52, %v1667_v33  ;;  %v470_v33 = vld [vmem:[#allocation2 + $0x70] sm:$0xff] }
  0x7f   : > { %v1740_v16 = vmul.f32 %v3656_v56, %v4047_v18  ;;  %v744_v63 = vadd.f32 %v712_v10, %v641_v35  ;;  %v815_v57 = vmul.f32 %v3599_v38, %v3670_v0  ;;  %v918_v15 = vmul.f32 %v3604_v39, %v3672_v3 }
  0x80   : > { %v1462_v40 = vadd.f32 %v1430_v50, %v1359_v37  ;;  %v1154_v59 = vadd.f32 %v1122_v32, %v1052_v12  ;;  %v507_v20 = vmul.f32 %v3554_v22, %v3716_v28  ;;  %1802 = vst.msk [vmem:[#allocation3 + $0x8e] sm:$0xff] %vm312_vm0, %v1770_v51  ;;  %v1021_v52 = vmul.f32 %v3610_v42, %v3674_v4 }
  0x81   : > { %v847_v19 = vadd.f32 %v815_v57, %v744_v63  ;;  %v1123_v9 = vmul.f32 %v3615_v43, %v3676_v5  ;;  %v1226_v0 = vmul.f32 %v3620_v44, %v3769_v7  ;;  %v610_v28 = vmul.f32 %v3565_v26, %v3718_v29  ;;  %v4093_v63 = vld [vmem:[#allocation2 + $0x80] sm:$0xff] }
  0x82   : > { %v1565_v50 = vadd.f32 %v1533_v8, %v1462_v40  ;;  %v1257_v32 = vadd.f32 %v1225_v46, %v1154_v59  ;;  %v539_v3 = vadd.f32 %v3581_v31, %v507_v20  ;;  %v1329_v27 = vmul.f32 %v3629_v48, %v5883_v45 }
  0x83   : > { %v950_v25 = vadd.f32 %v918_v15, %v847_v19  ;;  %v1432_v4 = vmul.f32 %v3634_v49, %v5884_v17  ;;  %v1535_v5 = vmul.f32 %v3646_v54, %v3959_v58  ;;  %v713_v10 = vmul.f32 %v3576_v30, %v3722_v34  ;;  %v4102_v19 = vld [vmem:[#allocation2 + $0x90] sm:$0xff] }
  0x84   : > { %v1668_v8 = vadd.f32 %v1636_v53, %v1565_v50  ;;  %v1360_v46 = vadd.f32 %v1328_v2, %v1257_v32  ;;  %v642_v35 = vadd.f32 %v610_v28, %v539_v3  ;;  %v1638_v29 = vmul.f32 %v3651_v55, %v4017_v14  ;;  %v4116_v32 = vld [vmem:[#allocation2 + $0xa0] sm:$0xff] }
  0x85   : > { %v1053_v37 = vadd.f32 %v1021_v52, %v950_v25  ;;  %v4089_v12 = vmul.f32 %v3656_v56, %v4072_v62  ;;  %v816_v51 = vmul.f32 %v3599_v38, %v5880_v61  ;;  %v508_v40 = vmul.f32 %v3554_v22, %v470_v33  ;;  %v4120_v33 = vld [vmem:[#allocation2 + $0xb0] sm:$0xff] }
  0x86   : > { %v1771_v57 = vadd.f32 %v1739_v1, %v1668_v8  ;;  %v1463_v53 = vadd.f32 %v1431_v23, %v1360_v46  ;;  %v745_v2 = vadd.f32 %v713_v10, %v642_v35  ;;  %v919_v34 = vmul.f32 %v3604_v39, %v5881_v13  ;;  %v4105_v23 = vld [vmem:[#allocation2 + $0x128] sm:$0xff]  ;;  %v471_v8 = vld [vmem:[#allocation2 + $0x78] sm:$0xff] }
  0x87   : > { %v1155_v59 = vadd.f32 %v1123_v9, %v1053_v37  ;;  %v1022_v15 = vmul.f32 %v3610_v42, %v5882_v36  ;;  %v1124_v20 = vmul.f32 %v3615_v43, %v3742_v6  ;;  %v540_v52 = vadd.f32 %v3581_v31, %v508_v40 }
  0x88   : > { %1803 = vst.msk [vmem:[#allocation3 + $0xa6] sm:$0xff] %vm312_vm0, %v1771_v57  ;;  %v1566_v61 = vadd.f32 %v1534_v21, %v1463_v53  ;;  %v848_v1 = vadd.f32 %v816_v51, %v745_v2  ;;  %v611_v9 = vmul.f32 %v3565_v26, %v4093_v63  ;;  %v1227_v36 = vmul.f32 %v3620_v44, %v3812_v24  ;;  %v574_v2 = vld [vmem:[#allocation2 + $0x88] sm:$0xff] }
  0x89   : > { %v1258_v13 = vadd.f32 %v1226_v0, %v1155_v59  ;;  %v1330_v6 = vmul.f32 %v3629_v48, %v3866_v11  ;;  %v1433_v50 = vmul.f32 %v3634_v49, %v3922_v41  ;;  %v714_v25 = vmul.f32 %v3576_v30, %v4102_v19  ;;  %v4122_v0 = vld [vmem:[#allocation2 + $0xc0] sm:$0xff] }
  0x8a   : > { %v1669_v21 = vadd.f32 %v1637_v60, %v1566_v61  ;;  %v951_v3 = vadd.f32 %v919_v34, %v848_v1  ;;  %v643_v28 = vadd.f32 %v611_v9, %v540_v52  ;;  %v1536_v35 = vmul.f32 %v3646_v54, %v3987_v47  ;;  %v4144_v52 = vld [vmem:[#allocation2 + $0x98] sm:$0xff] }
  0x8b   : > { %v1361_v46 = vadd.f32 %v1329_v27, %v1258_v13  ;;  %v1639_v10 = vmul.f32 %v3651_v55, %v4047_v18  ;;  %v4130_v60 = vmul.f32 %v3656_v56, %v4105_v23  ;;  %v817_v53 = vmul.f32 %v3599_v38, %v4116_v32  ;;  %v4148_v13 = vld [vmem:[#allocation2 + $0x130] sm:$0xff] }
  0x8c   : > { %v1772_v37 = vadd.f32 %v1740_v16, %v1669_v21  ;;  %v1054_v51 = vadd.f32 %v1022_v15, %v951_v3  ;;  %v746_v57 = vadd.f32 %v714_v25, %v643_v28  ;;  %v920_v27 = vmul.f32 %v3604_v39, %v4120_v33 }
  0x8d   : > { %v1464_v40 = vadd.f32 %v1432_v4, %v1361_v46  ;;  %v1023_v59 = vmul.f32 %v3610_v42, %v4122_v0  ;;  %v509_v34 = vmul.f32 %v3554_v22, %v471_v8  ;;  %v1125_v16 = vmul.f32 %v3615_v43, %v3769_v7 }
  0x8e   : > { %1804 = vst.msk [vmem:[#allocation3 + $0xae] sm:$0xff] %vm312_vm0, %v1772_v37  ;;  %v1156_v61 = vadd.f32 %v1124_v20, %v1054_v51  ;;  %v849_v1 = vadd.f32 %v817_v53, %v746_v57  ;;  %v1228_v15 = vmul.f32 %v3620_v44, %v5883_v45  ;;  %v1331_v9 = vmul.f32 %v3629_v48, %v5884_v17  ;;  %v4152_v20 = vld [vmem:[#allocation2 + $0xa8] sm:$0xff] }
  0x8f   : > { %v1567_v4 = vadd.f32 %v1535_v5, %v1464_v40  ;;  %v541_v21 = vadd.f32 %v3581_v31, %v509_v34  ;;  %v612_v3 = vmul.f32 %v3565_v26, %v574_v2  ;;  %v1434_v7 = vmul.f32 %v3634_v49, %v3959_v58  ;;  %v4158_v5 = vld [vmem:[#allocation2 + $0xb8] sm:$0xff]  ;;  %v4164_v53 = vld [vmem:[#allocation2 + $0xc8] sm:$0xff] }
  0x90   : > { %v1259_v28 = vadd.f32 %v1227_v36, %v1156_v61  ;;  %v952_v25 = vadd.f32 %v920_v27, %v849_v1  ;;  %v1537_v8 = vmul.f32 %v3646_v54, %v4017_v14  ;;  %v1640_v37 = vmul.f32 %v3651_v55, %v4072_v62 }
  0x91   : > { %v1670_v46 = vadd.f32 %v1638_v29, %v1567_v4  ;;  %v644_v51 = vadd.f32 %v612_v3, %v541_v21  ;;  %v715_v57 = vmul.f32 %v3576_v30, %v4144_v52  ;;  %v4168_v27 = vmul.f32 %v3656_v56, %v4148_v13 }
  0x92   : > { %v1362_v36 = vadd.f32 %v1330_v6, %v1259_v28  ;;  %v1055_v40 = vadd.f32 %v1023_v59, %v952_v25  ;;  %v818_v34 = vmul.f32 %v3599_v38, %v4152_v20  ;;  %v921_v1 = vmul.f32 %v3604_v39, %v4158_v5  ;;  %v4184_v25 = vld [vmem:[#allocation2 + $0x138] sm:$0xff] }
  0x93   : > { %v1773_v29 = vadd.f32 %v4089_v12, %v1670_v46  ;;  %v747_v61 = vadd.f32 %v715_v57, %v644_v51  ;;  %v510_v4 = vmul.f32 %v3554_v22, %v4093_v63  ;;  %v1024_v6 = vmul.f32 %v3610_v42, %v4164_v53 }
  0x94   : > { %v1465_v21 = vadd.f32 %v1433_v50, %v1362_v36  ;;  %v1157_v3 = vadd.f32 %v1125_v16, %v1055_v40  ;;  %v1126_v59 = vmul.f32 %v3615_v43, %v3812_v24  ;;  %v1229_v12 = vmul.f32 %v3620_v44, %v3866_v11 }
  0x95   : > { %1805 = vst.msk [vmem:[#allocation3 + $0xc6] sm:$0xff] %vm312_vm0, %v1773_v29  ;;  %v850_v28 = vadd.f32 %v818_v34, %v747_v61  ;;  %v542_v46 = vadd.f32 %v3581_v31, %v510_v4  ;;  %v613_v22 = vmul.f32 %v3565_v26, %v4102_v19  ;;  %v1332_v16 = vmul.f32 %v3629_v48, %v3922_v41  ;;  %v4197_v34 = vld [vmem:[#allocation2 + $0xd0] sm:$0xff] }
  0x96   : > { %v1568_v63 = vadd.f32 %v1536_v35, %v1465_v21  ;;  %v1260_v50 = vadd.f32 %v1228_v15, %v1157_v3  ;;  %v1435_v24 = vmul.f32 %v3634_v49, %v3987_v47  ;;  %v1538_v57 = vmul.f32 %v3646_v54, %v4047_v18 }
  0x97   : > { %v953_v51 = vadd.f32 %v921_v1, %v850_v28  ;;  %v645_v36 = vadd.f32 %v613_v22, %v542_v46  ;;  %v716_v40 = vmul.f32 %v3576_v30, %v4116_v32  ;;  %v4201_v35 = vmul.f32 %v3651_v55, %v4105_v23  ;;  %v4212_v30 = vld [vmem:[%s5838_s1] ss:$0 sm:$0xff]  ;;  %v4224_v22 = vld [vmem:[%s5838_s1 + $0x1] ss:$0 sm:$0xff] }
  0x98   : > { %v1671_v29 = vadd.f32 %v1639_v10, %v1568_v63  ;;  %v1363_v26 = vadd.f32 %v1331_v9, %v1260_v50  ;;  %v4205_v15 = vmul.f32 %v3656_v56, %v4184_v25  ;;  %v819_v4 = vmul.f32 %v3599_v38, %v4120_v33  ;;  %v4235_v63 = vld [vmem:[#allocation2 + $0x140] sm:$0xff] }
  0x99   : > { %v1056_v61 = vadd.f32 %v1024_v6, %v953_v51  ;;  %v748_v1 = vadd.f32 %v716_v40, %v645_v36  ;;  %v511_v10 = vmul.f32 %v4212_v30, %v574_v2  ;;  %v922_v3 = vmul.f32 %v3604_v39, %v4122_v0  ;;  %v4240_v51 = vld [vmem:[%s5838_s1 + $0x2] ss:$0 sm:$0xff] }
  0x9a   : > { %v1774_v9 = vadd.f32 %v4130_v60, %v1671_v29  ;;  %v1466_v21 = vadd.f32 %v1434_v7, %v1363_v26  ;;  %v1025_v6 = vmul.f32 %v3610_v42, %v4197_v34  ;;  %v614_v2 = vmul.f32 %v4224_v22, %v4144_v52  ;;  %v4257_v26 = vld [vmem:[%s5838_s1 + $0x3] ss:$0 sm:$0xff] }
  0x9b   : > { %v1158_v28 = vadd.f32 %v1126_v59, %v1056_v61  ;;  %v851_v46 = vadd.f32 %v819_v4, %v748_v1  ;;  %v543_v38 = vadd.f32 %v3581_v31, %v511_v10  ;;  %v1127_v39 = vmul.f32 %v3615_v43, %v5883_v45 }
  0x9c   : > { %1806 = vst.msk [vmem:[#allocation3 + $0xce] sm:$0xff] %vm312_vm0, %v1774_v9  ;;  %v1569_v60 = vadd.f32 %v1537_v8, %v1466_v21  ;;  %v1230_v42 = vmul.f32 %v3620_v44, %v5884_v17  ;;  %v1333_v31 = vmul.f32 %v3629_v48, %v3959_v58  ;;  %v717_v8 = vmul.f32 %v4240_v51, %v4152_v20  ;;  %v4286_v9 = vld [vmem:[%s5838_s1 + $0x6] ss:$0 sm:$0xff] }
  0x9d   : > { %v1261_v7 = vadd.f32 %v1229_v12, %v1158_v28  ;;  %v954_v59 = vadd.f32 %v922_v3, %v851_v46  ;;  %v646_v50 = vadd.f32 %v614_v2, %v543_v38  ;;  %v1436_v44 = vmul.f32 %v3634_v49, %v4017_v14  ;;  %v4252_v12 = vld [vmem:[#allocation2 + $0xd8] sm:$0xff]  ;;  %v4300_v3 = vld [vmem:[%s5840_s3] ss:$0 sm:$0xff]  ;;  %v4308_v2 = vld [vmem:[%s5838_s1 + $0x8] ss:$0 sm:$0xff] }
  0x9e   : > { %v1672_v43 = vadd.f32 %v1640_v37, %v1569_v60  ;;  %v1539_v48 = vmul.f32 %v3646_v54, %v4072_v62  ;;  %v4250_v45 = vmul.f32 %v3651_v55, %v4148_v13  ;;  %v820_v49 = vmul.f32 %v4257_v26, %v4158_v5  ;;  %v4269_v55 = vld [vmem:[%s5838_s1 + $0x4] ss:$0 sm:$0xff] }
  0x9f   : > { %v1364_v36 = vadd.f32 %v1332_v16, %v1261_v7  ;;  %v1057_v40 = vadd.f32 %v1025_v6, %v954_v59  ;;  %v749_v29 = vadd.f32 %v717_v8, %v646_v50  ;;  %v4264_v54 = vmul.f32 %v3656_v56, %v4235_v63  ;;  %v4317_v7 = vld [vmem:[%s5838_s1 + $0x9] ss:$0 sm:$0xff] }
  0xa0   : > { %v1775_v37 = vadd.f32 %v4168_v27, %v1672_v43  ;;  %v923_v16 = vmul.f32 %v4269_v55, %v4164_v53  ;;  %v512_v61 = vmul.f32 %v4212_v30, %v4102_v19  ;;  %v4278_v27 = vld [vmem:[%s5838_s1 + $0x5] ss:$0 sm:$0xff]  ;;  %v1128_v19 = vmul.f32 %v4286_v9, %v3866_v11 }
  0xa1   : > { %v1467_v1 = vadd.f32 %v1435_v24, %v1364_v36  ;;  %v1159_v4 = vadd.f32 %v1127_v39, %v1057_v40  ;;  %v852_v10 = vadd.f32 %v820_v49, %v749_v29  ;;  %v1026_v56 = vmul.f32 %v4278_v27, %v4252_v12  ;;  %v4293_v24 = vld [vmem:[%s5838_s1 + $0x7] ss:$0 sm:$0xff]  ;;  %v4312_v39 = vld [vmem:[#allocation2 + $0x148] sm:$0xff] }
  0xa2   : > { %1807 = vst.msk [vmem:[#allocation3 + $0xe6] sm:$0xff] %vm312_vm0, %v1775_v37  ;;  %v1231_v21 = vmul.f32 %v4293_v24, %v3922_v41  ;;  %v544_v6 = vadd.f32 %v4300_v3, %v512_v61  ;;  %v615_v28 = vmul.f32 %v4224_v22, %v4116_v32  ;;  %v1334_v60 = vmul.f32 %v4308_v2, %v3987_v47  ;;  %v4334_v29 = vld [vmem:[%s5838_s1 + $0xb] ss:$0 sm:$0xff]  ;;  %v4338_v37 = vld [vmem:[#allocation2 + $0xe0] sm:$0xff] }
  0xa3   : > { %v1570_v46 = vadd.f32 %v1538_v57, %v1467_v1  ;;  %v1262_v11 = vadd.f32 %v1230_v42, %v1159_v4  ;;  %v955_v38 = vadd.f32 %v923_v16, %v852_v10  ;;  %v1437_v57 = vmul.f32 %v4317_v7, %v4047_v18  ;;  %v4324_v42 = vld [vmem:[%s5838_s1 + $0xa] ss:$0 sm:$0xff]  ;;  %v4343_v16 = vld [vmem:[%s5838_s1 + $0xc] ss:$0 sm:$0xff] }
  0xa4   : > { %v1540_v59 = vmul.f32 %v4324_v42, %v4105_v23  ;;  %v647_v50 = vadd.f32 %v615_v28, %v544_v6  ;;  %v718_v8 = vmul.f32 %v4240_v51, %v4120_v33  ;;  %v1643_v49 = vmul.f32 %v4334_v29, %v4184_v25 }
  0xa5   : > { %v1673_v43 = vadd.f32 %v4201_v35, %v1570_v46  ;;  %v1365_v36 = vadd.f32 %v1333_v31, %v1262_v11  ;;  %v1058_v40 = vadd.f32 %v1026_v56, %v955_v38  ;;  %v1746_v35 = vmul.f32 %v4343_v16, %v4312_v39 }
  0xa6   : > { %v750_v31 = vadd.f32 %v718_v8, %v647_v50  ;;  %v821_v61 = vmul.f32 %v4257_v26, %v4122_v0  ;;  %v513_v1 = vmul.f32 %v4212_v30, %v4144_v52  ;;  %v924_v6 = vmul.f32 %v4269_v55, %v4197_v34 }
  0xa7   : > { %v1776_v4 = vadd.f32 %v4205_v15, %v1673_v43  ;;  %v1468_v10 = vadd.f32 %v1436_v44, %v1365_v36  ;;  %v1160_v56 = vadd.f32 %v1128_v19, %v1058_v40  ;;  %v1027_v46 = vmul.f32 %v4278_v27, %v4338_v37  ;;  %v4366_v43 = vld [vmem:[#allocation2 + $0x150] sm:$0xff] }
  0xa8   : > { %v853_v28 = vadd.f32 %v821_v61, %v750_v31  ;;  %v545_v11 = vadd.f32 %v4300_v3, %v513_v1  ;;  %v616_v38 = vmul.f32 %v4224_v22, %v4152_v20  ;;  %v1129_v15 = vmul.f32 %v4286_v9, %v5884_v17  ;;  %v4375_v61 = vld [vmem:[#allocation2 + $0xe8] sm:$0xff] }
  0xa9   : > { %1808 = vst.msk [vmem:[#allocation3 + $0xee] sm:$0xff] %vm312_vm0, %v1776_v4  ;;  %v1571_v50 = vadd.f32 %v1539_v48, %v1468_v10  ;;  %v1263_v52 = vadd.f32 %v1231_v21, %v1160_v56  ;;  %v1232_v44 = vmul.f32 %v4293_v24, %v3959_v58  ;;  %v1335_v8 = vmul.f32 %v4308_v2, %v4017_v14 }
  0xaa   : > { %v956_v19 = vadd.f32 %v924_v6, %v853_v28  ;;  %v648_v36 = vadd.f32 %v616_v38, %v545_v11  ;;  %v719_v40 = vmul.f32 %v4240_v51, %v4158_v5  ;;  %v1438_v21 = vmul.f32 %v4317_v7, %v4072_v62 }
  0xab   : > { %v1674_v31 = vadd.f32 %v4250_v45, %v1571_v50  ;;  %v1366_v48 = vadd.f32 %v1334_v60, %v1263_v52  ;;  %v1541_v17 = vmul.f32 %v4324_v42, %v4148_v13  ;;  %v1644_v4 = vmul.f32 %v4334_v29, %v4235_v63 }
  0xac   : > { %v1059_v1 = vadd.f32 %v1027_v46, %v956_v19  ;;  %v751_v10 = vadd.f32 %v719_v40, %v648_v36  ;;  %v822_v56 = vmul.f32 %v4257_v26, %v4164_v53  ;;  %v1747_v60 = vmul.f32 %v4343_v16, %v4366_v43 }
  0xad   : > { %v1777_v6 = vadd.f32 %v4264_v54, %v1674_v31  ;;  %v1469_v45 = vadd.f32 %v1437_v57, %v1366_v48  ;;  %v514_v28 = vmul.f32 %v4212_v30, %v4116_v32  ;;  %v925_v46 = vmul.f32 %v4269_v55, %v4252_v12  ;;  %v4400_v31 = vld [vmem:[#allocation2 + $0x158] sm:$0xff] }
  0xae   : > { %v1161_v11 = vadd.f32 %v1129_v15, %v1059_v1  ;;  %v854_v38 = vadd.f32 %v822_v56, %v751_v10  ;;  %v1028_v50 = vmul.f32 %v4278_v27, %v4375_v61  ;;  %v1130_v54 = vmul.f32 %v4286_v9, %v3922_v41 }
  0xaf   : > { %1809 = vst.msk [vmem:[#allocation3 + $0x106] sm:$0xff] %vm312_vm0, %v1777_v6  ;;  %v1572_v52 = vadd.f32 %v1540_v59, %v1469_v45  ;;  %v546_v57 = vadd.f32 %v4300_v3, %v514_v28  ;;  %v617_v19 = vmul.f32 %v4224_v22, %v4120_v33  ;;  %v1233_v36 = vmul.f32 %v4293_v24, %v3987_v47  ;;  %v4410_v45 = vld [vmem:[#allocation2 + $0xf0] sm:$0xff] }
  0xb0   : > { %v1264_v32 = vadd.f32 %v1232_v44, %v1161_v11  ;;  %v957_v15 = vadd.f32 %v925_v46, %v854_v38  ;;  %v1336_v40 = vmul.f32 %v4308_v2, %v4047_v18  ;;  %v1439_v59 = vmul.f32 %v4317_v7, %v4105_v23 }
  0xb1   : > { %v1675_v48 = vadd.f32 %v1643_v49, %v1572_v52  ;;  %v649_v41 = vadd.f32 %v617_v19, %v546_v57  ;;  %v720_v1 = vmul.f32 %v4240_v51, %v4122_v0  ;;  %v1542_v44 = vmul.f32 %v4324_v42, %v4184_v25 }
  0xb2   : > { %v1367_v10 = vadd.f32 %v1335_v8, %v1264_v32  ;;  %v1060_v56 = vadd.f32 %v1028_v50, %v957_v15  ;;  %v1645_v6 = vmul.f32 %v4334_v29, %v4312_v39  ;;  %v1748_v49 = vmul.f32 %v4343_v16, %v4400_v31  ;;  %v4427_v15 = vld [vmem:[#allocation2 + $0x160] sm:$0xff] }
  0xb3   : > { %v1778_v28 = vadd.f32 %v1746_v35, %v1675_v48  ;;  %v752_v11 = vadd.f32 %v720_v1, %v649_v41  ;;  %v823_v38 = vmul.f32 %v4257_v26, %v4197_v34  ;;  %v926_v8 = vmul.f32 %v4269_v55, %v4338_v37 }
  0xb4   : > { %v1470_v46 = vadd.f32 %v1438_v21, %v1367_v10  ;;  %v1162_v52 = vadd.f32 %v1130_v54, %v1060_v56  ;;  %v515_v50 = vmul.f32 %v4212_v30, %v4152_v20  ;;  %v1029_v35 = vmul.f32 %v4278_v27, %v4410_v45 }
  0xb5   : > { %1810 = vst.msk [vmem:[#allocation3 + $0x10e] sm:$0xff] %vm312_vm0, %v1778_v28  ;;  %v855_v57 = vadd.f32 %v823_v38, %v752_v11  ;;  %v1131_v19 = vmul.f32 %v4286_v9, %v3959_v58  ;;  %v1234_v32 = vmul.f32 %v4293_v24, %v4017_v14  ;;  %v618_v20 = vmul.f32 %v4224_v22, %v4158_v5  ;;  %v4440_v11 = vld [vmem:[#allocation2 + $0xf8] sm:$0xff] }
  0xb6   : > { %v1573_v21 = vadd.f32 %v1541_v17, %v1470_v46  ;;  %v1265_v54 = vadd.f32 %v1233_v36, %v1162_v52  ;;  %v547_v48 = vadd.f32 %v4300_v3, %v515_v50  ;;  %v1337_v1 = vmul.f32 %v4308_v2, %v4072_v62 }
  0xb7   : > { %v958_v41 = vadd.f32 %v926_v8, %v855_v57  ;;  %v1440_v10 = vmul.f32 %v4317_v7, %v4148_v13  ;;  %v1543_v58 = vmul.f32 %v4324_v42, %v4235_v63  ;;  %v721_v28 = vmul.f32 %v4240_v51, %v4164_v53 }
  0xb8   : > { %v1676_v56 = vadd.f32 %v1644_v4, %v1573_v21  ;;  %v1368_v17 = vadd.f32 %v1336_v40, %v1265_v54  ;;  %v650_v36 = vadd.f32 %v618_v20, %v547_v48  ;;  %v1646_v46 = vmul.f32 %v4334_v29, %v4366_v43 }
  0xb9   : > { %v1061_v38 = vadd.f32 %v1029_v35, %v958_v41  ;;  %v1749_v52 = vmul.f32 %v4343_v16, %v4427_v15  ;;  %v824_v8 = vmul.f32 %v4257_v26, %v4252_v12  ;;  %v516_v40 = vmul.f32 %v4212_v30, %v4120_v33 }
  0xba   : > { %v1779_v50 = vadd.f32 %v1747_v60, %v1676_v56  ;;  %v1471_v57 = vadd.f32 %v1439_v59, %v1368_v17  ;;  %v753_v4 = vadd.f32 %v721_v28, %v650_v36  ;;  %v927_v54 = vmul.f32 %v4269_v55, %v4375_v61  ;;  %v4457_v60 = vld [vmem:[#allocation2 + $0x168] sm:$0xff] }
  0xbb   : > { %v1163_v21 = vadd.f32 %v1131_v19, %v1061_v38  ;;  %v1030_v35 = vmul.f32 %v4278_v27, %v4440_v11  ;;  %v1132_v48 = vmul.f32 %v4286_v9, %v3987_v47  ;;  %v548_v59 = vadd.f32 %v4300_v3, %v516_v40 }
  0xbc   : > { %1811 = vst.msk [vmem:[#allocation3 + $0x126] sm:$0xff] %vm312_vm0, %v1779_v50  ;;  %v1574_v20 = vadd.f32 %v1542_v44, %v1471_v57  ;;  %v856_v41 = vadd.f32 %v824_v8, %v753_v4  ;;  %v619_v33 = vmul.f32 %v4224_v22, %v4122_v0  ;;  %v1235_v56 = vmul.f32 %v4293_v24, %v4047_v18  ;;  %v4470_v8 = vld [vmem:[#allocation2 + $0x100] sm:$0xff] }
  0xbd   : > { %v1266_v19 = vadd.f32 %v1234_v32, %v1163_v21  ;;  %v1338_v17 = vmul.f32 %v4308_v2, %v4105_v23  ;;  %v1441_v47 = vmul.f32 %v4317_v7, %v4184_v25  ;;  %v722_v38 = vmul.f32 %v4240_v51, %v4197_v34 }
  0xbe   : > { %v1677_v36 = vadd.f32 %v1645_v6, %v1574_v20  ;;  %v959_v44 = vadd.f32 %v927_v54, %v856_v41  ;;  %v651_v28 = vadd.f32 %v619_v33, %v548_v59  ;;  %v1544_v32 = vmul.f32 %v4324_v42, %v4312_v39 }
  0xbf   : > { %v1369_v50 = vadd.f32 %v1337_v1, %v1266_v19  ;;  %v1647_v57 = vmul.f32 %v4334_v29, %v4400_v31  ;;  %v4478_v4 = vmul.f32 %v4343_v16, %v4457_v60  ;;  %v825_v54 = vmul.f32 %v4257_v26, %v4338_v37 }
  0xc0   : > { %v1780_v40 = vadd.f32 %v1748_v49, %v1677_v36  ;;  %v1062_v6 = vadd.f32 %v1030_v35, %v959_v44  ;;  %v754_v21 = vadd.f32 %v722_v38, %v651_v28  ;;  %v928_v1 = vmul.f32 %v4269_v55, %v4410_v45  ;;  %v4495_v44 = vld [vmem:[#allocation2 + $0x170] sm:$0xff] }
  0xc1   : > { %v1472_v20 = vadd.f32 %v1440_v10, %v1369_v50  ;;  %v1031_v41 = vmul.f32 %v4278_v27, %v4470_v8  ;;  %v517_v59 = vmul.f32 %v4212_v30, %v4158_v5  ;;  %v1133_v49 = vmul.f32 %v4286_v9, %v4017_v14  ;;  %5886 = vst [vmem:[#allocation5_spill] sm:$0xff] %v4495_v44 }
  0xc2   : > { %1812 = vst.msk [vmem:[#allocation3 + $0x12e] sm:$0xff] %vm312_vm0, %v1780_v40  ;;  %v1164_v33 = vadd.f32 %v1132_v48, %v1062_v6  ;;  %v857_v19 = vadd.f32 %v825_v54, %v754_v21  ;;  %v1236_v35 = vmul.f32 %v4293_v24, %v4072_v62  ;;  %v1339_v36 = vmul.f32 %v4308_v2, %v4148_v13  ;;  %v4508_v54 = vld [vmem:[#allocation2 + $0x108] sm:$0xff] }
  0xc3   : > { %v1575_v10 = vadd.f32 %v1543_v58, %v1472_v20  ;;  %v549_v28 = vadd.f32 %v4300_v3, %v517_v59  ;;  %v620_v5 = vmul.f32 %v4224_v22, %v4164_v53  ;;  %v1442_v50 = vmul.f32 %v4317_v7, %v4235_v63 }
  0xc4   : > { %v1267_v38 = vadd.f32 %v1235_v56, %v1164_v33  ;;  %v960_v48 = vadd.f32 %v928_v1, %v857_v19  ;;  %v1545_v14 = vmul.f32 %v4324_v42, %v4366_v43  ;;  %v1648_v58 = vmul.f32 %v4334_v29, %v4427_v15 }
  0xc5   : > { %v1678_v40 = vadd.f32 %v1646_v46, %v1575_v10  ;;  %v652_v6 = vadd.f32 %v620_v5, %v549_v28  ;;  %v723_v21 = vmul.f32 %v4240_v51, %v4252_v12  ;;  %v1751_v56 = vmul.f32 %v4343_v16, %v4495_v44 }
  0xc6   : > { %v1370_v20 = vadd.f32 %v1338_v17, %v1267_v38  ;;  %v1063_v59 = vadd.f32 %v1031_v41, %v960_v48  ;;  %v826_v1 = vmul.f32 %v4257_v26, %v4375_v61  ;;  %v929_v46 = vmul.f32 %v4269_v55, %v4440_v11  ;;  %v4525_v48 = vld [vmem:[#allocation2 + $0x178] sm:$0xff] }
  0xc7   : > { %v1781_v33 = vadd.f32 %v1749_v52, %v1678_v40  ;;  %v755_v19 = vadd.f32 %v723_v21, %v652_v6  ;;  %v518_v10 = vmul.f32 %v4212_v30, %v4122_v0  ;;  %v1032_v17 = vmul.f32 %v4278_v27, %v4508_v54 }
  0xc8   : > { %v1473_v28 = vadd.f32 %v1441_v47, %v1370_v20  ;;  %v1165_v5 = vadd.f32 %v1133_v49, %v1063_v59  ;;  %v1134_v41 = vmul.f32 %v4286_v9, %v4047_v18  ;;  %v1237_v52 = vmul.f32 %v4293_v24, %v4105_v23 }
  0xc9   : > { %1813 = vst.msk [vmem:[#allocation3 + $0x146] sm:$0xff] %vm312_vm0, %v1781_v33  ;;  %v858_v38 = vadd.f32 %v826_v1, %v755_v19  ;;  %v550_v40 = vadd.f32 %v4300_v3, %v518_v10  ;;  %v621_v0 = vmul.f32 %v4224_v22, %v4197_v34  ;;  %v1340_v6 = vmul.f32 %v4308_v2, %v4184_v25  ;;  %v4538_v33 = vld [vmem:[#allocation2 + $0x110] sm:$0xff] }
  0xca   : > { %v1576_v47 = vadd.f32 %v1544_v32, %v1473_v28  ;;  %v1268_v49 = vadd.f32 %v1236_v35, %v1165_v5  ;;  %v1443_v18 = vmul.f32 %v4317_v7, %v4312_v39  ;;  %v1546_v20 = vmul.f32 %v4324_v42, %v4400_v31 }
  0xcb   : > { %v961_v21 = vadd.f32 %v929_v46, %v858_v38  ;;  %v653_v59 = vadd.f32 %v621_v0, %v550_v40  ;;  %v724_v1 = vmul.f32 %v4240_v51, %v4338_v37  ;;  %v1649_v32 = vmul.f32 %v4334_v29, %v4457_v60 }
  0xcc   : > { %v1679_v19 = vadd.f32 %v1647_v57, %v1576_v47  ;;  %v1371_v10 = vadd.f32 %v1339_v36, %v1268_v49  ;;  %v4544_v35 = vmul.f32 %v4343_v16, %v4525_v48  ;;  %v827_v5 = vmul.f32 %v4257_v26, %v4410_v45 }
  0xcd   : > { %v1064_v28 = vadd.f32 %v1032_v17, %v961_v21  ;;  %v756_v46 = vadd.f32 %v724_v1, %v653_v59  ;;  %v519_v38 = vmul.f32 %v4212_v30, %v4164_v53  ;;  %v930_v57 = vmul.f32 %v4269_v55, %v4470_v8 }
  0xce   : > { %v1782_v40 = vadd.f32 %v4478_v4, %v1679_v19  ;;  %v1474_v0 = vadd.f32 %v1442_v50, %v1371_v10  ;;  %v1033_v36 = vmul.f32 %v4278_v27, %v4538_v33  ;;  %v622_v21 = vmul.f32 %v4224_v22, %v4252_v12  ;;  %v4565_v19 = vld [vmem:[#allocation2 + $0x180] sm:$0xff] }
  0xcf   : > { %v1166_v47 = vadd.f32 %v1134_v41, %v1064_v28  ;;  %v859_v49 = vadd.f32 %v827_v5, %v756_v46  ;;  %v551_v17 = vadd.f32 %v4300_v3, %v519_v38  ;;  %v1135_v53 = vmul.f32 %v4286_v9, %v4072_v62  ;;  %v4575_v38 = vld [vmem:[#allocation2 + $0x118] sm:$0xff] }
  0xd0   : > { %1814 = vst.msk [vmem:[#allocation3 + $0x14e] sm:$0xff] %vm312_vm0, %v1782_v40  ;;  %v1577_v59 = vadd.f32 %v1545_v14, %v1474_v0  ;;  %v1238_v4 = vmul.f32 %v4293_v24, %v4148_v13  ;;  %v1341_v50 = vmul.f32 %v4308_v2, %v4235_v63  ;;  %v725_v28 = vmul.f32 %v4240_v51, %v4375_v61 }
  0xd1   : > { %v1269_v1 = vadd.f32 %v1237_v52, %v1166_v47  ;;  %v962_v41 = vadd.f32 %v930_v57, %v859_v49  ;;  %v654_v10 = vadd.f32 %v622_v21, %v551_v17  ;;  %v1444_v14 = vmul.f32 %v4317_v7, %v4366_v43 }
  0xd2   : > { %v1680_v46 = vadd.f32 %v1648_v58, %v1577_v59  ;;  %v1547_v62 = vmul.f32 %v4324_v42, %v4427_v15  ;;  %v1650_v5 = vmul.f32 %v4334_v29, %v4495_v44  ;;  %v828_v57 = vmul.f32 %v4257_v26, %v4440_v11 }
  0xd3   : > { %v1372_v52 = vadd.f32 %v1340_v6, %v1269_v1  ;;  %v1065_v40 = vadd.f32 %v1033_v36, %v962_v41  ;;  %v757_v0 = vadd.f32 %v725_v28, %v654_v10  ;;  %v1753_v58 = vmul.f32 %v4343_v16, %v4565_v19  ;;  %v4597_v28 = vld [vmem:[#allocation2 + $0x188] sm:$0xff] }
  0xd4   : > { %v1783_v47 = vadd.f32 %v1751_v56, %v1680_v46  ;;  %v931_v49 = vmul.f32 %v4269_v55, %v4508_v54  ;;  %v520_v17 = vmul.f32 %v4212_v30, %v4197_v34  ;;  %v1034_v6 = vmul.f32 %v4278_v27, %v4575_v38 }
  0xd5   : > { %v1475_v21 = vadd.f32 %v1443_v18, %v1372_v52  ;;  %v1167_v59 = vadd.f32 %v1135_v53, %v1065_v40  ;;  %v860_v44 = vadd.f32 %v828_v57, %v757_v0  ;;  %v1136_v56 = vmul.f32 %v4286_v9, %v4105_v23 }
  0xd6   : > { %1815 = vst.msk [vmem:[#allocation3 + $0x166] sm:$0xff] %vm312_vm0, %v1783_v47  ;;  %v1239_v36 = vmul.f32 %v4293_v24, %v4184_v25  ;;  %v552_v1 = vadd.f32 %v4300_v3, %v520_v17  ;;  %v623_v41 = vmul.f32 %v4224_v22, %v4338_v37  ;;  %v1342_v10 = vmul.f32 %v4308_v2, %v4312_v39 }
  0xd7   : > { %v1578_v34 = vadd.f32 %v1546_v20, %v1475_v21  ;;  %v1270_v18 = vadd.f32 %v1238_v4, %v1167_v59  ;;  %v963_v53 = vadd.f32 %v931_v49, %v860_v44  ;;  %v1445_v46 = vmul.f32 %v4317_v7, %v4400_v31  ;;  %v4607_v4 = vld [vmem:[#allocation2 + $0x120] sm:$0xff] }
  0xd8   : > { %v1548_v23 = vmul.f32 %v4324_v42, %v4457_v60  ;;  %v655_v52 = vadd.f32 %v623_v41, %v552_v1  ;;  %v726_v40 = vmul.f32 %v4240_v51, %v4410_v45  ;;  %v1651_v44 = vmul.f32 %v4334_v29, %v4525_v48 }
  0xd9   : > { %v1681_v0 = vadd.f32 %v1649_v32, %v1578_v34  ;;  %v1373_v57 = vadd.f32 %v1341_v50, %v1270_v18  ;;  %v1066_v20 = vadd.f32 %v1034_v6, %v963_v53  ;;  %v1754_v47 = vmul.f32 %v4343_v16, %v4597_v28 }
  0xda   : > { %v758_v49 = vadd.f32 %v726_v40, %v655_v52  ;;  %v829_v17 = vmul.f32 %v4257_v26, %v4470_v8  ;;  %v521_v21 = vmul.f32 %v4212_v30, %v4252_v12  ;;  %v932_v6 = vmul.f32 %v4269_v55, %v4538_v33  ;;  %v4630_v40 = vld [vmem:[#allocation2 + $0x190] sm:$0xff] }
  0xdb   : > { %v1784_v59 = vadd.f32 %v4544_v35, %v1681_v0  ;;  %v1476_v32 = vadd.f32 %v1444_v14, %v1373_v57  ;;  %v1168_v50 = vadd.f32 %v1136_v56, %v1066_v20  ;;  %v1035_v41 = vmul.f32 %v4278_v27, %v4607_v4 }
  0xdc   : > { %v861_v1 = vadd.f32 %v829_v17, %v758_v49  ;;  %v553_v34 = vadd.f32 %v4300_v3, %v521_v21  ;;  %v624_v18 = vmul.f32 %v4224_v22, %v4375_v61  ;;  %v1137_v35 = vmul.f32 %v4286_v9, %v4148_v13  ;;  %v4638_v17 = vld [vmem:[#allocation2 + $0x128] sm:$0xff] }
  0xdd   : > { %1816 = vst.msk [vmem:[#allocation3 + $0x16e] sm:$0xff] %vm312_vm0, %v1784_v59  ;;  %v1579_v53 = vadd.f32 %v1547_v62, %v1476_v32  ;;  %v1271_v12 = vadd.f32 %v1239_v36, %v1168_v50  ;;  %v1240_v14 = vmul.f32 %v4293_v24, %v4235_v63  ;;  %v1343_v52 = vmul.f32 %v4308_v2, %v4366_v43  ;;  %v5887_v36 = vld [vmem:[#allocation5_spill] sm:$0xff] }
  0xde   : > { %v964_v56 = vadd.f32 %v932_v6, %v861_v1  ;;  %v656_v0 = vadd.f32 %v624_v18, %v553_v34  ;;  %v727_v57 = vmul.f32 %v4240_v51, %v4440_v11  ;;  %v1446_v62 = vmul.f32 %v4317_v7, %v4427_v15 }
  0xdf   : > { %v1682_v20 = vadd.f32 %v1650_v5, %v1579_v53  ;;  %v1374_v49 = vadd.f32 %v1342_v10, %v1271_v12  ;;  %v1549_v13 = vmul.f32 %v4324_v42, %v5887_v36  ;;  %v1652_v59 = vmul.f32 %v4334_v29, %v4565_v19 }
  0xe0   : > { %v1067_v21 = vadd.f32 %v1035_v41, %v964_v56  ;;  %v759_v32 = vadd.f32 %v727_v57, %v656_v0  ;;  %v830_v50 = vmul.f32 %v4257_v26, %v4508_v54  ;;  %v1755_v5 = vmul.f32 %v4343_v16, %v4630_v40 }
  0xe1   : > { %v1785_v6 = vadd.f32 %v1753_v58, %v1682_v20  ;;  %v1477_v1 = vadd.f32 %v1445_v46, %v1374_v49  ;;  %v522_v10 = vmul.f32 %v4212_v30, %v4338_v37  ;;  %v933_v41 = vmul.f32 %v4269_v55, %v4575_v38  ;;  %v4662_v20 = vld [vmem:[#allocation2 + $0x198] sm:$0xff] }
  0xe2   : > { %v1169_v34 = vadd.f32 %v1137_v35, %v1067_v21  ;;  %v862_v18 = vadd.f32 %v830_v50, %v759_v32  ;;  %v1036_v53 = vmul.f32 %v4278_v27, %v4638_v17  ;;  %v1138_v58 = vmul.f32 %v4286_v9, %v4184_v25 }
  0xe3   : > { %1817 = vst.msk [vmem:[#allocation3 + $0x186] sm:$0xff] %vm312_vm0, %v1785_v6  ;;  %v1580_v12 = vadd.f32 %v1548_v23, %v1477_v1  ;;  %v554_v46 = vadd.f32 %v4300_v3, %v522_v10  ;;  %v625_v56 = vmul.f32 %v4224_v22, %v4410_v45  ;;  %v1241_v0 = vmul.f32 %v4293_v24, %v4312_v39  ;;  %v999_v1 = vld [vmem:[#allocation2 + $0x130] sm:$0xff] }
  0xe4   : > { %v1272_v37 = vadd.f32 %v1240_v14, %v1169_v34  ;;  %v965_v35 = vadd.f32 %v933_v41, %v862_v18  ;;  %v1344_v57 = vmul.f32 %v4308_v2, %v4400_v31  ;;  %v1447_v23 = vmul.f32 %v4317_v7, %v4457_v60 }
  0xe5   : > { %v1683_v49 = vadd.f32 %v1651_v44, %v1580_v12  ;;  %v657_v25 = vadd.f32 %v625_v56, %v554_v46  ;;  %v728_v21 = vmul.f32 %v4240_v51, %v4470_v8  ;;  %v1550_v14 = vmul.f32 %v4324_v42, %v4525_v48 }
  0xe6   : > { %v1375_v32 = vadd.f32 %v1343_v52, %v1272_v37  ;;  %v1068_v50 = vadd.f32 %v1036_v53, %v965_v35  ;;  %v1653_v6 = vmul.f32 %v4334_v29, %v4597_v28  ;;  %v1756_v44 = vmul.f32 %v4343_v16, %v4662_v20 }
  0xe7   : > { %v1786_v10 = vadd.f32 %v1754_v47, %v1683_v49  ;;  %v760_v34 = vadd.f32 %v728_v21, %v657_v25  ;;  %v831_v18 = vmul.f32 %v4257_v26, %v4538_v33  ;;  %v934_v52 = vmul.f32 %v4269_v55, %v4607_v4 }
  0xe8   : > { %v1478_v41 = vadd.f32 %v1446_v62, %v1375_v32  ;;  %v1170_v12 = vadd.f32 %v1138_v58, %v1068_v50  ;;  %v523_v53 = vmul.f32 %v4212_v30, %v4375_v61  ;;  %v1037_v47 = vmul.f32 %v4278_v27, %v999_v1  ;;  %v4686_v58 = vld [vmem:[#allocation2 + $0x1a0] sm:$0xff] }
  0xe9   : > { %1818 = vst.msk [vmem:[#allocation3 + $0x18e] sm:$0xff] %vm312_vm0, %v1786_v10  ;;  %v863_v46 = vadd.f32 %v831_v18, %v760_v34  ;;  %v1139_v56 = vmul.f32 %v4286_v9, %v4235_v63  ;;  %v1242_v37 = vmul.f32 %v4293_v24, %v4366_v43  ;;  %v626_v61 = vmul.f32 %v4224_v22, %v4440_v11  ;;  %v4699_v34 = vld [vmem:[#allocation2 + $0x138] sm:$0xff] }
  0xea   : > { %v1581_v35 = vadd.f32 %v1549_v13, %v1478_v41  ;;  %v1273_v62 = vadd.f32 %v1241_v0, %v1170_v12  ;;  %v555_v49 = vadd.f32 %v4300_v3, %v523_v53  ;;  %v1345_v21 = vmul.f32 %v4308_v2, %v4427_v15 }
  0xeb   : > { %v966_v25 = vadd.f32 %v934_v52, %v863_v46  ;;  %v1448_v32 = vmul.f32 %v4317_v7, %v5887_v36  ;;  %v1551_v63 = vmul.f32 %v4324_v42, %v4565_v19  ;;  %v729_v10 = vmul.f32 %v4240_v51, %v4508_v54 }
  0xec   : > { %v1684_v50 = vadd.f32 %v1652_v59, %v1581_v35  ;;  %v1376_v13 = vadd.f32 %v1344_v57, %v1273_v62  ;;  %v658_v0 = vadd.f32 %v626_v61, %v555_v49  ;;  %v1654_v41 = vmul.f32 %v4334_v29, %v4630_v40 }
  0xed   : > { %v1069_v18 = vadd.f32 %v1037_v47, %v966_v25  ;;  %v4705_v12 = vmul.f32 %v4343_v16, %v4686_v58  ;;  %v832_v52 = vmul.f32 %v4257_v26, %v4575_v38  ;;  %v524_v46 = vmul.f32 %v4212_v30, %v4410_v45 }
  0xee   : > { %v1787_v53 = vadd.f32 %v1755_v5, %v1684_v50  ;;  %v1479_v59 = vadd.f32 %v1447_v23, %v1376_v13  ;;  %v761_v57 = vadd.f32 %v729_v10, %v658_v0  ;;  %v935_v47 = vmul.f32 %v4269_v55, %v4638_v17  ;;  %v4727_v10 = vld [vmem:[#allocation2 + $0x1a8] sm:$0xff] }
  0xef   : > { %v1171_v35 = vadd.f32 %v1139_v56, %v1069_v18  ;;  %v1038_v62 = vmul.f32 %v4278_v27, %v4699_v34  ;;  %v627_v49 = vmul.f32 %v4224_v22, %v4470_v8  ;;  %v556_v5 = vadd.f32 %v4300_v3, %v524_v46 }
  0xf0   : > { %1819 = vst.msk [vmem:[#allocation3 + $0x1a6] sm:$0xff] %vm312_vm0, %v1787_v53  ;;  %v1582_v61 = vadd.f32 %v1550_v14, %v1479_v59  ;;  %v864_v25 = vadd.f32 %v832_v52, %v761_v57  ;;  %v730_v23 = vmul.f32 %v4240_v51, %v4538_v33  ;;  %v1140_v56 = vmul.f32 %v4286_v9, %v4312_v39  ;;  %v1001_v53 = vld [vmem:[#allocation2 + $0x140] sm:$0xff] }
  0xf1   : > { %v1274_v45 = vadd.f32 %v1242_v37, %v1171_v35  ;;  %v1243_v50 = vmul.f32 %v4293_v24, %v4400_v31  ;;  %v1346_v13 = vmul.f32 %v4308_v2, %v4457_v60  ;;  %v659_v14 = vadd.f32 %v627_v49, %v556_v5 }
  0xf2   : > { %v1685_v8 = vadd.f32 %v1653_v6, %v1582_v61  ;;  %v967_v0 = vadd.f32 %v935_v47, %v864_v25  ;;  %v833_v18 = vmul.f32 %v4257_v26, %v4607_v4  ;;  %v1449_v33 = vmul.f32 %v4317_v7, %v4525_v48 }
  0xf3   : > { %v1377_v52 = vadd.f32 %v1345_v21, %v1274_v45  ;;  %v1552_v39 = vmul.f32 %v4324_v42, %v4597_v28  ;;  %v4737_v37 = vmul.f32 %v4334_v29, %v4662_v20  ;;  %v762_v57 = vadd.f32 %v730_v23, %v659_v14  ;;  %v1002_v23 = vld [vmem:[#allocation2 + $0x148] sm:$0xff] }
  0xf4   : > { %v1788_v6 = vadd.f32 %v1756_v44, %v1685_v8  ;;  %v1070_v59 = vadd.f32 %v1038_v62, %v967_v0  ;;  %v936_v46 = vmul.f32 %v4269_v55, %v999_v1  ;;  %v4742_v4 = vmul.f32 %v4343_v16, %v4727_v10  ;;  %v1947_v45 = vld [vmem:[#allocation3 + $0x1] sm:$0xff] }
  0xf5   : > { %v1480_v35 = vadd.f32 %v1448_v32, %v1377_v52  ;;  %v525_v21 = vmul.f32 %v4212_v30, %v4440_v11  ;;  %v628_v47 = vmul.f32 %v4224_v22, %v4508_v54  ;;  %v865_v61 = vadd.f32 %v833_v18, %v762_v57 }
  0xf6   : > { %1820 = vst.msk [vmem:[#allocation3 + $0x1ae] sm:$0xff] %vm312_vm0, %v1788_v6  ;;  %v1172_v49 = vadd.f32 %v1140_v56, %v1070_v59  ;;  %v1039_v44 = vmul.f32 %v4278_v27, %v1001_v53  ;;  %v1141_v1 = vmul.f32 %v4286_v9, %v4366_v43  ;;  %v1244_v62 = vmul.f32 %v4293_v24, %v4427_v15  ;;  %v4764_v43 = vld [vmem:[%s5839_s2] ss:$0 sm:$0xff]  ;;  %v4766_v15 = vld [vmem:[#allocation3 + $0x8] sm:$0xff]  ;;  %v4809_v59 = vld [vmem:[%s5839_s2 + $0x3] ss:$0 sm:$0xff] }
  0xf7   : > { %v1583_v32 = vadd.f32 %v1551_v63, %v1480_v35  ;;  %v557_v25 = vadd.f32 %v4300_v3, %v525_v21  ;;  %v731_v30 = vmul.f32 %v4240_v51, %v4575_v38  ;;  %v968_v22 = vadd.f32 %v936_v46, %v865_v61  ;;  %v1845_v63 = vld [vmem:[#allocation3] sm:$0xff]  ;;  %v4803_v6 = vld [vmem:[#allocation3 + $0xa] sm:$0xff] }
  0xf8   : > { %v1275_v11 = vadd.f32 %v1243_v50, %v1172_v49  ;;  %v1347_v54 = vmul.f32 %v4308_v2, %v5887_v36  ;;  %v1450_v5 = vmul.f32 %v4317_v7, %v4565_v19  ;;  %v4770_v51 = vmul.f32 %v4324_v42, %v4630_v40  ;;  %v4777_v19 = vld [vmem:[%s5839_s2 + $0x1] ss:$0 sm:$0xff]  ;;  %v4818_v61 = vld [vmem:[#allocation3 + $0xb] sm:$0xff] }
  0xf9   : > { %v1686_v3 = vadd.f32 %v1654_v41, %v1583_v32  ;;  %v660_v38 = vadd.f32 %v628_v47, %v557_v25  ;;  %v834_v36 = vmul.f32 %v4257_v26, %v4638_v17  ;;  %v1071_v50 = vadd.f32 %v1039_v44, %v968_v22  ;;  %v4788_v26 = vld [vmem:[%s5841_s4] ss:$0 sm:$0xff]  ;;  %v4790_v17 = vld [vmem:[#allocation3 + $0x9] sm:$0xff] }
  0xfa   : > { %v1378_v56 = vadd.f32 %v1346_v13, %v1275_v11  ;;  %v4781_v41 = vmul.f32 %v4334_v29, %v4686_v58  ;;  %v937_v40 = vmul.f32 %v4269_v55, %v4699_v34  ;;  %v4796_v13 = vld [vmem:[%s5839_s2 + $0x2] ss:$0 sm:$0xff]  ;;  %v1883_v58 = vmul.f32 %v4764_v43, %v1845_v63  ;;  %v4831_v22 = vld [vmem:[#allocation3 + $0xc] sm:$0xff] }
  0xfb   : > { %v1789_v8 = vadd.f32 %v4705_v12, %v1686_v3  ;;  %v763_v0 = vadd.f32 %v731_v30, %v660_v38  ;;  %v1884_v55 = vmul.f32 %v4764_v43, %v4766_v15  ;;  %v2049_v34 = vld [vmem:[#allocation3 + $0x2] sm:$0xff]  ;;  %v1173_v18 = vadd.f32 %v1141_v1, %v1071_v50  ;;  %v1721_v63 = vld [vmem:[#allocation2 + $0x1b0] sm:$0xff] }
  0xfc   : > { %v1481_v14 = vadd.f32 %v1449_v33, %v1378_v56  ;;  %v1040_v52 = vmul.f32 %v4278_v27, %v1002_v23  ;;  %v1985_v53 = vmul.f32 %v4777_v19, %v1947_v45  ;;  %v1915_v57 = vadd.f32 %v4788_v26, %v1883_v58  ;;  %v2151_v27 = vld [vmem:[#allocation3 + $0x3] sm:$0xff]  ;;  %v2356_v50 = vld [vmem:[#allocation3 + $0xd] sm:$0xff] }
  0xfd   : > { %1821 = vst.msk [vmem:[#allocation3 + $0x1c6] sm:$0xff] %vm312_vm0, %v1789_v8  ;;  %v866_v12 = vadd.f32 %v834_v36, %v763_v0  ;;  %v1916_v46 = vadd.f32 %v4788_v26, %v1884_v55  ;;  %v1986_v33 = vmul.f32 %v4777_v19, %v4790_v17  ;;  %v1276_v21 = vadd.f32 %v1244_v62, %v1173_v18  ;;  %v4823_v1 = vld [vmem:[%s5839_s2 + $0x4] ss:$0 sm:$0xff]  ;;  %v4836_v38 = vld [vmem:[%s5839_s2 + $0x5] ss:$0 sm:$0xff]  ;;  %v2458_v18 = vld [vmem:[#allocation3 + $0xe] sm:$0xff] }
  0xfe   : > { %v1584_v35 = vadd.f32 %v1552_v39, %v1481_v14  ;;  %v1142_v47 = vmul.f32 %v4286_v9, %v4400_v31  ;;  %v2087_v49 = vmul.f32 %v4796_v13, %v2049_v34  ;;  %v2017_v32 = vadd.f32 %v1985_v53, %v1915_v57  ;;  %v2253_v39 = vld [vmem:[#allocation3 + $0x4] sm:$0xff] }
  0xff   : > { %v969_v44 = vadd.f32 %v937_v40, %v866_v12  ;;  %v2018_v25 = vadd.f32 %v1986_v33, %v1916_v46  ;;  %v2088_v30 = vmul.f32 %v4796_v13, %v4803_v6  ;;  %v1379_v11 = vadd.f32 %v1347_v54, %v1276_v21  ;;  %v2355_v54 = vld [vmem:[#allocation3 + $0x5] sm:$0xff] }
 0x100   : > { %v1687_v62 = vadd.f32 %v4737_v37, %v1584_v35  ;;  %v1245_v9 = vmul.f32 %v4293_v24, %v4457_v60  ;;  %v2189_v31 = vmul.f32 %v4809_v59, %v2151_v27  ;;  %v2119_v36 = vadd.f32 %v2087_v49, %v2017_v32  ;;  %v4847_v8 = vld [vmem:[%s5839_s2 + $0x6] ss:$0 sm:$0xff]  ;;  %v4860_v53 = vld [vmem:[%s5839_s2 + $0x7] ss:$0 sm:$0xff]  ;;  %v4865_v12 = vld [vmem:[%s5839_s2 + $0x8] ss:$0 sm:$0xff] }
 0x101   : > { %v1072_v3 = vadd.f32 %v1040_v52, %v969_v44  ;;  %v2120_v23 = vadd.f32 %v2088_v30, %v2018_v25  ;;  %v2190_v37 = vmul.f32 %v4809_v59, %v4818_v61  ;;  %v1482_v24 = vadd.f32 %v1450_v5, %v1379_v11  ;;  %v2457_v34 = vld [vmem:[#allocation3 + $0x6] sm:$0xff]  ;;  %v1722_v5 = vld [vmem:[#allocation2 + $0x1b8] sm:$0xff] }
 0x102   : > { %v1790_v45 = vadd.f32 %v4742_v4, %v1687_v62  ;;  %v1348_v60 = vmul.f32 %v4308_v2, %v4525_v48  ;;  %v2291_v56 = vmul.f32 %v4823_v1, %v2253_v39  ;;  %v2221_v0 = vadd.f32 %v2189_v31, %v2119_v36  ;;  %v4876_v35 = vld [vmem:[%s5839_s2 + $0x9] ss:$0 sm:$0xff]  ;;  %v4882_v44 = vld [vmem:[%s5839_s2 + $0xa] ss:$0 sm:$0xff]  ;;  %v2661_v62 = vld [vmem:[#allocation3 + $0x10] sm:$0xff] }
 0x103   : > { %v1174_v40 = vadd.f32 %v1142_v47, %v1072_v3  ;;  %v2222_v58 = vadd.f32 %v2190_v37, %v2120_v23  ;;  %v2292_v55 = vmul.f32 %v4823_v1, %v4831_v22  ;;  %v1585_v4 = vadd.f32 %v4770_v51, %v1482_v24  ;;  %v2560_v47 = vld [vmem:[#allocation3 + $0xf] sm:$0xff]  ;;  %v1949_v3 = vld [vmem:[#allocation3 + $0x21] sm:$0xff] }
 0x104   : > { %1822 = vst.msk [vmem:[#allocation3 + $0x1ce] sm:$0xff] %vm312_vm0, %v1790_v45  ;;  %v1759_v2 = vmul.f32 %v4343_v16, %v1721_v63  ;;  %v1451_v48 = vmul.f32 %v4317_v7, %v4597_v28  ;;  %v2393_v14 = vmul.f32 %v4836_v38, %v2355_v54  ;;  %v2323_v51 = vadd.f32 %v2291_v56, %v2221_v0  ;;  %v2559_v7 = vld [vmem:[#allocation3 + $0x7] sm:$0xff]  ;;  %v2747_v37 = vld [vmem:[#allocation3 + $0x11] sm:$0xff] }
 0x105   : > { %v1277_v52 = vadd.f32 %v1245_v9, %v1174_v40  ;;  %v2324_v57 = vadd.f32 %v2292_v55, %v2222_v58  ;;  %v2394_v46 = vmul.f32 %v4836_v38, %v2356_v50  ;;  %v1688_v28 = vadd.f32 %v4781_v41, %v1585_v4  ;;  %v4892_v36 = vld [vmem:[#allocation3 + $0x29] sm:$0xff]  ;;  %v2833_v0 = vld [vmem:[#allocation3 + $0x12] sm:$0xff] }
 0x106   : > { %v1554_v33 = vmul.f32 %v4324_v42, %v4662_v20  ;;  %v1657_v27 = vmul.f32 %v4334_v29, %v4727_v10  ;;  %v2495_v21 = vmul.f32 %v4847_v8, %v2457_v34  ;;  %v2425_v41 = vadd.f32 %v2393_v14, %v2323_v51  ;;  %v1847_v20 = vld [vmem:[#allocation3 + $0x20] sm:$0xff]  ;;  %v4885_v29 = vld [vmem:[#allocation3 + $0x28] sm:$0xff] }
 0x107   : > { %v1380_v49 = vadd.f32 %v1348_v60, %v1277_v52  ;;  %v2426_v32 = vadd.f32 %v2394_v46, %v2324_v57  ;;  %v2496_v42 = vmul.f32 %v4847_v8, %v2458_v18  ;;  %v1791_v10 = vadd.f32 %v1759_v2, %v1688_v28  ;;  %v2051_v50 = vld [vmem:[#allocation3 + $0x22] sm:$0xff]  ;;  %v4903_v40 = vld [vmem:[#allocation3 + $0x2a] sm:$0xff]  ;;  %v2919_v52 = vld [vmem:[#allocation3 + $0x13] sm:$0xff] }
 0x108   : > { %v1760_v25 = vmul.f32 %v4343_v16, %v1722_v5  ;;  %v2597_v30 = vmul.f32 %v4860_v53, %v2559_v7  ;;  %v2683_v39 = vmul.f32 %v4865_v12, %v4766_v15  ;;  %v2527_v9 = vadd.f32 %v2495_v21, %v2425_v41  ;;  %v2153_v5 = vld [vmem:[#allocation3 + $0x23] sm:$0xff]  ;;  %v4911_v14 = vld [vmem:[#allocation3 + $0x2b] sm:$0xff] }
 0x109   : > { %v1483_v11 = vadd.f32 %v1451_v48, %v1380_v49  ;;  %v2528_v31 = vadd.f32 %v2496_v42, %v2426_v32  ;;  %v2598_v63 = vmul.f32 %v4860_v53, %v2560_v47  ;;  %1823 = vst.msk [vmem:[#allocation3 + $0x1e6] sm:$0xff] %vm312_vm0, %v1791_v10  ;;  %v2769_v23 = vmul.f32 %v4876_v35, %v4790_v17  ;;  %v4916_v18 = vld [vmem:[%s5839_s2 + $0xb] ss:$0 sm:$0xff]  ;;  %v4922_v49 = vld [vmem:[#allocation3 + $0x2c] sm:$0xff]  ;;  %v3005_v32 = vld [vmem:[#allocation3 + $0x14] sm:$0xff] }
 0x10a   : > { %v2855_v16 = vmul.f32 %v4882_v44, %v4803_v6  ;;  %v1885_v15 = vmul.f32 %v4764_v43, %v1847_v20  ;;  %v1886_v54 = vmul.f32 %v4764_v43, %v4885_v29  ;;  %v2629_v24 = vadd.f32 %v2597_v30, %v2527_v9  ;;  %v2255_v47 = vld [vmem:[#allocation3 + $0x24] sm:$0xff]  ;;  %v4927_v41 = vld [vmem:[%s5839_s2 + $0xc] ss:$0 sm:$0xff] }
 0x10b   : > { %v1586_v45 = vadd.f32 %v1554_v33, %v1483_v11  ;;  %v2630_v60 = vadd.f32 %v2598_v63, %v2528_v31  ;;  %v2684_v56 = vmul.f32 %v4865_v12, %v2661_v62  ;;  %v1987_v6 = vmul.f32 %v4777_v19, %v1949_v3  ;;  %v2357_v9 = vld [vmem:[#allocation3 + $0x25] sm:$0xff]  ;;  %v2358_v31 = vld [vmem:[#allocation3 + $0x2d] sm:$0xff] }
 0x10c   : > { %v1917_v17 = vadd.f32 %v4788_v26, %v1885_v15  ;;  %v1918_v58 = vadd.f32 %v4788_v26, %v1886_v54  ;;  %v1988_v55 = vmul.f32 %v4777_v19, %v4892_v36  ;;  %v2715_v4 = vadd.f32 %v2683_v39, %v2629_v24  ;;  %v2460_v24 = vld [vmem:[#allocation3 + $0x2e] sm:$0xff] }
 0x10d   : > { %v1689_v34 = vadd.f32 %v1657_v27, %v1586_v45  ;;  %v2716_v2 = vadd.f32 %v2684_v56, %v2630_v60  ;;  %v2770_v48 = vmul.f32 %v4876_v35, %v2747_v37  ;;  %v2089_v46 = vmul.f32 %v4796_v13, %v2051_v50 }
 0x10e   : > { %v2019_v51 = vadd.f32 %v1987_v6, %v1917_v17  ;;  %v2020_v57 = vadd.f32 %v1988_v55, %v1918_v58  ;;  %v2090_v7 = vmul.f32 %v4796_v13, %v4903_v40  ;;  %v2801_v33 = vadd.f32 %v2769_v23, %v2715_v4  ;;  %v1849_v17 = vld [vmem:[#allocation3 + $0x40] sm:$0xff]  ;;  %v4951_v58 = vld [vmem:[#allocation3 + $0x48] sm:$0xff] }
 0x10f   : > { %v1792_v28 = vadd.f32 %v1760_v25, %v1689_v34  ;;  %v2802_v27 = vadd.f32 %v2770_v48, %v2716_v2  ;;  %v2856_v21 = vmul.f32 %v4882_v44, %v2833_v0  ;;  %v2191_v10 = vmul.f32 %v4809_v59, %v2153_v5  ;;  %v2562_v34 = vld [vmem:[#allocation3 + $0x2f] sm:$0xff] }
 0x110   : > { %v2121_v42 = vadd.f32 %v2089_v46, %v2019_v51  ;;  %v2122_v20 = vadd.f32 %v2090_v7, %v2020_v57  ;;  %v2192_v25 = vmul.f32 %v4809_v59, %v4911_v14  ;;  %v2887_v30 = vadd.f32 %v2855_v16, %v2801_v33  ;;  %v4955_v51 = vld [vmem:[#allocation3 + $0x49] sm:$0xff] }
 0x111   : > { %1824 = vst.msk [vmem:[#allocation3 + $0x1ee] sm:$0xff] %vm312_vm0, %v1792_v28  ;;  %v2941_v39 = vmul.f32 %v4916_v18, %v4818_v61  ;;  %v2888_v62 = vadd.f32 %v2856_v21, %v2802_v27  ;;  %v2942_v11 = vmul.f32 %v4916_v18, %v2919_v52  ;;  %v2293_v23 = vmul.f32 %v4823_v1, %v2255_v47  ;;  %v2459_v61 = vld [vmem:[#allocation3 + $0x26] sm:$0xff]  ;;  %v2662_v7 = vld [vmem:[#allocation3 + $0x30] sm:$0xff] }
 0x112   : > { %v2223_v63 = vadd.f32 %v2191_v10, %v2121_v42  ;;  %v2224_v3 = vadd.f32 %v2192_v25, %v2122_v20  ;;  %v2294_v37 = vmul.f32 %v4823_v1, %v4922_v49  ;;  %v3027_v16 = vmul.f32 %v4927_v41, %v4831_v22  ;;  %v2561_v22 = vld [vmem:[#allocation3 + $0x27] sm:$0xff]  ;;  %v2748_v10 = vld [vmem:[#allocation3 + $0x31] sm:$0xff] }
 0x113   : > { %v2973_v15 = vadd.f32 %v2941_v39, %v2887_v30  ;;  %v2974_v54 = vadd.f32 %v2942_v11, %v2888_v62  ;;  %v3028_v45 = vmul.f32 %v4927_v41, %v3005_v32  ;;  %v2395_v50 = vmul.f32 %v4836_v38, %v2357_v9  ;;  %v1951_v52 = vld [vmem:[#allocation3 + $0x41] sm:$0xff]  ;;  %v4970_v20 = vld [vmem:[#allocation3 + $0x4a] sm:$0xff] }
 0x114   : > { %v2325_v60 = vadd.f32 %v2293_v23, %v2223_v63  ;;  %v2326_v56 = vadd.f32 %v2294_v37, %v2224_v3  ;;  %v2396_v0 = vmul.f32 %v4836_v38, %v2358_v31  ;;  %v2497_v48 = vmul.f32 %v4847_v8, %v2459_v61  ;;  %v2053_v42 = vld [vmem:[#allocation3 + $0x42] sm:$0xff]  ;;  %v4980_v63 = vld [vmem:[#allocation3 + $0x4b] sm:$0xff] }
 0x115   : > { %v3059_v6 = vadd.f32 %v3027_v16, %v2973_v15  ;;  %v3060_v55 = vadd.f32 %v3028_v45, %v2974_v54  ;;  %v2498_v5 = vmul.f32 %v4847_v8, %v2460_v24  ;;  %v2599_v57 = vmul.f32 %v4860_v53, %v2561_v22  ;;  %v2155_v31 = vld [vmem:[#allocation3 + $0x43] sm:$0xff]  ;;  %v2834_v3 = vld [vmem:[#allocation3 + $0x32] sm:$0xff] }
 0x116   : > { %v2427_v4 = vadd.f32 %v2395_v50, %v2325_v60  ;;  %v2428_v2 = vadd.f32 %v2396_v0, %v2326_v56  ;;  %v2685_v46 = vmul.f32 %v4865_v12, %v4885_v29  ;;  %v1887_v28 = vmul.f32 %v4764_v43, %v1849_v17  ;;  %v2257_v24 = vld [vmem:[#allocation3 + $0x44] sm:$0xff]  ;;  %v4988_v60 = vld [vmem:[#allocation3 + $0x4c] sm:$0xff]  ;;  %v3006_v50 = vld [vmem:[#allocation3 + $0x34] sm:$0xff] }
 0x117   : > { %3091 = vst.msk [vmem:[%s4947_s7] sm:$0xff] %vm312_vm0, %v3059_v6  ;;  %3092 = vst.msk [vmem:[%s4947_s7 + $0x8] sm:$0xff] %vm312_vm0, %v3060_v55  ;;  %v1888_v33 = vmul.f32 %v4764_v43, %v4951_v58  ;;  %v2771_v47 = vmul.f32 %v4876_v35, %v4892_v36  ;;  %v2600_v32 = vmul.f32 %v4860_v53, %v2562_v34  ;;  %v2920_v56 = vld [vmem:[#allocation3 + $0x33] sm:$0xff] }
 0x118   : > { %v2529_v27 = vadd.f32 %v2497_v48, %v2427_v4  ;;  %v2530_v21 = vadd.f32 %v2498_v5, %v2428_v2  ;;  %v1919_v25 = vadd.f32 %v4788_v26, %v1887_v28  ;;  %v1989_v30 = vmul.f32 %v4777_v19, %v1951_v52  ;;  %v2359_v2 = vld [vmem:[#allocation3 + $0x45] sm:$0xff]  ;;  %v2360_v48 = vld [vmem:[#allocation3 + $0x4d] sm:$0xff] }
 0x119   : > { %v1920_v29 = vadd.f32 %v4788_v26, %v1888_v33  ;;  %v1990_v39 = vmul.f32 %v4777_v19, %v4955_v51  ;;  %v2857_v11 = vmul.f32 %v4882_v44, %v4903_v40  ;;  %v2686_v9 = vmul.f32 %v4865_v12, %v2662_v7  ;;  %v2461_v7 = vld [vmem:[#allocation3 + $0x46] sm:$0xff]  ;;  %v2462_v28 = vld [vmem:[#allocation3 + $0x4e] sm:$0xff] }
 0x11a   : > { %v2631_v62 = vadd.f32 %v2599_v57, %v2529_v27  ;;  %v2632_v36 = vadd.f32 %v2600_v32, %v2530_v21  ;;  %v2021_v23 = vadd.f32 %v1989_v30, %v1919_v25  ;;  %v2091_v15 = vmul.f32 %v4796_v13, %v2053_v42  ;;  %v1851_v32 = vld [vmem:[#allocation3 + $0x60] sm:$0xff]  ;;  %v2564_v30 = vld [vmem:[#allocation3 + $0x4f] sm:$0xff] }
 0x11b   : > { %v2022_v37 = vadd.f32 %v1990_v39, %v1920_v29  ;;  %v2092_v16 = vmul.f32 %v4796_v13, %v4970_v20  ;;  %v2943_v45 = vmul.f32 %v4916_v18, %v4911_v14  ;;  %v2772_v40 = vmul.f32 %v4876_v35, %v2748_v10  ;;  %v5003_v39 = vld [vmem:[#allocation3 + $0x68] sm:$0xff] }
 0x11c   : > { %v2717_v54 = vadd.f32 %v2685_v46, %v2631_v62  ;;  %v2718_v61 = vadd.f32 %v2686_v9, %v2632_v36  ;;  %v2123_v0 = vadd.f32 %v2091_v15, %v2021_v23  ;;  %v2193_v17 = vmul.f32 %v4809_v59, %v2155_v31  ;;  %v1953_v31 = vld [vmem:[#allocation3 + $0x61] sm:$0xff]  ;;  %v2663_v15 = vld [vmem:[#allocation3 + $0x50] sm:$0xff] }
 0x11d   : > { %v2124_v22 = vadd.f32 %v2092_v16, %v2022_v37  ;;  %v2194_v6 = vmul.f32 %v4809_v59, %v4980_v63  ;;  %v3029_v34 = vmul.f32 %v4927_v41, %v4922_v49  ;;  %v2858_v4 = vmul.f32 %v4882_v44, %v2834_v3 }
 0x11e   : > { %v2803_v55 = vadd.f32 %v2771_v47, %v2717_v54  ;;  %v2804_v14 = vadd.f32 %v2772_v40, %v2718_v61  ;;  %v2225_v5 = vadd.f32 %v2193_v17, %v2123_v0  ;;  %v2295_v57 = vmul.f32 %v4823_v1, %v2257_v24  ;;  %v2563_v47 = vld [vmem:[#allocation3 + $0x47] sm:$0xff] }
 0x11f   : > { %v2226_v52 = vadd.f32 %v2194_v6, %v2124_v22  ;;  %v2296_v46 = vmul.f32 %v4823_v1, %v4988_v60  ;;  %v2944_v21 = vmul.f32 %v4916_v18, %v2920_v56  ;;  %v3030_v49 = vmul.f32 %v4927_v41, %v3006_v50  ;;  %v5009_v54 = vld [vmem:[#allocation3 + $0x69] sm:$0xff]  ;;  %v2749_v22 = vld [vmem:[#allocation3 + $0x51] sm:$0xff] }
 0x120   : > { %v2889_v33 = vadd.f32 %v2857_v11, %v2803_v55  ;;  %v2890_v27 = vadd.f32 %v2858_v4, %v2804_v14  ;;  %v2327_v42 = vadd.f32 %v2295_v57, %v2225_v5  ;;  %v2397_v25 = vmul.f32 %v4836_v38, %v2359_v2  ;;  %v2055_v56 = vld [vmem:[#allocation3 + $0x62] sm:$0xff]  ;;  %v5016_v55 = vld [vmem:[#allocation3 + $0x6a] sm:$0xff]  ;;  %v2835_v57 = vld [vmem:[#allocation3 + $0x52] sm:$0xff] }
 0x121   : > { %v2328_v10 = vadd.f32 %v2296_v46, %v2226_v52  ;;  %v2398_v29 = vmul.f32 %v4836_v38, %v2360_v48  ;;  %v2499_v11 = vmul.f32 %v4847_v8, %v2461_v7  ;;  %v2500_v9 = vmul.f32 %v4847_v8, %v2462_v28  ;;  %v2157_v48 = vld [vmem:[#allocation3 + $0x63] sm:$0xff]  ;;  %v5029_v28 = vld [vmem:[#allocation3 + $0x6b] sm:$0xff] }
 0x122   : > { %v2975_v62 = vadd.f32 %v2943_v45, %v2889_v33  ;;  %v2976_v36 = vadd.f32 %v2944_v21, %v2890_v27  ;;  %v2429_v3 = vadd.f32 %v2397_v25, %v2327_v42  ;;  %v2601_v37 = vmul.f32 %v4860_v53, %v2563_v47  ;;  %v2921_v42 = vld [vmem:[#allocation3 + $0x53] sm:$0xff] }
 0x123   : > { %v2430_v23 = vadd.f32 %v2398_v29, %v2328_v10  ;;  %v1889_v16 = vmul.f32 %v4764_v43, %v1851_v32  ;;  %v2602_v45 = vmul.f32 %v4860_v53, %v2564_v30  ;;  %v1890_v24 = vmul.f32 %v4764_v43, %v5003_v39  ;;  %v5037_v29 = vld [vmem:[#allocation3 + $0x6c] sm:$0xff] }
 0x124   : > { %v3061_v61 = vadd.f32 %v3029_v34, %v2975_v62  ;;  %v3062_v40 = vadd.f32 %v3030_v49, %v2976_v36  ;;  %v2531_v50 = vadd.f32 %v2499_v11, %v2429_v3  ;;  %v1991_v6 = vmul.f32 %v4777_v19, %v1953_v31  ;;  %v2259_v49 = vld [vmem:[#allocation3 + $0x64] sm:$0xff]  ;;  %v3007_v3 = vld [vmem:[#allocation3 + $0x54] sm:$0xff] }
 0x125   : > { %v2532_v0 = vadd.f32 %v2500_v9, %v2430_v23  ;;  %v1921_v17 = vadd.f32 %v4788_v26, %v1889_v16  ;;  %v2687_v34 = vmul.f32 %v4865_v12, %v4951_v58  ;;  %v2688_v14 = vmul.f32 %v4865_v12, %v2663_v15  ;;  %v2361_v11 = vld [vmem:[#allocation3 + $0x65] sm:$0xff]  ;;  %v2362_v15 = vld [vmem:[#allocation3 + $0x6d] sm:$0xff] }
 0x126   : > { %3093 = vst.msk [vmem:[%s4947_s7 + $0x10] sm:$0xff] %vm312_vm0, %v3061_v61  ;;  %3094 = vst.msk [vmem:[%s4947_s7 + $0x18] sm:$0xff] %vm312_vm0, %v3062_v40  ;;  %v1922_v4 = vadd.f32 %v4788_v26, %v1890_v24  ;;  %v1992_v2 = vmul.f32 %v4777_v19, %v5009_v54  ;;  %v2633_v5 = vadd.f32 %v2601_v37, %v2531_v50 }
 0x127   : > { %v2634_v52 = vadd.f32 %v2602_v45, %v2532_v0  ;;  %v2023_v46 = vadd.f32 %v1991_v6, %v1921_v17  ;;  %v2093_v7 = vmul.f32 %v4796_v13, %v2055_v56  ;;  %v2773_v33 = vmul.f32 %v4876_v35, %v4955_v51  ;;  %v2463_v45 = vld [vmem:[#allocation3 + $0x66] sm:$0xff] }
 0x128   : > { %v2774_v58 = vmul.f32 %v4876_v35, %v2749_v22  ;;  %v2024_v27 = vadd.f32 %v1992_v2, %v1922_v4  ;;  %v2094_v21 = vmul.f32 %v4796_v13, %v5016_v55  ;;  %v2719_v47 = vadd.f32 %v2687_v34, %v2633_v5  ;;  %v2464_v22 = vld [vmem:[#allocation3 + $0x6e] sm:$0xff]  ;;  %v1853_v6 = vld [vmem:[#allocation3 + $0x80] sm:$0xff] }
 0x129   : > { %v2720_v32 = vadd.f32 %v2688_v14, %v2634_v52  ;;  %v2125_v10 = vadd.f32 %v2093_v7, %v2023_v46  ;;  %v2195_v25 = vmul.f32 %v4809_v59, %v2157_v48  ;;  %v2859_v30 = vmul.f32 %v4882_v44, %v4970_v20  ;;  %v2565_v17 = vld [vmem:[#allocation3 + $0x67] sm:$0xff]  ;;  %v2566_v46 = vld [vmem:[#allocation3 + $0x6f] sm:$0xff] }
 0x12a   : > { %v2860_v51 = vmul.f32 %v4882_v44, %v2835_v57  ;;  %v2126_v62 = vadd.f32 %v2094_v21, %v2024_v27  ;;  %v2196_v36 = vmul.f32 %v4809_v59, %v5029_v28  ;;  %v2805_v9 = vadd.f32 %v2773_v33, %v2719_v47  ;;  %v5055_v2 = vld [vmem:[#allocation3 + $0x88] sm:$0xff] }
 0x12b   : > { %v2806_v31 = vadd.f32 %v2774_v58, %v2720_v32  ;;  %v2227_v23 = vadd.f32 %v2195_v25, %v2125_v10  ;;  %v2297_v37 = vmul.f32 %v4823_v1, %v2259_v49  ;;  %v2945_v16 = vmul.f32 %v4916_v18, %v4980_v63  ;;  %v1955_v7 = vld [vmem:[#allocation3 + $0x81] sm:$0xff]  ;;  %v5061_v21 = vld [vmem:[#allocation3 + $0x89] sm:$0xff] }
 0x12c   : > { %v2946_v61 = vmul.f32 %v4916_v18, %v2921_v42  ;;  %v2228_v20 = vadd.f32 %v2196_v36, %v2126_v62  ;;  %v2298_v40 = vmul.f32 %v4823_v1, %v5037_v29  ;;  %v2891_v24 = vadd.f32 %v2859_v30, %v2805_v9  ;;  %v2664_v42 = vld [vmem:[#allocation3 + $0x70] sm:$0xff]  ;;  %v2057_v25 = vld [vmem:[#allocation3 + $0x82] sm:$0xff] }
 0x12d   : > { %v2892_v56 = vadd.f32 %v2860_v51, %v2806_v31  ;;  %v2329_v50 = vadd.f32 %v2297_v37, %v2227_v23  ;;  %v2399_v0 = vmul.f32 %v4836_v38, %v2361_v11  ;;  %v3031_v34 = vmul.f32 %v4927_v41, %v4988_v60  ;;  %v5068_v11 = vld [vmem:[#allocation3 + $0x8a] sm:$0xff] }
 0x12e   : > { %v3032_v63 = vmul.f32 %v4927_v41, %v3007_v3  ;;  %v2330_v14 = vadd.f32 %v2298_v40, %v2228_v20  ;;  %v2400_v4 = vmul.f32 %v4836_v38, %v2362_v15  ;;  %v2977_v48 = vadd.f32 %v2945_v16, %v2891_v24  ;;  %v2750_v3 = vld [vmem:[#allocation3 + $0x71] sm:$0xff]  ;;  %v2159_v15 = vld [vmem:[#allocation3 + $0x83] sm:$0xff] }
 0x12f   : > { %v2978_v5 = vadd.f32 %v2946_v61, %v2892_v56  ;;  %v2431_v52 = vadd.f32 %v2399_v0, %v2329_v50  ;;  %v2501_v57 = vmul.f32 %v4847_v8, %v2463_v45  ;;  %v2502_v58 = vmul.f32 %v4847_v8, %v2464_v22  ;;  %v5081_v45 = vld [vmem:[#allocation3 + $0x8b] sm:$0xff] }
 0x130   : > { %v2432_v33 = vadd.f32 %v2400_v4, %v2330_v14  ;;  %v2603_v60 = vmul.f32 %v4860_v53, %v2565_v17  ;;  %v1891_v27 = vmul.f32 %v4764_v43, %v1853_v6  ;;  %v3063_v49 = vadd.f32 %v3031_v34, %v2977_v48  ;;  %v2261_v22 = vld [vmem:[#allocation3 + $0x84] sm:$0xff]  ;;  %v5089_v14 = vld [vmem:[#allocation3 + $0x8c] sm:$0xff] }
 0x131   : > { %v3064_v47 = vadd.f32 %v3032_v63, %v2978_v5  ;;  %v2533_v32 = vadd.f32 %v2501_v57, %v2431_v52  ;;  %v1892_v10 = vmul.f32 %v4764_v43, %v5055_v2  ;;  %v2604_v51 = vmul.f32 %v4860_v53, %v2566_v46  ;;  %v2922_v5 = vld [vmem:[#allocation3 + $0x73] sm:$0xff]  ;;  %v2363_v57 = vld [vmem:[#allocation3 + $0x85] sm:$0xff] }
 0x132   : > { %v2534_v30 = vadd.f32 %v2502_v58, %v2432_v33  ;;  %v1923_v62 = vadd.f32 %v4788_v26, %v1891_v27  ;;  %v1993_v36 = vmul.f32 %v4777_v19, %v1955_v7  ;;  %3095 = vst.msk [vmem:[%s4947_s7 + $0x20] sm:$0xff] %vm312_vm0, %v3063_v49  ;;  %v2689_v31 = vmul.f32 %v4865_v12, %v5003_v39  ;;  %v2836_v39 = vld [vmem:[#allocation3 + $0x72] sm:$0xff] }
 0x133   : > { %3096 = vst.msk [vmem:[%s4947_s7 + $0x28] sm:$0xff] %vm312_vm0, %v3064_v47  ;;  %v2635_v9 = vadd.f32 %v2603_v60, %v2533_v32  ;;  %v1924_v23 = vadd.f32 %v4788_v26, %v1892_v10  ;;  %v1994_v37 = vmul.f32 %v4777_v19, %v5061_v21  ;;  %v2690_v61 = vmul.f32 %v4865_v12, %v2664_v42  ;;  %v2364_v60 = vld [vmem:[#allocation3 + $0x8d] sm:$0xff] }
 0x134   : > { %v2636_v16 = vadd.f32 %v2604_v51, %v2534_v30  ;;  %v2025_v20 = vadd.f32 %v1993_v36, %v1923_v62  ;;  %v2095_v40 = vmul.f32 %v4796_v13, %v2057_v25  ;;  %v2775_v56 = vmul.f32 %v4876_v35, %v5009_v54  ;;  %v3008_v47 = vld [vmem:[#allocation3 + $0x74] sm:$0xff]  ;;  %v2465_v42 = vld [vmem:[#allocation3 + $0x86] sm:$0xff] }
 0x135   : > { %v2721_v24 = vadd.f32 %v2689_v31, %v2635_v9  ;;  %v2026_v50 = vadd.f32 %v1994_v37, %v1924_v23  ;;  %v2096_v0 = vmul.f32 %v4796_v13, %v5068_v11  ;;  %v2776_v6 = vmul.f32 %v4876_v35, %v2750_v3  ;;  %v2466_v62 = vld [vmem:[#allocation3 + $0x8e] sm:$0xff]  ;;  %v1855_v23 = vld [vmem:[#allocation3 + $0xa0] sm:$0xff] }
 0x136   : > { %v2722_v17 = vadd.f32 %v2690_v61, %v2636_v16  ;;  %v2127_v34 = vadd.f32 %v2095_v40, %v2025_v20  ;;  %v2197_v63 = vmul.f32 %v4809_v59, %v2159_v15  ;;  %v2861_v48 = vmul.f32 %v4882_v44, %v5016_v55  ;;  %v2567_v36 = vld [vmem:[#allocation3 + $0x87] sm:$0xff]  ;;  %v2568_v40 = vld [vmem:[#allocation3 + $0x8f] sm:$0xff] }
 0x137   : > { %v2807_v4 = vadd.f32 %v2775_v56, %v2721_v24  ;;  %v2128_v54 = vadd.f32 %v2096_v0, %v2026_v50  ;;  %v2198_v52 = vmul.f32 %v4809_v59, %v5081_v45  ;;  %v2862_v7 = vmul.f32 %v4882_v44, %v2836_v39  ;;  %v5106_v37 = vld [vmem:[#allocation3 + $0xa8] sm:$0xff] }
 0x138   : > { %v2808_v46 = vadd.f32 %v2776_v6, %v2722_v17  ;;  %v2229_v33 = vadd.f32 %v2197_v63, %v2127_v34  ;;  %v2299_v58 = vmul.f32 %v4823_v1, %v2261_v22  ;;  %v2947_v49 = vmul.f32 %v4916_v18, %v5029_v28  ;;  %v1957_v24 = vld [vmem:[#allocation3 + $0xa1] sm:$0xff]  ;;  %v5112_v0 = vld [vmem:[#allocation3 + $0xa9] sm:$0xff] }
 0x139   : > { %v2893_v27 = vadd.f32 %v2861_v48, %v2807_v4  ;;  %v2230_v32 = vadd.f32 %v2198_v52, %v2128_v54  ;;  %v2300_v55 = vmul.f32 %v4823_v1, %v5089_v14  ;;  %v2948_v25 = vmul.f32 %v4916_v18, %v2922_v5  ;;  %v2665_v6 = vld [vmem:[#allocation3 + $0x90] sm:$0xff]  ;;  %v2059_v4 = vld [vmem:[#allocation3 + $0xa2] sm:$0xff] }
 0x13a   : > { %v2894_v10 = vadd.f32 %v2862_v7, %v2808_v46  ;;  %v2331_v30 = vadd.f32 %v2299_v58, %v2229_v33  ;;  %v2401_v51 = vmul.f32 %v4836_v38, %v2363_v57  ;;  %v3033_v31 = vmul.f32 %v4927_v41, %v5037_v29  ;;  %v5123_v57 = vld [vmem:[#allocation3 + $0xaa] sm:$0xff] }
 0x13b   : > { %v2979_v9 = vadd.f32 %v2947_v49, %v2893_v27  ;;  %v2332_v3 = vadd.f32 %v2300_v55, %v2230_v32  ;;  %v2402_v28 = vmul.f32 %v4836_v38, %v2364_v60  ;;  %v3034_v16 = vmul.f32 %v4927_v41, %v3008_v47  ;;  %v2751_v7 = vld [vmem:[#allocation3 + $0x91] sm:$0xff]  ;;  %v2161_v27 = vld [vmem:[#allocation3 + $0xa3] sm:$0xff] }
 0x13c   : > { %v2980_v15 = vadd.f32 %v2948_v25, %v2894_v10  ;;  %v2433_v61 = vadd.f32 %v2401_v51, %v2331_v30  ;;  %v2503_v20 = vmul.f32 %v4847_v8, %v2465_v42  ;;  %v2504_v29 = vmul.f32 %v4847_v8, %v2466_v62  ;;  %v5135_v55 = vld [vmem:[#allocation3 + $0xab] sm:$0xff] }
 0x13d   : > { %v3065_v56 = vadd.f32 %v3033_v31, %v2979_v9  ;;  %v2434_v39 = vadd.f32 %v2402_v28, %v2332_v3  ;;  %v2605_v50 = vmul.f32 %v4860_v53, %v2567_v36  ;;  %v1893_v34 = vmul.f32 %v4764_v43, %v1855_v23  ;;  %v2837_v10 = vld [vmem:[#allocation3 + $0x92] sm:$0xff]  ;;  %v2263_v62 = vld [vmem:[#allocation3 + $0xa4] sm:$0xff] }
 0x13e   : > { %v3066_v22 = vadd.f32 %v3034_v16, %v2980_v15  ;;  %v2535_v17 = vadd.f32 %v2503_v20, %v2433_v61  ;;  %v1894_v63 = vmul.f32 %v4764_v43, %v5106_v37  ;;  %v2691_v5 = vmul.f32 %v4865_v12, %v5055_v2  ;;  %v5143_v3 = vld [vmem:[#allocation3 + $0xac] sm:$0xff] }
 0x13f   : > { %3097 = vst.msk [vmem:[%s4947_s7 + $0x30] sm:$0xff] %vm312_vm0, %v3065_v56  ;;  %v2536_v48 = vadd.f32 %v2504_v29, %v2434_v39  ;;  %v2606_v54 = vmul.f32 %v4860_v53, %v2568_v40  ;;  %v1995_v52 = vmul.f32 %v4777_v19, %v1957_v24  ;;  %v1925_v33 = vadd.f32 %v4788_v26, %v1893_v34  ;;  %v2923_v23 = vld [vmem:[#allocation3 + $0x93] sm:$0xff]  ;;  %v2365_v20 = vld [vmem:[#allocation3 + $0xa5] sm:$0xff] }
 0x140   : > { %3098 = vst.msk [vmem:[%s4947_s7 + $0x38] sm:$0xff] %vm312_vm0, %v3066_v22  ;;  %v2637_v46 = vadd.f32 %v2605_v50, %v2535_v17  ;;  %v1926_v58 = vadd.f32 %v4788_v26, %v1894_v63  ;;  %v1996_v60 = vmul.f32 %v4777_v19, %v5112_v0  ;;  %v2777_v2 = vmul.f32 %v4876_v35, %v5061_v21  ;;  %v2366_v39 = vld [vmem:[#allocation3 + $0xad] sm:$0xff] }
 0x141   : > { %v2638_v49 = vadd.f32 %v2606_v54, %v2536_v48  ;;  %v2692_v47 = vmul.f32 %v4865_v12, %v2665_v6  ;;  %v2097_v32 = vmul.f32 %v4796_v13, %v2059_v4  ;;  %v2027_v25 = vadd.f32 %v1995_v52, %v1925_v33  ;;  %v3009_v50 = vld [vmem:[#allocation3 + $0x94] sm:$0xff]  ;;  %v2467_v34 = vld [vmem:[#allocation3 + $0xa6] sm:$0xff] }
 0x142   : > { %v2723_v42 = vadd.f32 %v2691_v5, %v2637_v46  ;;  %v2028_v30 = vadd.f32 %v1996_v60, %v1926_v58  ;;  %v2098_v51 = vmul.f32 %v4796_v13, %v5123_v57  ;;  %v2863_v36 = vmul.f32 %v4882_v44, %v5068_v11  ;;  %v2468_v63 = vld [vmem:[#allocation3 + $0xae] sm:$0xff]  ;;  %v1857_v58 = vld [vmem:[#allocation3 + $0xc0] sm:$0xff] }
 0x143   : > { %v2724_v9 = vadd.f32 %v2692_v47, %v2638_v49  ;;  %v2778_v21 = vmul.f32 %v4876_v35, %v2751_v7  ;;  %v2199_v31 = vmul.f32 %v4809_v59, %v2161_v27  ;;  %v2129_v15 = vadd.f32 %v2097_v32, %v2027_v25  ;;  %v2569_v54 = vld [vmem:[#allocation3 + $0xa7] sm:$0xff]  ;;  %v2570_v47 = vld [vmem:[#allocation3 + $0xaf] sm:$0xff] }
 0x144   : > { %v2809_v28 = vadd.f32 %v2777_v2, %v2723_v42  ;;  %v2130_v16 = vadd.f32 %v2098_v51, %v2028_v30  ;;  %v2200_v61 = vmul.f32 %v4809_v59, %v5135_v55  ;;  %v2949_v40 = vmul.f32 %v4916_v18, %v5081_v45  ;;  %v5158_v60 = vld [vmem:[#allocation3 + $0xc8] sm:$0xff] }
 0x145   : > { %v2810_v24 = vadd.f32 %v2778_v21, %v2724_v9  ;;  %v2864_v11 = vmul.f32 %v4882_v44, %v2837_v10  ;;  %v2301_v56 = vmul.f32 %v4823_v1, %v2263_v62  ;;  %v2231_v22 = vadd.f32 %v2199_v31, %v2129_v15  ;;  %v1959_v30 = vld [vmem:[#allocation3 + $0xc1] sm:$0xff]  ;;  %v5164_v51 = vld [vmem:[#allocation3 + $0xc9] sm:$0xff] }
 0x146   : > { %v2895_v29 = vadd.f32 %v2863_v36, %v2809_v28  ;;  %v2232_v17 = vadd.f32 %v2200_v61, %v2130_v16  ;;  %v2302_v6 = vmul.f32 %v4823_v1, %v5143_v3  ;;  %v3035_v4 = vmul.f32 %v4927_v41, %v5089_v14  ;;  %v2666_v9 = vld [vmem:[#allocation3 + $0xb0] sm:$0xff]  ;;  %v2061_v61 = vld [vmem:[#allocation3 + $0xc2] sm:$0xff] }
 0x147   : > { %v2896_v48 = vadd.f32 %v2864_v11, %v2810_v24  ;;  %v2950_v45 = vmul.f32 %v4916_v18, %v2923_v23  ;;  %v2403_v5 = vmul.f32 %v4836_v38, %v2365_v20  ;;  %v2333_v46 = vadd.f32 %v2301_v56, %v2231_v22  ;;  %v5176_v20 = vld [vmem:[#allocation3 + $0xca] sm:$0xff] }
 0x148   : > { %v2981_v52 = vadd.f32 %v2949_v40, %v2895_v29  ;;  %v2334_v7 = vadd.f32 %v2302_v6, %v2232_v17  ;;  %v2404_v33 = vmul.f32 %v4836_v38, %v2366_v39  ;;  %v3036_v2 = vmul.f32 %v4927_v41, %v3009_v50  ;;  %v2163_v50 = vld [vmem:[#allocation3 + $0xc3] sm:$0xff]  ;;  %v5188_v22 = vld [vmem:[#allocation3 + $0xcb] sm:$0xff] }
 0x149   : > { %v2982_v27 = vadd.f32 %v2950_v45, %v2896_v48  ;;  %v2505_v14 = vmul.f32 %v4847_v8, %v2467_v34  ;;  %v2506_v49 = vmul.f32 %v4847_v8, %v2468_v63  ;;  %v2435_v42 = vadd.f32 %v2403_v5, %v2333_v46  ;;  %v2838_v17 = vld [vmem:[#allocation3 + $0xb2] sm:$0xff]  ;;  %v2265_v45 = vld [vmem:[#allocation3 + $0xc4] sm:$0xff] }
 0x14a   : > { %v3067_v32 = vadd.f32 %v3035_v4, %v2981_v52  ;;  %v2436_v10 = vadd.f32 %v2404_v33, %v2334_v7  ;;  %v2607_v25 = vmul.f32 %v4860_v53, %v2569_v54  ;;  %v2693_v36 = vmul.f32 %v4865_v12, %v5106_v37  ;;  %v2752_v37 = vld [vmem:[#allocation3 + $0xb1] sm:$0xff] }
 0x14b   : > { %v3068_v62 = vadd.f32 %v3036_v2, %v2982_v27  ;;  %v1895_v21 = vmul.f32 %v4764_v43, %v1857_v58  ;;  %v1896_v31 = vmul.f32 %v4764_v43, %v5158_v60  ;;  %v2537_v28 = vadd.f32 %v2505_v14, %v2435_v42  ;;  %v5196_v5 = vld [vmem:[#allocation3 + $0xcc] sm:$0xff]  ;;  %v3010_v52 = vld [vmem:[#allocation3 + $0xb4] sm:$0xff] }
 0x14c   : > { %3099 = vst.msk [vmem:[%s4947_s7 + $0x40] sm:$0xff] %vm312_vm0, %v3067_v32  ;;  %v2538_v23 = vadd.f32 %v2506_v49, %v2436_v10  ;;  %v2779_v15 = vmul.f32 %v4876_v35, %v5112_v0  ;;  %v2608_v16 = vmul.f32 %v4860_v53, %v2570_v47  ;;  %v1997_v43 = vmul.f32 %v4777_v19, %v1959_v30  ;;  %v2924_v54 = vld [vmem:[#allocation3 + $0xb3] sm:$0xff]  ;;  %v2367_v14 = vld [vmem:[#allocation3 + $0xc5] sm:$0xff] }
 0x14d   : > { %3100 = vst.msk [vmem:[%s4947_s7 + $0x48] sm:$0xff] %vm312_vm0, %v3068_v62  ;;  %v1927_v40 = vadd.f32 %v4788_v26, %v1895_v21  ;;  %v1928_v24 = vadd.f32 %v4788_v26, %v1896_v31  ;;  %v1998_v11 = vmul.f32 %v4777_v19, %v5164_v51  ;;  %v2639_v56 = vadd.f32 %v2607_v25, %v2537_v28  ;;  %v2368_v49 = vld [vmem:[#allocation3 + $0xcd] sm:$0xff]  ;;  %v1859_v21 = vld [vmem:[#allocation3 + $0xe0] sm:$0xff] }
 0x14e   : > { %v2865_v0 = vmul.f32 %v4882_v44, %v5123_v57  ;;  %v2640_v39 = vadd.f32 %v2608_v16, %v2538_v23  ;;  %v2694_v29 = vmul.f32 %v4865_v12, %v2666_v9  ;;  %v2099_v26 = vmul.f32 %v4796_v13, %v2061_v61  ;;  %v2469_v25 = vld [vmem:[#allocation3 + $0xc6] sm:$0xff]  ;;  %v2470_v30 = vld [vmem:[#allocation3 + $0xce] sm:$0xff] }
 0x14f   : > { %v2029_v6 = vadd.f32 %v1997_v43, %v1927_v40  ;;  %v2030_v34 = vadd.f32 %v1998_v11, %v1928_v24  ;;  %v2100_v63 = vmul.f32 %v4796_v13, %v5176_v20  ;;  %v2725_v4 = vadd.f32 %v2693_v36, %v2639_v56  ;;  %v2571_v9 = vld [vmem:[#allocation3 + $0xc7] sm:$0xff]  ;;  %v2572_v16 = vld [vmem:[#allocation3 + $0xcf] sm:$0xff] }
 0x150   : > { %v2951_v19 = vmul.f32 %v4916_v18, %v5135_v55  ;;  %v2726_v48 = vadd.f32 %v2694_v29, %v2640_v39  ;;  %v2780_v57 = vmul.f32 %v4876_v35, %v2752_v37  ;;  %v2201_v33 = vmul.f32 %v4809_v59, %v2163_v50  ;;  %v5211_v61 = vld [vmem:[#allocation3 + $0xe8] sm:$0xff]  ;;  %v2667_v39 = vld [vmem:[#allocation3 + $0xd0] sm:$0xff]  ;;  %v5219_v29 = vld [vmem:[%s5839_s2] ss:$0 sm:$0xff] }
 0x151   : > { %v2131_v46 = vadd.f32 %v2099_v26, %v2029_v6  ;;  %v2132_v7 = vadd.f32 %v2100_v63, %v2030_v34  ;;  %v2202_v58 = vmul.f32 %v4809_v59, %v5188_v22  ;;  %v2811_v13 = vadd.f32 %v2779_v15, %v2725_v4  ;;  %v1961_v43 = vld [vmem:[#allocation3 + $0xe1] sm:$0xff]  ;;  %v5222_v50 = vld [vmem:[#allocation3 + $0xe9] sm:$0xff] }
 0x152   : > { %v3037_v27 = vmul.f32 %v4927_v41, %v5143_v3  ;;  %v2812_v55 = vadd.f32 %v2780_v57, %v2726_v48  ;;  %v2866_v2 = vmul.f32 %v4882_v44, %v2838_v17  ;;  %v2303_v42 = vmul.f32 %v4823_v1, %v2265_v45  ;;  %v2063_v26 = vld [vmem:[#allocation3 + $0xe2] sm:$0xff]  ;;  %v5230_v48 = vld [vmem:[%s5841_s4] ss:$0 sm:$0xff]  ;;  %v5236_v45 = vld [vmem:[%s5839_s2 + $0x1] ss:$0 sm:$0xff] }
 0x153   : > { %v2233_v47 = vadd.f32 %v2201_v33, %v2131_v46  ;;  %v2234_v32 = vadd.f32 %v2202_v58, %v2132_v7  ;;  %v2304_v10 = vmul.f32 %v4823_v1, %v5196_v5  ;;  %v2897_v62 = vadd.f32 %v2865_v0, %v2811_v13  ;;  %v2165_v58 = vld [vmem:[#allocation3 + $0xe3] sm:$0xff] }
 0x154   : > { %v2898_v59 = vadd.f32 %v2866_v2, %v2812_v55  ;;  %v2952_v36 = vmul.f32 %v4916_v18, %v2924_v54  ;;  %v3038_v3 = vmul.f32 %v4927_v41, %v3010_v52  ;;  %v2405_v23 = vmul.f32 %v4836_v38, %v2367_v14  ;;  %v5239_v54 = vld [vmem:[#allocation3 + $0xea] sm:$0xff]  ;;  %v2839_v55 = vld [vmem:[#allocation3 + $0xd2] sm:$0xff]  ;;  %v5254_v14 = vld [vmem:[%s5839_s2 + $0x2] ss:$0 sm:$0xff] }
 0x155   : > { %v2335_v31 = vadd.f32 %v2303_v42, %v2233_v47  ;;  %v2336_v28 = vadd.f32 %v2304_v10, %v2234_v32  ;;  %v2406_v15 = vmul.f32 %v4836_v38, %v2368_v49  ;;  %v2983_v1 = vadd.f32 %v2951_v19, %v2897_v62  ;;  %v2753_v19 = vld [vmem:[#allocation3 + $0xd1] sm:$0xff]  ;;  %v2267_v10 = vld [vmem:[#allocation3 + $0xe4] sm:$0xff] }
 0x156   : > { %v2984_v37 = vadd.f32 %v2952_v36, %v2898_v59  ;;  %v2507_v40 = vmul.f32 %v4847_v8, %v2469_v25  ;;  %v2508_v24 = vmul.f32 %v4847_v8, %v2470_v30  ;;  %v2609_v0 = vmul.f32 %v4860_v53, %v2571_v9  ;;  %v2925_v62 = vld [vmem:[#allocation3 + $0xd3] sm:$0xff]  ;;  %v5267_v36 = vld [vmem:[%s5839_s2 + $0x3] ss:$0 sm:$0xff] }
 0x157   : > { %v2437_v11 = vadd.f32 %v2405_v23, %v2335_v31  ;;  %v2438_v56 = vadd.f32 %v2406_v15, %v2336_v28  ;;  %v1897_v38 = vmul.f32 %v5219_v29, %v1859_v21  ;;  %v3069_v17 = vadd.f32 %v3037_v27, %v2983_v1  ;;  %v5270_v9 = vld [vmem:[#allocation3 + $0xec] sm:$0xff] }
 0x158   : > { %v3070_v6 = vadd.f32 %v3038_v3, %v2984_v37  ;;  %v2610_v8 = vmul.f32 %v4860_v53, %v2572_v16  ;;  %v1898_v34 = vmul.f32 %v5219_v29, %v5211_v61  ;;  %v1999_v53 = vmul.f32 %v5236_v45, %v1961_v43  ;;  %v2369_v28 = vld [vmem:[#allocation3 + $0xe5] sm:$0xff]  ;;  %v3011_v16 = vld [vmem:[#allocation3 + $0xd4] sm:$0xff]  ;;  %v5280_v37 = vld [vmem:[%s5839_s2 + $0x4] ss:$0 sm:$0xff] }
 0x159   : > { %v2539_v63 = vadd.f32 %v2507_v40, %v2437_v11  ;;  %v2540_v4 = vadd.f32 %v2508_v24, %v2438_v56  ;;  %v1929_v57 = vadd.f32 %v5230_v48, %v1897_v38  ;;  %3101 = vst.msk [vmem:[%s4947_s7 + $0x50] sm:$0xff] %vm312_vm0, %v3069_v17  ;;  %v2695_v52 = vmul.f32 %v4865_v12, %v5158_v60  ;;  %v5257_v60 = vld [vmem:[#allocation3 + $0xeb] sm:$0xff]  ;;  %v5291_v17 = vld [vmem:[%s5839_s2 + $0x5] ss:$0 sm:$0xff] }
 0x15a   : > { %3102 = vst.msk [vmem:[%s4947_s7 + $0x58] sm:$0xff] %vm312_vm0, %v3070_v6  ;;  %v2696_v46 = vmul.f32 %v4865_v12, %v2667_v39  ;;  %v1930_v7 = vadd.f32 %v5230_v48, %v1898_v34  ;;  %v2000_v33 = vmul.f32 %v5236_v45, %v5222_v50  ;;  %v2101_v49 = vmul.f32 %v5254_v14, %v2063_v26  ;;  %v2370_v24 = vld [vmem:[#allocation3 + $0xed] sm:$0xff] }
 0x15b   : > { %v2641_v13 = vadd.f32 %v2609_v0, %v2539_v63  ;;  %v2642_v27 = vadd.f32 %v2610_v8, %v2540_v4  ;;  %v2031_v2 = vadd.f32 %v1999_v53, %v1929_v57  ;;  %v2781_v12 = vmul.f32 %v4876_v35, %v5164_v51  ;;  %v2471_v56 = vld [vmem:[#allocation3 + $0xe6] sm:$0xff]  ;;  %v2472_v8 = vld [vmem:[#allocation3 + $0xee] sm:$0xff] }
 0x15c   : > { %v2782_v47 = vmul.f32 %v4876_v35, %v2753_v19  ;;  %v2032_v32 = vadd.f32 %v2000_v33, %v1930_v7  ;;  %v2102_v42 = vmul.f32 %v5254_v14, %v5239_v54  ;;  %v2203_v3 = vmul.f32 %v5267_v36, %v2165_v58  ;;  %v2573_v34 = vld [vmem:[#allocation3 + $0xe7] sm:$0xff]  ;;  %v2574_v33 = vld [vmem:[#allocation3 + $0xef] sm:$0xff] }
 0x15d   : > { %v2727_v25 = vadd.f32 %v2695_v52, %v2641_v13  ;;  %v2728_v30 = vadd.f32 %v2696_v46, %v2642_v27  ;;  %v2133_v59 = vadd.f32 %v2101_v49, %v2031_v2  ;;  %v2867_v35 = vmul.f32 %v4882_v44, %v5176_v20  ;;  %v5298_v19 = vld [vmem:[#allocation3 + $0x108] sm:$0xff]  ;;  %v5303_v46 = vld [vmem:[%s5839_s2 + $0x6] ss:$0 sm:$0xff]  ;;  %v5310_v13 = vld [vmem:[%s5839_s2 + $0x7] ss:$0 sm:$0xff] }
 0x15e   : > { %v2868_v51 = vmul.f32 %v4882_v44, %v2839_v55  ;;  %v2134_v21 = vadd.f32 %v2102_v42, %v2032_v32  ;;  %v2204_v31 = vmul.f32 %v5267_v36, %v5257_v60  ;;  %v2305_v40 = vmul.f32 %v5280_v37, %v2267_v10  ;;  %v1963_v58 = vld [vmem:[#allocation3 + $0x101] sm:$0xff]  ;;  %v5314_v2 = vld [vmem:[#allocation3 + $0x109] sm:$0xff] }
 0x15f   : > { %v2813_v23 = vadd.f32 %v2781_v12, %v2727_v25  ;;  %v2814_v15 = vadd.f32 %v2782_v47, %v2728_v30  ;;  %v2235_v1 = vadd.f32 %v2203_v3, %v2133_v59  ;;  %v2953_v44 = vmul.f32 %v4916_v18, %v5188_v22  ;;  %v1861_v22 = vld [vmem:[#allocation3 + $0x100] sm:$0xff]  ;;  %v2668_v32 = vld [vmem:[#allocation3 + $0xf0] sm:$0xff] }
 0x160   : > { %v2954_v20 = vmul.f32 %v4916_v18, %v2925_v62  ;;  %v2236_v43 = vadd.f32 %v2204_v31, %v2134_v21  ;;  %v2306_v11 = vmul.f32 %v5280_v37, %v5270_v9  ;;  %v2407_v6 = vmul.f32 %v5291_v17, %v2369_v28  ;;  %v2065_v10 = vld [vmem:[#allocation3 + $0x102] sm:$0xff]  ;;  %v5321_v3 = vld [vmem:[#allocation3 + $0x10a] sm:$0xff] }
 0x161   : > { %v2899_v0 = vadd.f32 %v2867_v35, %v2813_v23  ;;  %v2900_v39 = vadd.f32 %v2868_v51, %v2814_v15  ;;  %v2337_v38 = vadd.f32 %v2305_v40, %v2235_v1  ;;  %v3039_v18 = vmul.f32 %v4927_v41, %v5196_v5  ;;  %v5330_v51 = vld [vmem:[%s5839_s2 + $0x8] ss:$0 sm:$0xff]  ;;  %v2754_v31 = vld [vmem:[#allocation3 + $0xf1] sm:$0xff] }
 0x162   : > { %v3040_v26 = vmul.f32 %v4927_v41, %v3011_v16  ;;  %v2338_v63 = vadd.f32 %v2306_v11, %v2236_v43  ;;  %v2408_v4 = vmul.f32 %v5291_v17, %v2370_v24  ;;  %v2509_v7 = vmul.f32 %v5303_v46, %v2471_v56  ;;  %v2167_v15 = vld [vmem:[#allocation3 + $0x103] sm:$0xff]  ;;  %v2840_v11 = vld [vmem:[#allocation3 + $0xf2] sm:$0xff] }
 0x163   : > { %v2985_v57 = vadd.f32 %v2953_v44, %v2899_v0  ;;  %v2986_v53 = vadd.f32 %v2954_v20, %v2900_v39  ;;  %v2439_v52 = vadd.f32 %v2407_v6, %v2337_v38  ;;  %v2510_v41 = vmul.f32 %v5303_v46, %v2472_v8  ;;  %v5339_v44 = vld [vmem:[#allocation3 + $0x10b] sm:$0xff] }
 0x164   : > { %v2440_v5 = vadd.f32 %v2408_v4, %v2338_v63  ;;  %v2611_v27 = vmul.f32 %v5310_v13, %v2573_v34  ;;  %v1899_v55 = vmul.f32 %v5219_v29, %v1861_v22  ;;  %v1900_v42 = vmul.f32 %v5219_v29, %v5298_v19  ;;  %v2269_v39 = vld [vmem:[#allocation3 + $0x104] sm:$0xff]  ;;  %v5352_v22 = vld [vmem:[#allocation3 + $0x10c] sm:$0xff] }
 0x165   : > { %v3071_v49 = vadd.f32 %v3039_v18, %v2985_v57  ;;  %v3072_v12 = vadd.f32 %v3040_v26, %v2986_v53  ;;  %v2541_v47 = vadd.f32 %v2509_v7, %v2439_v52  ;;  %v2612_v30 = vmul.f32 %v5310_v13, %v2574_v33  ;;  %v5357_v26 = vld [vmem:[%s5839_s2 + $0xa] ss:$0 sm:$0xff]  ;;  %v2926_v63 = vld [vmem:[#allocation3 + $0xf3] sm:$0xff] }
 0x166   : > { %v2542_v25 = vadd.f32 %v2510_v41, %v2440_v5  ;;  %v1931_v62 = vadd.f32 %v5230_v48, %v1899_v55  ;;  %v2001_v59 = vmul.f32 %v5236_v45, %v1963_v58  ;;  %v2697_v21 = vmul.f32 %v5330_v51, %v5211_v61  ;;  %v5344_v61 = vld [vmem:[%s5839_s2 + $0x9] ss:$0 sm:$0xff]  ;;  %v2372_v5 = vld [vmem:[#allocation3 + $0x10d] sm:$0xff] }
 0x167   : > { %3103 = vst.msk [vmem:[%s4947_s7 + $0x60] sm:$0xff] %vm312_vm0, %v3071_v49  ;;  %3104 = vst.msk [vmem:[%s4947_s7 + $0x68] sm:$0xff] %vm312_vm0, %v3072_v12  ;;  %v2643_v35 = vadd.f32 %v2611_v27, %v2541_v47  ;;  %v1932_v28 = vadd.f32 %v5230_v48, %v1900_v42  ;;  %v2002_v23 = vmul.f32 %v5236_v45, %v5314_v2  ;;  %v2371_v53 = vld [vmem:[#allocation3 + $0x105] sm:$0xff]  ;;  %v3012_v55 = vld [vmem:[#allocation3 + $0xf4] sm:$0xff] }
 0x168   : > { %v2644_v16 = vadd.f32 %v2612_v30, %v2542_v25  ;;  %v2698_v1 = vmul.f32 %v5330_v51, %v2668_v32  ;;  %v2033_v40 = vadd.f32 %v2001_v59, %v1931_v62  ;;  %v2103_v24 = vmul.f32 %v5254_v14, %v2065_v10  ;;  %v5368_v27 = vld [vmem:[%s5839_s2 + $0xb] ss:$0 sm:$0xff]  ;;  %v2474_v30 = vld [vmem:[#allocation3 + $0x10e] sm:$0xff] }
 0x169   : > { %v2729_v20 = vadd.f32 %v2697_v21, %v2643_v35  ;;  %v2783_v43 = vmul.f32 %v5344_v61, %v5222_v50  ;;  %v2034_v56 = vadd.f32 %v2002_v23, %v1932_v28  ;;  %v2104_v0 = vmul.f32 %v5254_v14, %v5321_v3  ;;  %v2473_v47 = vld [vmem:[#allocation3 + $0x106] sm:$0xff] }
 0x16a   : > { %v2730_v38 = vadd.f32 %v2698_v1, %v2644_v16  ;;  %v2784_v6 = vmul.f32 %v5344_v61, %v2754_v31  ;;  %v2135_v8 = vadd.f32 %v2103_v24, %v2033_v40  ;;  %v2205_v34 = vmul.f32 %v5267_v36, %v2167_v15  ;;  %v2575_v62 = vld [vmem:[#allocation3 + $0x107] sm:$0xff]  ;;  %v2576_v24 = vld [vmem:[#allocation3 + $0x10f] sm:$0xff] }
 0x16b   : > { %v2815_v18 = vadd.f32 %v2783_v43, %v2729_v20  ;;  %v2869_v50 = vmul.f32 %v5357_v26, %v5239_v54  ;;  %v2136_v4 = vadd.f32 %v2104_v0, %v2034_v56  ;;  %v2206_v57 = vmul.f32 %v5267_v36, %v5339_v44  ;;  %v5379_v35 = vld [vmem:[%s5839_s2 + $0xc] ss:$0 sm:$0xff]  ;;  %v1863_v28 = vld [vmem:[#allocation3 + $0x120] sm:$0xff] }
 0x16c   : > { %v2816_v52 = vadd.f32 %v2784_v6, %v2730_v38  ;;  %v2870_v7 = vmul.f32 %v5357_v26, %v2840_v11  ;;  %v2237_v33 = vadd.f32 %v2205_v34, %v2135_v8  ;;  %v2307_v58 = vmul.f32 %v5280_v37, %v2269_v39  ;;  %v5384_v23 = vld [vmem:[#allocation3 + $0x128] sm:$0xff]  ;;  %v2669_v6 = vld [vmem:[#allocation3 + $0x110] sm:$0xff] }
 0x16d   : > { %v2901_v41 = vadd.f32 %v2869_v50, %v2815_v18  ;;  %v2955_v54 = vmul.f32 %v5368_v27, %v5257_v60  ;;  %v2238_v49 = vadd.f32 %v2206_v57, %v2136_v4  ;;  %v2308_v12 = vmul.f32 %v5280_v37, %v5352_v22  ;;  %v1965_v20 = vld [vmem:[#allocation3 + $0x121] sm:$0xff]  ;;  %v5390_v0 = vld [vmem:[#allocation3 + $0x129] sm:$0xff] }
 0x16e   : > { %v2902_v32 = vadd.f32 %v2870_v7, %v2816_v52  ;;  %v2956_v42 = vmul.f32 %v5368_v27, %v2926_v63  ;;  %v2339_v10 = vadd.f32 %v2307_v58, %v2237_v33  ;;  %v2409_v25 = vmul.f32 %v5291_v17, %v2371_v53  ;;  %v2067_v18 = vld [vmem:[#allocation3 + $0x122] sm:$0xff]  ;;  %v5401_v53 = vld [vmem:[#allocation3 + $0x12a] sm:$0xff] }
 0x16f   : > { %v2987_v59 = vadd.f32 %v2955_v54, %v2901_v41  ;;  %v3041_v60 = vmul.f32 %v5379_v35, %v5270_v9  ;;  %v2340_v21 = vadd.f32 %v2308_v12, %v2238_v49  ;;  %v2410_v31 = vmul.f32 %v5291_v17, %v2372_v5  ;;  %v2755_v7 = vld [vmem:[#allocation3 + $0x111] sm:$0xff]  ;;  %v2169_v41 = vld [vmem:[#allocation3 + $0x123] sm:$0xff] }
 0x170   : > { %v2988_v15 = vadd.f32 %v2956_v42, %v2902_v32  ;;  %v3042_v16 = vmul.f32 %v5379_v35, %v3012_v55  ;;  %v2441_v1 = vadd.f32 %v2409_v25, %v2339_v10  ;;  %v2511_v40 = vmul.f32 %v5303_v46, %v2473_v47  ;;  %v5413_v12 = vld [vmem:[#allocation3 + $0x12b] sm:$0xff] }
 0x171   : > { %v3073_v43 = vadd.f32 %v3041_v60, %v2987_v59  ;;  %v2442_v11 = vadd.f32 %v2410_v31, %v2340_v21  ;;  %v2512_v9 = vmul.f32 %v5303_v46, %v2474_v30  ;;  %v2613_v56 = vmul.f32 %v5310_v13, %v2575_v62  ;;  %v2841_v32 = vld [vmem:[#allocation3 + $0x112] sm:$0xff]  ;;  %v2271_v30 = vld [vmem:[#allocation3 + $0x124] sm:$0xff] }
 0x172   : > { %v3074_v39 = vadd.f32 %v3042_v16, %v2988_v15  ;;  %v2543_v38 = vadd.f32 %v2511_v40, %v2441_v1  ;;  %v1901_v8 = vmul.f32 %v5219_v29, %v1863_v28  ;;  %v1902_v34 = vmul.f32 %v5219_v29, %v5384_v23  ;;  %v5421_v21 = vld [vmem:[#allocation3 + $0x12c] sm:$0xff] }
 0x173   : > { %3105 = vst.msk [vmem:[%s4947_s7 + $0x70] sm:$0xff] %vm312_vm0, %v3073_v43  ;;  %v2544_v50 = vadd.f32 %v2512_v9, %v2442_v11  ;;  %v2699_v63 = vmul.f32 %v5330_v51, %v5298_v19  ;;  %v2614_v4 = vmul.f32 %v5310_v13, %v2576_v24  ;;  %v2003_v57 = vmul.f32 %v5236_v45, %v1965_v20  ;;  %v2927_v28 = vld [vmem:[#allocation3 + $0x113] sm:$0xff]  ;;  %v2373_v40 = vld [vmem:[#allocation3 + $0x125] sm:$0xff] }
 0x174   : > { %3106 = vst.msk [vmem:[%s4947_s7 + $0x78] sm:$0xff] %vm312_vm0, %v3074_v39  ;;  %v2645_v52 = vadd.f32 %v2613_v56, %v2543_v38  ;;  %v1933_v33 = vadd.f32 %v5230_v48, %v1901_v8  ;;  %v1934_v58 = vadd.f32 %v5230_v48, %v1902_v34  ;;  %v2004_v5 = vmul.f32 %v5236_v45, %v5390_v0  ;;  %v2374_v11 = vld [vmem:[#allocation3 + $0x12d] sm:$0xff] }
 0x175   : > { %v2785_v19 = vmul.f32 %v5344_v61, %v5314_v2  ;;  %v2646_v54 = vadd.f32 %v2614_v4, %v2544_v50  ;;  %v2700_v55 = vmul.f32 %v5330_v51, %v2669_v6  ;;  %v2105_v49 = vmul.f32 %v5254_v14, %v2067_v18  ;;  %v3013_v56 = vld [vmem:[#allocation3 + $0x114] sm:$0xff]  ;;  %v2475_v8 = vld [vmem:[#allocation3 + $0x126] sm:$0xff] }
 0x176   : > { %v2731_v47 = vadd.f32 %v2699_v63, %v2645_v52  ;;  %v2035_v42 = vadd.f32 %v2003_v57, %v1933_v33  ;;  %v2036_v10 = vadd.f32 %v2004_v5, %v1934_v58  ;;  %v2106_v25 = vmul.f32 %v5254_v14, %v5401_v53  ;;  %v2476_v34 = vld [vmem:[#allocation3 + $0x12e] sm:$0xff]  ;;  %v1865_v58 = vld [vmem:[#allocation3 + $0x140] sm:$0xff] }
 0x177   : > { %v2871_v62 = vmul.f32 %v5357_v26, %v5321_v3  ;;  %v2732_v59 = vadd.f32 %v2700_v55, %v2646_v54  ;;  %v2786_v2 = vmul.f32 %v5344_v61, %v2755_v7  ;;  %v2207_v60 = vmul.f32 %v5267_v36, %v2169_v41  ;;  %v2577_v4 = vld [vmem:[#allocation3 + $0x127] sm:$0xff]  ;;  %v2578_v55 = vld [vmem:[#allocation3 + $0x12f] sm:$0xff] }
 0x178   : > { %v2817_v31 = vadd.f32 %v2785_v19, %v2731_v47  ;;  %v2137_v15 = vadd.f32 %v2105_v49, %v2035_v42  ;;  %v2138_v16 = vadd.f32 %v2106_v25, %v2036_v10  ;;  %v2208_v1 = vmul.f32 %v5267_v36, %v5413_v12  ;;  %v5436_v5 = vld [vmem:[#allocation3 + $0x148] sm:$0xff] }
 0x179   : > { %v2957_v24 = vmul.f32 %v5368_v27, %v5339_v44  ;;  %v2818_v20 = vadd.f32 %v2786_v2, %v2732_v59  ;;  %v2872_v3 = vmul.f32 %v5357_v26, %v2841_v32  ;;  %v2309_v43 = vmul.f32 %v5280_v37, %v2271_v30  ;;  %v1967_v10 = vld [vmem:[#allocation3 + $0x141] sm:$0xff]  ;;  %v5442_v25 = vld [vmem:[#allocation3 + $0x149] sm:$0xff] }
 0x17a   : > { %v2903_v9 = vadd.f32 %v2871_v62, %v2817_v31  ;;  %v2239_v39 = vadd.f32 %v2207_v60, %v2137_v15  ;;  %v2240_v38 = vadd.f32 %v2208_v1, %v2138_v16  ;;  %v2310_v6 = vmul.f32 %v5280_v37, %v5421_v21  ;;  %v2670_v59 = vld [vmem:[#allocation3 + $0x130] sm:$0xff]  ;;  %v2069_v1 = vld [vmem:[#allocation3 + $0x142] sm:$0xff] }
 0x17b   : > { %v3043_v18 = vmul.f32 %v5379_v35, %v5352_v22  ;;  %v2904_v50 = vadd.f32 %v2872_v3, %v2818_v20  ;;  %v2958_v44 = vmul.f32 %v5368_v27, %v2927_v28  ;;  %v2411_v63 = vmul.f32 %v5291_v17, %v2373_v40  ;;  %v5454_v40 = vld [vmem:[#allocation3 + $0x14a] sm:$0xff] }
 0x17c   : > { %v2989_v57 = vadd.f32 %v2957_v24, %v2903_v9  ;;  %v2341_v52 = vadd.f32 %v2309_v43, %v2239_v39  ;;  %v2342_v7 = vadd.f32 %v2310_v6, %v2240_v38  ;;  %v2412_v33 = vmul.f32 %v5291_v17, %v2374_v11  ;;  %v2171_v39 = vld [vmem:[#allocation3 + $0x143] sm:$0xff]  ;;  %v5466_v38 = vld [vmem:[#allocation3 + $0x14b] sm:$0xff] }
 0x17d   : > { %v2990_v41 = vadd.f32 %v2958_v44, %v2904_v50  ;;  %v3044_v19 = vmul.f32 %v5379_v35, %v3013_v56  ;;  %v2513_v22 = vmul.f32 %v5303_v46, %v2475_v8  ;;  %v2514_v54 = vmul.f32 %v5303_v46, %v2476_v34  ;;  %v2842_v6 = vld [vmem:[#allocation3 + $0x132] sm:$0xff] }
 0x17e   : > { %v3075_v49 = vadd.f32 %v3043_v18, %v2989_v57  ;;  %v2443_v47 = vadd.f32 %v2411_v63, %v2341_v52  ;;  %v2444_v32 = vadd.f32 %v2412_v33, %v2342_v7  ;;  %v2615_v42 = vmul.f32 %v5310_v13, %v2577_v4  ;;  %v2273_v57 = vld [vmem:[#allocation3 + $0x144] sm:$0xff]  ;;  %v5474_v52 = vld [vmem:[#allocation3 + $0x14c] sm:$0xff]  ;;  %v3014_v33 = vld [vmem:[#allocation3 + $0x134] sm:$0xff] }
 0x17f   : > { %v3076_v30 = vadd.f32 %v3044_v19, %v2990_v41  ;;  %v2701_v62 = vmul.f32 %v5330_v51, %v5384_v23  ;;  %v1903_v2 = vmul.f32 %v5219_v29, %v1865_v58  ;;  %v1904_v60 = vmul.f32 %v5219_v29, %v5436_v5  ;;  %v2756_v23 = vld [vmem:[#allocation3 + $0x131] sm:$0xff] }
 0x180   : > { %3107 = vst.msk [vmem:[%s4947_s7 + $0x80] sm:$0xff] %vm312_vm0, %v3075_v49  ;;  %v2545_v31 = vadd.f32 %v2513_v22, %v2443_v47  ;;  %v2546_v28 = vadd.f32 %v2514_v54, %v2444_v32  ;;  %v2787_v15 = vmul.f32 %v5344_v61, %v5390_v0  ;;  %v2616_v16 = vmul.f32 %v5310_v13, %v2578_v55  ;;  %v2928_v7 = vld [vmem:[#allocation3 + $0x133] sm:$0xff]  ;;  %v2375_v47 = vld [vmem:[#allocation3 + $0x145] sm:$0xff] }
 0x181   : > { %3108 = vst.msk [vmem:[%s4947_s7 + $0x88] sm:$0xff] %vm312_vm0, %v3076_v30  ;;  %v1935_v24 = vadd.f32 %v5230_v48, %v1903_v2  ;;  %v1936_v20 = vadd.f32 %v5230_v48, %v1904_v60  ;;  %v2005_v3 = vmul.f32 %v5236_v45, %v1967_v10  ;;  %v2006_v43 = vmul.f32 %v5236_v45, %v5442_v25  ;;  %v2376_v32 = vld [vmem:[#allocation3 + $0x14d] sm:$0xff] }
 0x182   : > { %v2647_v11 = vadd.f32 %v2615_v42, %v2545_v31  ;;  %v2873_v0 = vmul.f32 %v5357_v26, %v5401_v53  ;;  %v2648_v9 = vadd.f32 %v2616_v16, %v2546_v28  ;;  %v2702_v56 = vmul.f32 %v5330_v51, %v2670_v59  ;;  %v2477_v59 = vld [vmem:[#allocation3 + $0x146] sm:$0xff]  ;;  %v2478_v2 = vld [vmem:[#allocation3 + $0x14e] sm:$0xff] }
 0x183   : > { %v2037_v8 = vadd.f32 %v2005_v3, %v1935_v24  ;;  %v2038_v34 = vadd.f32 %v2006_v43, %v1936_v20  ;;  %v2107_v18 = vmul.f32 %v5254_v14, %v2069_v1  ;;  %v2108_v50 = vmul.f32 %v5254_v14, %v5454_v40  ;;  %v1867_v16 = vld [vmem:[#allocation3 + $0x160] sm:$0xff]  ;;  %v2580_v3 = vld [vmem:[#allocation3 + $0x14f] sm:$0xff] }
 0x184   : > { %v2733_v44 = vadd.f32 %v2701_v62, %v2647_v11  ;;  %v2959_v63 = vmul.f32 %v5368_v27, %v5413_v12  ;;  %v2734_v4 = vadd.f32 %v2702_v56, %v2648_v9  ;;  %v2788_v53 = vmul.f32 %v5344_v61, %v2756_v23  ;;  %v5489_v43 = vld [vmem:[#allocation3 + $0x168] sm:$0xff] }
 0x185   : > { %v2139_v58 = vadd.f32 %v2107_v18, %v2037_v8  ;;  %v2140_v41 = vadd.f32 %v2108_v50, %v2038_v34  ;;  %v2209_v19 = vmul.f32 %v5267_v36, %v2171_v39  ;;  %v2210_v22 = vmul.f32 %v5267_v36, %v5466_v38  ;;  %v1969_v39 = vld [vmem:[#allocation3 + $0x161] sm:$0xff]  ;;  %v2671_v18 = vld [vmem:[#allocation3 + $0x150] sm:$0xff] }
 0x186   : > { %v2819_v54 = vadd.f32 %v2787_v15, %v2733_v44  ;;  %v3045_v55 = vmul.f32 %v5379_v35, %v5421_v21  ;;  %v2820_v12 = vadd.f32 %v2788_v53, %v2734_v4  ;;  %v2874_v49 = vmul.f32 %v5357_v26, %v2842_v6  ;;  %v2579_v15 = vld [vmem:[#allocation3 + $0x147] sm:$0xff] }
 0x187   : > { %v2241_v42 = vadd.f32 %v2209_v19, %v2139_v58  ;;  %v2242_v10 = vadd.f32 %v2210_v22, %v2140_v41  ;;  %v2311_v30 = vmul.f32 %v5280_v37, %v2273_v57  ;;  %v2312_v62 = vmul.f32 %v5280_v37, %v5474_v52  ;;  %v5495_v44 = vld [vmem:[#allocation3 + $0x169] sm:$0xff]  ;;  %v2757_v41 = vld [vmem:[#allocation3 + $0x151] sm:$0xff] }
 0x188   : > { %v2905_v60 = vadd.f32 %v2873_v0, %v2819_v54  ;;  %v2906_v31 = vadd.f32 %v2874_v49, %v2820_v12  ;;  %v2960_v28 = vmul.f32 %v5368_v27, %v2928_v7  ;;  %v3046_v21 = vmul.f32 %v5379_v35, %v3014_v33  ;;  %v2071_v7 = vld [vmem:[#allocation3 + $0x162] sm:$0xff]  ;;  %v5502_v54 = vld [vmem:[#allocation3 + $0x16a] sm:$0xff] }
 0x189   : > { %v2343_v1 = vadd.f32 %v2311_v30, %v2241_v42  ;;  %v2344_v23 = vadd.f32 %v2312_v62, %v2242_v10  ;;  %v2413_v24 = vmul.f32 %v5291_v17, %v2375_v47  ;;  %v2414_v20 = vmul.f32 %v5291_v17, %v2376_v32  ;;  %v2173_v32 = vld [vmem:[#allocation3 + $0x163] sm:$0xff]  ;;  %v2843_v30 = vld [vmem:[#allocation3 + $0x152] sm:$0xff] }
 0x18a   : > { %v2991_v11 = vadd.f32 %v2959_v63, %v2905_v60  ;;  %v2992_v9 = vadd.f32 %v2960_v28, %v2906_v31  ;;  %v2515_v0 = vmul.f32 %v5303_v46, %v2477_v59  ;;  %v2516_v56 = vmul.f32 %v5303_v46, %v2478_v2  ;;  %v5515_v2 = vld [vmem:[#allocation3 + $0x16b] sm:$0xff] }
 0x18b   : > { %v2445_v6 = vadd.f32 %v2413_v24, %v2343_v1  ;;  %v2446_v8 = vadd.f32 %v2414_v20, %v2344_v23  ;;  %v2617_v34 = vmul.f32 %v5310_v13, %v2579_v15  ;;  %v1905_v50 = vmul.f32 %v5219_v29, %v1867_v16  ;;  %v2929_v1 = vld [vmem:[#allocation3 + $0x153] sm:$0xff] }
 0x18c   : > { %v3077_v4 = vadd.f32 %v3045_v55, %v2991_v11  ;;  %v3078_v53 = vadd.f32 %v3046_v21, %v2992_v9  ;;  %v2618_v63 = vmul.f32 %v5310_v13, %v2580_v3  ;;  %v1906_v57 = vmul.f32 %v5219_v29, %v5489_v43  ;;  %v2275_v21 = vld [vmem:[#allocation3 + $0x164] sm:$0xff]  ;;  %v5523_v20 = vld [vmem:[#allocation3 + $0x16c] sm:$0xff] }
 0x18d   : > { %v2547_v33 = vadd.f32 %v2515_v0, %v2445_v6  ;;  %v2548_v58 = vadd.f32 %v2516_v56, %v2446_v8  ;;  %v1937_v19 = vadd.f32 %v5230_v48, %v1905_v50  ;;  %v2007_v22 = vmul.f32 %v5236_v45, %v1969_v39  ;;  %v2377_v0 = vld [vmem:[#allocation3 + $0x165] sm:$0xff]  ;;  %v3015_v6 = vld [vmem:[#allocation3 + $0x154] sm:$0xff] }
 0x18e   : > { %3109 = vst.msk [vmem:[%s4947_s7 + $0x90] sm:$0xff] %vm312_vm0, %v3077_v4  ;;  %3110 = vst.msk [vmem:[%s4947_s7 + $0x98] sm:$0xff] %vm312_vm0, %v3078_v53  ;;  %v2703_v55 = vmul.f32 %v5330_v51, %v5436_v5  ;;  %v2704_v12 = vmul.f32 %v5330_v51, %v2671_v18  ;;  %v1938_v49 = vadd.f32 %v5230_v48, %v1906_v57  ;;  %v2378_v18 = vld [vmem:[#allocation3 + $0x16d] sm:$0xff] }
 0x18f   : > { %v2008_v47 = vmul.f32 %v5236_v45, %v5495_v44  ;;  %v2649_v42 = vadd.f32 %v2617_v34, %v2547_v33  ;;  %v2650_v10 = vadd.f32 %v2618_v63, %v2548_v58  ;;  %v2039_v62 = vadd.f32 %v2007_v22, %v1937_v19  ;;  %v2479_v63 = vld [vmem:[#allocation3 + $0x166] sm:$0xff] }
 0x190   : > { %v2109_v59 = vmul.f32 %v5254_v14, %v2071_v7  ;;  %v2789_v60 = vmul.f32 %v5344_v61, %v5442_v25  ;;  %v2790_v5 = vmul.f32 %v5344_v61, %v2757_v41  ;;  %v2110_v28 = vmul.f32 %v5254_v14, %v5502_v54  ;;  %v2480_v41 = vld [vmem:[#allocation3 + $0x16e] sm:$0xff]  ;;  %v1869_v22 = vld [vmem:[#allocation3 + $0x180] sm:$0xff] }
 0x191   : > { %v2040_v31 = vadd.f32 %v2008_v47, %v1938_v49  ;;  %v2735_v15 = vadd.f32 %v2703_v55, %v2649_v42  ;;  %v2736_v16 = vadd.f32 %v2704_v12, %v2650_v10  ;;  %v2211_v24 = vmul.f32 %v5267_v36, %v2173_v32  ;;  %v2581_v19 = vld [vmem:[#allocation3 + $0x167] sm:$0xff] }
 0x192   : > { %v2141_v23 = vadd.f32 %v2109_v59, %v2039_v62  ;;  %v2875_v3 = vmul.f32 %v5357_v26, %v5454_v40  ;;  %v2876_v25 = vmul.f32 %v5357_v26, %v2843_v30  ;;  %v2212_v9 = vmul.f32 %v5267_v36, %v5515_v2  ;;  %v5541_v47 = vld [vmem:[#allocation3 + $0x188] sm:$0xff] }
 0x193   : > { %v2142_v11 = vadd.f32 %v2110_v28, %v2040_v31  ;;  %v2821_v56 = vadd.f32 %v2789_v60, %v2735_v15  ;;  %v2822_v39 = vadd.f32 %v2790_v5, %v2736_v16  ;;  %v2313_v34 = vmul.f32 %v5280_v37, %v2275_v21  ;;  %v2582_v62 = vld [vmem:[#allocation3 + $0x16f] sm:$0xff]  ;;  %v1971_v59 = vld [vmem:[#allocation3 + $0x181] sm:$0xff] }
 0x194   : > { %v2243_v8 = vadd.f32 %v2211_v24, %v2141_v23  ;;  %v2961_v50 = vmul.f32 %v5368_v27, %v5466_v38  ;;  %v2962_v4 = vmul.f32 %v5368_v27, %v2929_v1  ;;  %v2314_v53 = vmul.f32 %v5280_v37, %v5523_v20  ;;  %v5547_v28 = vld [vmem:[#allocation3 + $0x189] sm:$0xff] }
 0x195   : > { %v2244_v40 = vadd.f32 %v2212_v9, %v2142_v11  ;;  %v2907_v57 = vadd.f32 %v2875_v3, %v2821_v56  ;;  %v2908_v7 = vadd.f32 %v2876_v25, %v2822_v39  ;;  %v2415_v58 = vmul.f32 %v5291_v17, %v2377_v0  ;;  %v2672_v1 = vld [vmem:[#allocation3 + $0x170] sm:$0xff]  ;;  %v2073_v24 = vld [vmem:[#allocation3 + $0x182] sm:$0xff] }
 0x196   : > { %v2345_v33 = vadd.f32 %v2313_v34, %v2243_v8  ;;  %v3047_v55 = vmul.f32 %v5379_v35, %v5474_v52  ;;  %v3048_v38 = vmul.f32 %v5379_v35, %v3015_v6  ;;  %v2416_v49 = vmul.f32 %v5291_v17, %v2378_v18  ;;  %v5554_v0 = vld [vmem:[#allocation3 + $0x18a] sm:$0xff] }
 0x197   : > { %v2346_v12 = vadd.f32 %v2314_v53, %v2244_v40  ;;  %v2993_v32 = vadd.f32 %v2961_v50, %v2907_v57  ;;  %v2994_v42 = vadd.f32 %v2962_v4, %v2908_v7  ;;  %v2517_v30 = vmul.f32 %v5303_v46, %v2479_v63  ;;  %v2758_v6 = vld [vmem:[#allocation3 + $0x171] sm:$0xff]  ;;  %v2175_v18 = vld [vmem:[#allocation3 + $0x183] sm:$0xff] }
 0x198   : > { %v2447_v10 = vadd.f32 %v2415_v58, %v2345_v33  ;;  %v2518_v5 = vmul.f32 %v5303_v46, %v2480_v41  ;;  %v2619_v52 = vmul.f32 %v5310_v13, %v2581_v19  ;;  %v1907_v31 = vmul.f32 %v5219_v29, %v1869_v22  ;;  %v5567_v63 = vld [vmem:[#allocation3 + $0x18b] sm:$0xff] }
 0x199   : > { %v2448_v60 = vadd.f32 %v2416_v49, %v2346_v12  ;;  %v3079_v21 = vadd.f32 %v3047_v55, %v2993_v32  ;;  %v3080_v15 = vadd.f32 %v3048_v38, %v2994_v42  ;;  %v1908_v23 = vmul.f32 %v5219_v29, %v5541_v47  ;;  %v2277_v41 = vld [vmem:[#allocation3 + $0x184] sm:$0xff]  ;;  %v5575_v12 = vld [vmem:[#allocation3 + $0x18c] sm:$0xff] }
 0x19a   : > { %v2549_v16 = vadd.f32 %v2517_v30, %v2447_v10  ;;  %v2620_v25 = vmul.f32 %v5310_v13, %v2582_v62  ;;  %v1939_v11 = vadd.f32 %v5230_v48, %v1907_v31  ;;  %v2009_v9 = vmul.f32 %v5236_v45, %v1971_v59  ;;  %v2930_v42 = vld [vmem:[#allocation3 + $0x173] sm:$0xff]  ;;  %v2379_v30 = vld [vmem:[#allocation3 + $0x185] sm:$0xff] }
 0x19b   : > { %v2550_v3 = vadd.f32 %v2518_v5, %v2448_v60  ;;  %3111 = vst.msk [vmem:[%s4947_s7 + $0xa0] sm:$0xff] %vm312_vm0, %v3079_v21  ;;  %3112 = vst.msk [vmem:[%s4947_s7 + $0xa8] sm:$0xff] %vm312_vm0, %v3080_v15  ;;  %v2705_v39 = vmul.f32 %v5330_v51, %v5489_v43  ;;  %v1940_v8 = vadd.f32 %v5230_v48, %v1908_v23  ;;  %v2844_v43 = vld [vmem:[#allocation3 + $0x172] sm:$0xff] }
 0x19c   : > { %v2651_v56 = vadd.f32 %v2619_v52, %v2549_v16  ;;  %v2010_v34 = vmul.f32 %v5236_v45, %v5547_v28  ;;  %v2706_v4 = vmul.f32 %v5330_v51, %v2672_v1  ;;  %v2041_v40 = vadd.f32 %v2009_v9, %v1939_v11  ;;  %v2380_v52 = vld [vmem:[#allocation3 + $0x18d] sm:$0xff] }
 0x19d   : > { %v2652_v50 = vadd.f32 %v2620_v25, %v2550_v3  ;;  %v2111_v53 = vmul.f32 %v5254_v14, %v2073_v24  ;;  %v2791_v7 = vmul.f32 %v5344_v61, %v5495_v44  ;;  %v2112_v58 = vmul.f32 %v5254_v14, %v5554_v0  ;;  %v3016_v15 = vld [vmem:[#allocation3 + $0x174] sm:$0xff]  ;;  %v2481_v1 = vld [vmem:[#allocation3 + $0x186] sm:$0xff] }
 0x19e   : > { %v2737_v57 = vadd.f32 %v2705_v39, %v2651_v56  ;;  %v2042_v33 = vadd.f32 %v2010_v34, %v1940_v8  ;;  %v2792_v22 = vmul.f32 %v5344_v61, %v2758_v6  ;;  %v2213_v38 = vmul.f32 %v5267_v36, %v2175_v18  ;;  %v2482_v11 = vld [vmem:[#allocation3 + $0x18e] sm:$0xff]  ;;  %v1871_v8 = vld [vmem:[#allocation3 + $0x1a0] sm:$0xff] }
 0x19f   : > { %v2738_v19 = vadd.f32 %v2706_v4, %v2652_v50  ;;  %v2143_v55 = vadd.f32 %v2111_v53, %v2041_v40  ;;  %v2877_v32 = vmul.f32 %v5357_v26, %v5502_v54  ;;  %v2214_v10 = vmul.f32 %v5267_v36, %v5567_v63  ;;  %v2583_v9 = vld [vmem:[#allocation3 + $0x187] sm:$0xff]  ;;  %v2584_v53 = vld [vmem:[#allocation3 + $0x18f] sm:$0xff] }
 0x1a0   : > { %v2823_v49 = vadd.f32 %v2791_v7, %v2737_v57  ;;  %v2144_v44 = vadd.f32 %v2112_v58, %v2042_v33  ;;  %v2878_v59 = vmul.f32 %v5357_v26, %v2844_v43  ;;  %v2315_v5 = vmul.f32 %v5280_v37, %v2277_v41  ;;  %v5592_v34 = vld [vmem:[#allocation3 + $0x1a8] sm:$0xff] }
 0x1a1   : > { %v2824_v62 = vadd.f32 %v2792_v22, %v2738_v19  ;;  %v2245_v60 = vadd.f32 %v2213_v38, %v2143_v55  ;;  %v2963_v21 = vmul.f32 %v5368_v27, %v5515_v2  ;;  %v2316_v54 = vmul.f32 %v5280_v37, %v5575_v12  ;;  %v1973_v57 = vld [vmem:[#allocation3 + $0x1a1] sm:$0xff]  ;;  %v5598_v58 = vld [vmem:[#allocation3 + $0x1a9] sm:$0xff] }
 0x1a2   : > { %v2909_v31 = vadd.f32 %v2877_v32, %v2823_v49  ;;  %v2246_v16 = vadd.f32 %v2214_v10, %v2144_v44  ;;  %v2964_v24 = vmul.f32 %v5368_v27, %v2930_v42  ;;  %v2417_v25 = vmul.f32 %v5291_v17, %v2379_v30  ;;  %v2673_v22 = vld [vmem:[#allocation3 + $0x190] sm:$0xff]  ;;  %v2075_v49 = vld [vmem:[#allocation3 + $0x1a2] sm:$0xff] }
 0x1a3   : > { %v2910_v23 = vadd.f32 %v2878_v59, %v2824_v62  ;;  %v2347_v3 = vadd.f32 %v2315_v5, %v2245_v60  ;;  %v3049_v39 = vmul.f32 %v5379_v35, %v5523_v20  ;;  %v2418_v2 = vmul.f32 %v5291_v17, %v2380_v52  ;;  %v5609_v30 = vld [vmem:[#allocation3 + $0x1aa] sm:$0xff] }
 0x1a4   : > { %v2995_v56 = vadd.f32 %v2963_v21, %v2909_v31  ;;  %v2348_v6 = vadd.f32 %v2316_v54, %v2246_v16  ;;  %v3050_v50 = vmul.f32 %v5379_v35, %v3016_v15  ;;  %v2519_v40 = vmul.f32 %v5303_v46, %v2481_v1  ;;  %v2759_v59 = vld [vmem:[#allocation3 + $0x191] sm:$0xff]  ;;  %v2177_v52 = vld [vmem:[#allocation3 + $0x1a3] sm:$0xff] }
 0x1a5   : > { %v2996_v18 = vadd.f32 %v2964_v24, %v2910_v23  ;;  %v2449_v4 = vadd.f32 %v2417_v25, %v2347_v3  ;;  %v2520_v20 = vmul.f32 %v5303_v46, %v2482_v11  ;;  %v2621_v33 = vmul.f32 %v5310_v13, %v2583_v9  ;;  %v5621_v16 = vld [vmem:[#allocation3 + $0x1ab] sm:$0xff] }
 0x1a6   : > { %v3081_v7 = vadd.f32 %v3049_v39, %v2995_v56  ;;  %v2450_v43 = vadd.f32 %v2418_v2, %v2348_v6  ;;  %v1909_v55 = vmul.f32 %v5219_v29, %v1871_v8  ;;  %v1910_v38 = vmul.f32 %v5219_v29, %v5592_v34  ;;  %v2845_v1 = vld [vmem:[#allocation3 + $0x192] sm:$0xff]  ;;  %v2279_v3 = vld [vmem:[#allocation3 + $0x1a4] sm:$0xff] }
 0x1a7   : > { %v3082_v41 = vadd.f32 %v3050_v50, %v2996_v18  ;;  %v2551_v19 = vadd.f32 %v2519_v40, %v2449_v4  ;;  %v2707_v42 = vmul.f32 %v5330_v51, %v5541_v47  ;;  %v2622_v44 = vmul.f32 %v5310_v13, %v2584_v53  ;;  %v5629_v9 = vld [vmem:[#allocation3 + $0x1ac] sm:$0xff] }
 0x1a8   : > { %3113 = vst.msk [vmem:[%s4947_s7 + $0xb0] sm:$0xff] %vm312_vm0, %v3081_v7  ;;  %v2552_v32 = vadd.f32 %v2520_v20, %v2450_v43  ;;  %v2011_v10 = vmul.f32 %v5236_v45, %v1973_v57  ;;  %v1941_v60 = vadd.f32 %v5230_v48, %v1909_v55  ;;  %v1942_v29 = vadd.f32 %v5230_v48, %v1910_v38  ;;  %v2931_v39 = vld [vmem:[#allocation3 + $0x193] sm:$0xff]  ;;  %v2381_v18 = vld [vmem:[#allocation3 + $0x1a5] sm:$0xff] }
 0x1a9   : > { %3114 = vst.msk [vmem:[%s4947_s7 + $0xb8] sm:$0xff] %vm312_vm0, %v3082_v41  ;;  %v2653_v62 = vadd.f32 %v2621_v33, %v2551_v19  ;;  %v2012_v5 = vmul.f32 %v5236_v45, %v5598_v58  ;;  %v2793_v47 = vmul.f32 %v5344_v61, %v5547_v28  ;;  %v2708_v21 = vmul.f32 %v5330_v51, %v2673_v22  ;;  %v2382_v40 = vld [vmem:[#allocation3 + $0x1ad] sm:$0xff] }
 0x1aa   : > { %v2654_v31 = vadd.f32 %v2622_v44, %v2552_v32  ;;  %v2113_v15 = vmul.f32 %v5254_v14, %v2075_v49  ;;  %v2043_v23 = vadd.f32 %v2011_v10, %v1941_v60  ;;  %v2114_v48 = vmul.f32 %v5254_v14, %v5609_v30  ;;  %v3017_v57 = vld [vmem:[#allocation3 + $0x194] sm:$0xff]  ;;  %v2483_v33 = vld [vmem:[#allocation3 + $0x1a6] sm:$0xff] }
 0x1ab   : > { %v2739_v54 = vadd.f32 %v2707_v42, %v2653_v62  ;;  %v2044_v24 = vadd.f32 %v2012_v5, %v1942_v29  ;;  %v2879_v45 = vmul.f32 %v5357_v26, %v5554_v0  ;;  %v2794_v28 = vmul.f32 %v5344_v61, %v2759_v59  ;;  %v2484_v41 = vld [vmem:[#allocation3 + $0x1ae] sm:$0xff]  ;;  %v1873_v44 = vld [vmem:[#allocation3 + $0x1c0] sm:$0xff] }
 0x1ac   : > { %v2740_v25 = vadd.f32 %v2708_v21, %v2654_v31  ;;  %v2215_v11 = vmul.f32 %v5267_v36, %v2177_v52  ;;  %v2145_v6 = vadd.f32 %v2113_v15, %v2043_v23  ;;  %v2216_v8 = vmul.f32 %v5267_v36, %v5621_v16  ;;  %v2585_v55 = vld [vmem:[#allocation3 + $0x1a7] sm:$0xff]  ;;  %v2586_v60 = vld [vmem:[#allocation3 + $0x1af] sm:$0xff] }
 0x1ad   : > { %v2825_v56 = vadd.f32 %v2793_v47, %v2739_v54  ;;  %v2146_v2 = vadd.f32 %v2114_v48, %v2044_v24  ;;  %v2965_v14 = vmul.f32 %v5368_v27, %v5567_v63  ;;  %v2880_v0 = vmul.f32 %v5357_v26, %v2845_v1  ;;  %v5644_v10 = vld [vmem:[#allocation3 + $0x1c8] sm:$0xff]  ;;  %v2674_v54 = vld [vmem:[#allocation3 + $0x1b0] sm:$0xff]  ;;  %v5657_v1 = vld [vmem:[%s5839_s2] ss:$0 sm:$0xff] }
 0x1ae   : > { %v2826_v50 = vadd.f32 %v2794_v28, %v2740_v25  ;;  %v2317_v4 = vmul.f32 %v5280_v37, %v2279_v3  ;;  %v2247_v7 = vadd.f32 %v2215_v11, %v2145_v6  ;;  %v2318_v20 = vmul.f32 %v5280_v37, %v5629_v9  ;;  %v1975_v31 = vld [vmem:[#allocation3 + $0x1c1] sm:$0xff]  ;;  %v5667_v25 = vld [vmem:[#allocation3 + $0x1ca] sm:$0xff]  ;;  %v5674_v11 = vld [vmem:[%s5841_s4] ss:$0 sm:$0xff] }
 0x1af   : > { %v2911_v53 = vadd.f32 %v2879_v45, %v2825_v56  ;;  %v2248_v43 = vadd.f32 %v2216_v8, %v2146_v2  ;;  %v3051_v36 = vmul.f32 %v5379_v35, %v5575_v12  ;;  %v2966_v63 = vmul.f32 %v5368_v27, %v2931_v39  ;;  %v2077_v45 = vld [vmem:[#allocation3 + $0x1c2] sm:$0xff]  ;;  %v2760_v28 = vld [vmem:[#allocation3 + $0x1b1] sm:$0xff] }
 0x1b0   : > { %v2912_v19 = vadd.f32 %v2880_v0, %v2826_v50  ;;  %v2419_v22 = vmul.f32 %v5291_v17, %v2381_v18  ;;  %v2349_v49 = vadd.f32 %v2317_v4, %v2247_v7  ;;  %v2420_v42 = vmul.f32 %v5291_v17, %v2382_v40  ;;  %v5650_v17 = vld [vmem:[#allocation3 + $0x1c9] sm:$0xff]  ;;  %v2846_v4 = vld [vmem:[#allocation3 + $0x1b2] sm:$0xff] }
 0x1b1   : > { %v2997_v38 = vadd.f32 %v2965_v14, %v2911_v53  ;;  %v2350_v32 = vadd.f32 %v2318_v20, %v2248_v43  ;;  %v3052_v62 = vmul.f32 %v5379_v35, %v3017_v57  ;;  %v2521_v12 = vmul.f32 %v5303_v46, %v2483_v33  ;;  %v2179_v50 = vld [vmem:[#allocation3 + $0x1c3] sm:$0xff]  ;;  %v5689_v0 = vld [vmem:[#allocation3 + $0x1cb] sm:$0xff]  ;;  %v5694_v57 = vld [vmem:[%s5839_s2 + $0x2] ss:$0 sm:$0xff] }
 0x1b2   : > { %v2998_v37 = vadd.f32 %v2966_v63, %v2912_v19  ;;  %v2522_v59 = vmul.f32 %v5303_v46, %v2484_v41  ;;  %v2451_v5 = vadd.f32 %v2419_v22, %v2349_v49  ;;  %v2623_v47 = vmul.f32 %v5310_v13, %v2585_v55  ;;  %v2281_v41 = vld [vmem:[#allocation3 + $0x1c4] sm:$0xff]  ;;  %v2932_v19 = vld [vmem:[#allocation3 + $0x1b3] sm:$0xff] }
 0x1b3   : > { %v3083_v29 = vadd.f32 %v3051_v36, %v2997_v38  ;;  %v2452_v52 = vadd.f32 %v2420_v42, %v2350_v32  ;;  %v2709_v15 = vmul.f32 %v5330_v51, %v5592_v34  ;;  %v1911_v46 = vmul.f32 %v5657_v1, %v1873_v44  ;;  %v5702_v36 = vld [vmem:[#allocation3 + $0x1cc] sm:$0xff]  ;;  %v3018_v63 = vld [vmem:[#allocation3 + $0x1b4] sm:$0xff]  ;;  %v5707_v38 = vld [vmem:[%s5839_s2 + $0x3] ss:$0 sm:$0xff] }
 0x1b4   : > { %v3084_v21 = vadd.f32 %v3052_v62, %v2998_v37  ;;  %v1912_v23 = vmul.f32 %v5657_v1, %v5644_v10  ;;  %v2553_v24 = vadd.f32 %v2521_v12, %v2451_v5  ;;  %v2795_v3 = vmul.f32 %v5344_v61, %v5598_v58  ;;  %v5681_v58 = vld [vmem:[%s5839_s2 + $0x1] ss:$0 sm:$0xff]  ;;  %v2383_v37 = vld [vmem:[#allocation3 + $0x1c5] sm:$0xff]  ;;  %v2384_v62 = vld [vmem:[#allocation3 + $0x1cd] sm:$0xff] }
 0x1b5   : > { %3115 = vst.msk [vmem:[%s4947_s7 + $0xc0] sm:$0xff] %vm312_vm0, %v3083_v29  ;;  %v2554_v48 = vadd.f32 %v2522_v59, %v2452_v52  ;;  %v2624_v34 = vmul.f32 %v5310_v13, %v2586_v60  ;;  %v1943_v56 = vadd.f32 %v5674_v11, %v1911_v46  ;;  %v2013_v13 = vmul.f32 %v5681_v58, %v1975_v31  ;;  %v5718_v60 = vld [vmem:[%s5839_s2 + $0x4] ss:$0 sm:$0xff]  ;;  %v2485_v52 = vld [vmem:[#allocation3 + $0x1c6] sm:$0xff] }
 0x1b6   : > { %3116 = vst.msk [vmem:[%s4947_s7 + $0xc8] sm:$0xff] %vm312_vm0, %v3084_v21  ;;  %v1944_v39 = vadd.f32 %v5674_v11, %v1912_v23  ;;  %v2014_v6 = vmul.f32 %v5681_v58, %v5650_v17  ;;  %v2655_v2 = vadd.f32 %v2623_v47, %v2553_v24  ;;  %v2881_v8 = vmul.f32 %v5357_v26, %v5609_v30  ;;  %v2486_v47 = vld [vmem:[#allocation3 + $0x1ce] sm:$0xff]  ;;  %v5728_v24 = vld [vmem:[%s5839_s2 + $0x5] ss:$0 sm:$0xff] }
 0x1b7   : > { %v2656_v18 = vadd.f32 %v2624_v34, %v2554_v48  ;;  %v2710_v14 = vmul.f32 %v5330_v51, %v2674_v54  ;;  %v2045_v40 = vadd.f32 %v2013_v13, %v1943_v56  ;;  %v2115_v7 = vmul.f32 %v5694_v57, %v2077_v45  ;;  %v1875_v54 = vld [vmem:[#allocation3 + $0x1e0] sm:$0xff]  ;;  %v2588_v34 = vld [vmem:[#allocation3 + $0x1cf] sm:$0xff] }
 0x1b8   : > { %v2046_v53 = vadd.f32 %v2014_v6, %v1944_v39  ;;  %v2116_v43 = vmul.f32 %v5694_v57, %v5667_v25  ;;  %v2741_v30 = vadd.f32 %v2709_v15, %v2655_v2  ;;  %v2967_v51 = vmul.f32 %v5368_v27, %v5621_v16  ;;  %v2587_v15 = vld [vmem:[#allocation3 + $0x1c7] sm:$0xff] }
 0x1b9   : > { %v2742_v20 = vadd.f32 %v2710_v14, %v2656_v18  ;;  %v2796_v33 = vmul.f32 %v5344_v61, %v2760_v28  ;;  %v2147_v22 = vadd.f32 %v2115_v7, %v2045_v40  ;;  %v2217_v49 = vmul.f32 %v5707_v38, %v2179_v50  ;;  %v5732_v45 = vld [vmem:[#allocation3 + $0x1e8] sm:$0xff]  ;;  %v2675_v14 = vld [vmem:[#allocation3 + $0x1d0] sm:$0xff] }
 0x1ba   : > { %v2148_v55 = vadd.f32 %v2116_v43, %v2046_v53  ;;  %v2218_v16 = vmul.f32 %v5707_v38, %v5689_v0  ;;  %v2827_v32 = vadd.f32 %v2795_v3, %v2741_v30  ;;  %v3053_v61 = vmul.f32 %v5379_v35, %v5629_v9  ;;  %v1977_v13 = vld [vmem:[#allocation3 + $0x1e1] sm:$0xff] }
 0x1bb   : > { %v2828_v42 = vadd.f32 %v2796_v33, %v2742_v20  ;;  %v2882_v44 = vmul.f32 %v5357_v26, %v2846_v4  ;;  %v2249_v12 = vadd.f32 %v2217_v49, %v2147_v22  ;;  %v2319_v29 = vmul.f32 %v5718_v60, %v2281_v41  ;;  %v5748_v4 = vld [vmem:[#allocation3 + $0x1e9] sm:$0xff]  ;;  %v2761_v33 = vld [vmem:[#allocation3 + $0x1d1] sm:$0xff]  ;;  %v5764_v22 = vld [vmem:[%s5839_s2 + $0x8] ss:$0 sm:$0xff] }
 0x1bc   : > { %v2250_v59 = vadd.f32 %v2218_v16, %v2148_v55  ;;  %v2320_v5 = vmul.f32 %v5718_v60, %v5702_v36  ;;  %v2913_v9 = vadd.f32 %v2881_v8, %v2827_v32  ;;  %v2968_v26 = vmul.f32 %v5368_v27, %v2932_v19  ;;  %v5744_v8 = vld [vmem:[%s5839_s2 + $0x7] ss:$0 sm:$0xff] }
 0x1bd   : > { %v2914_v31 = vadd.f32 %v2882_v44, %v2828_v42  ;;  %v3054_v21 = vmul.f32 %v5379_v35, %v3018_v63  ;;  %v2351_v46 = vadd.f32 %v2319_v29, %v2249_v12  ;;  %v2421_v48 = vmul.f32 %v5728_v24, %v2383_v37  ;;  %v5737_v35 = vld [vmem:[%s5839_s2 + $0x6] ss:$0 sm:$0xff]  ;;  %v5755_v63 = vld [vmem:[#allocation3 + $0x1ea] sm:$0xff]  ;;  %v2847_v44 = vld [vmem:[#allocation3 + $0x1d2] sm:$0xff] }
 0x1be   : > { %v2352_v23 = vadd.f32 %v2320_v5, %v2250_v59  ;;  %v2422_v3 = vmul.f32 %v5728_v24, %v2384_v62  ;;  %v2999_v28 = vadd.f32 %v2967_v51, %v2913_v9  ;;  %v2523_v56 = vmul.f32 %v5737_v35, %v2485_v52  ;;  %v2079_v30 = vld [vmem:[#allocation3 + $0x1e2] sm:$0xff]  ;;  %v5773_v12 = vld [vmem:[#allocation3 + $0x1eb] sm:$0xff]  ;;  %v2933_v9 = vld [vmem:[#allocation3 + $0x1d3] sm:$0xff] }
 0x1bf   : > { %v3000_v27 = vadd.f32 %v2968_v26, %v2914_v31  ;;  %v2524_v39 = vmul.f32 %v5737_v35, %v2486_v47  ;;  %v2453_v6 = vadd.f32 %v2421_v48, %v2351_v46  ;;  %v2625_v18 = vmul.f32 %v5744_v8, %v2587_v15  ;;  %v2181_v32 = vld [vmem:[#allocation3 + $0x1e3] sm:$0xff] }
 0x1c0   : > { %v2454_v2 = vadd.f32 %v2422_v3, %v2352_v23  ;;  %v1913_v50 = vmul.f32 %v5657_v1, %v1875_v54  ;;  %v3085_v40 = vadd.f32 %v3053_v61, %v2999_v28  ;;  %v2626_v7 = vmul.f32 %v5744_v8, %v2588_v34  ;;  %v2283_v5 = vld [vmem:[#allocation3 + $0x1e4] sm:$0xff]  ;;  %v3019_v34 = vld [vmem:[#allocation3 + $0x1d4] sm:$0xff] }
 0x1c1   : > { %v3086_v53 = vadd.f32 %v3054_v21, %v3000_v27  ;;  %v1914_v43 = vmul.f32 %v5657_v1, %v5732_v45  ;;  %v2555_v51 = vadd.f32 %v2523_v56, %v2453_v6  ;;  %v2015_v19 = vmul.f32 %v5681_v58, %v1977_v13  ;;  %v5786_v21 = vld [vmem:[#allocation3 + $0x1ec] sm:$0xff]  ;;  %v3364_v15 = vld [vmem:[%s5839_s2 + $0xa] ss:$0 sm:$0xff] }
 0x1c2   : > { %v2556_v20 = vadd.f32 %v2524_v39, %v2454_v2  ;;  %v1945_v41 = vadd.f32 %v5674_v11, %v1913_v50  ;;  %3117 = vst.msk [vmem:[%s4947_s7 + $0xd0] sm:$0xff] %vm312_vm0, %v3085_v40  ;;  %v2711_v1 = vmul.f32 %v5764_v22, %v5644_v10  ;;  %v2712_v55 = vmul.f32 %v5764_v22, %v2675_v14  ;;  %v5778_v10 = vld [vmem:[%s5839_s2 + $0x9] ss:$0 sm:$0xff]  ;;  %v2386_v56 = vld [vmem:[#allocation3 + $0x1ed] sm:$0xff]  ;;  %v3365_v39 = vld [vmem:[%s5839_s2 + $0xb] ss:$0 sm:$0xff] }
 0x1c3   : > { %3118 = vst.msk [vmem:[%s4947_s7 + $0xd8] sm:$0xff] %vm312_vm0, %v3086_v53  ;;  %v1946_v49 = vadd.f32 %v5674_v11, %v1914_v43  ;;  %v2016_v16 = vmul.f32 %v5681_v58, %v5748_v4  ;;  %v2657_v61 = vadd.f32 %v2625_v18, %v2555_v51  ;;  %v2117_v62 = vmul.f32 %v5694_v57, %v2079_v30  ;;  %v2385_v23 = vld [vmem:[#allocation3 + $0x1e5] sm:$0xff]  ;;  %v2488_v53 = vld [vmem:[#allocation3 + $0x1ee] sm:$0xff] }
 0x1c4   : > { %v2658_v42 = vadd.f32 %v2626_v7, %v2556_v20  ;;  %v2047_v37 = vadd.f32 %v2015_v19, %v1945_v41  ;;  %v2797_v11 = vmul.f32 %v5778_v10, %v5650_v17  ;;  %v2798_v59 = vmul.f32 %v5778_v10, %v2761_v33  ;;  %v3366_v7 = vld [vmem:[%s5839_s2 + $0xc] ss:$0 sm:$0xff] }
 0x1c5   : > { %v2048_v58 = vadd.f32 %v2016_v16, %v1946_v49  ;;  %v2118_v29 = vmul.f32 %v5694_v57, %v5755_v63  ;;  %v2743_v52 = vadd.f32 %v2711_v1, %v2657_v61  ;;  %v2219_v26 = vmul.f32 %v5707_v38, %v2181_v32  ;;  %v2589_v20 = vld [vmem:[#allocation3 + $0x1e7] sm:$0xff]  ;;  %v2590_v1 = vld [vmem:[#allocation3 + $0x1ef] sm:$0xff] }
 0x1c6   : > { %v2744_v47 = vadd.f32 %v2712_v55, %v2658_v42  ;;  %v2149_v31 = vadd.f32 %v2117_v62, %v2047_v37  ;;  %v2883_v17 = vmul.f32 %v3364_v15, %v5667_v25  ;;  %v2884_v54 = vmul.f32 %v3364_v15, %v2847_v44  ;;  %v2676_v42 = vld [vmem:[#allocation3 + $0x1f0] sm:$0xff] }
 0x1c7   : > { %v2150_v46 = vadd.f32 %v2118_v29, %v2048_v58  ;;  %v2220_v57 = vmul.f32 %v5707_v38, %v5773_v12  ;;  %v2829_v48 = vadd.f32 %v2797_v11, %v2743_v52  ;;  %v2321_v27 = vmul.f32 %v5718_v60, %v2283_v5  ;;  %v2487_v38 = vld [vmem:[#allocation3 + $0x1e6] sm:$0xff]  ;;  %v2762_v11 = vld [vmem:[#allocation3 + $0x1f1] sm:$0xff] }
 0x1c8   : > { %v2830_v3 = vadd.f32 %v2798_v59, %v2744_v47  ;;  %v2251_v28 = vadd.f32 %v2219_v26, %v2149_v31  ;;  %v2969_v13 = vmul.f32 %v3365_v39, %v5689_v0  ;;  %v2970_v25 = vmul.f32 %v3365_v39, %v2933_v9  ;;  %v2848_v5 = vld [vmem:[#allocation3 + $0x1f2] sm:$0xff] }
 0x1c9   : > { %v2252_v6 = vadd.f32 %v2220_v57, %v2150_v46  ;;  %v2322_v2 = vmul.f32 %v5718_v60, %v5786_v21  ;;  %v2915_v18 = vadd.f32 %v2883_v17, %v2829_v48  ;;  %v2423_v40 = vmul.f32 %v5728_v24, %v2385_v23  ;;  %v2934_v31 = vld [vmem:[#allocation3 + $0x1f3] sm:$0xff] }
 0x1ca   : > { %v2916_v14 = vadd.f32 %v2884_v54, %v2830_v3  ;;  %v2353_v50 = vadd.f32 %v2321_v27, %v2251_v28  ;;  %v3055_v43 = vmul.f32 %v3366_v7, %v5702_v36  ;;  %v3056_v30 = vmul.f32 %v3366_v7, %v3019_v34 }
 0x1cb   : > { %v2354_v0 = vadd.f32 %v2322_v2, %v2252_v6  ;;  %v2424_v51 = vmul.f32 %v5728_v24, %v2386_v56  ;;  %v3001_v60 = vadd.f32 %v2969_v13, %v2915_v18  ;;  %v2525_v19 = vmul.f32 %v5737_v35, %v2487_v38 }
 0x1cc   : > { %v3002_v33 = vadd.f32 %v2970_v25, %v2916_v14  ;;  %v2455_v41 = vadd.f32 %v2423_v40, %v2353_v50  ;;  %v2526_v49 = vmul.f32 %v5737_v35, %v2488_v53  ;;  %v2627_v36 = vmul.f32 %v5744_v8, %v2589_v20 }
 0x1cd   : > { %v2456_v55 = vadd.f32 %v2424_v51, %v2354_v0  ;;  %v3087_v16 = vadd.f32 %v3055_v43, %v3001_v60  ;;  %v2628_v24 = vmul.f32 %v5744_v8, %v2590_v1  ;;  %v2713_v62 = vmul.f32 %v5764_v22, %v5732_v45 }
 0x1ce   : > { %v3088_v32 = vadd.f32 %v3056_v30, %v3002_v33  ;;  %v2557_v61 = vadd.f32 %v2525_v19, %v2455_v41  ;;  %v2714_v35 = vmul.f32 %v5764_v22, %v2676_v42  ;;  %v2799_v29 = vmul.f32 %v5778_v10, %v5748_v4  ;;  %v3020_v22 = vld [vmem:[#allocation3 + $0x1f4] sm:$0xff] }
 0x1cf   : > { %v2558_v44 = vadd.f32 %v2526_v49, %v2456_v55  ;;  %3119 = vst.msk [vmem:[%s4947_s7 + $0xe0] sm:$0xff] %vm312_vm0, %v3087_v16  ;;  %v2800_v8 = vmul.f32 %v5778_v10, %v2762_v11  ;;  %v2885_v9 = vmul.f32 %v3364_v15, %v5755_v63  ;;  %v2886_v45 = vmul.f32 %v3364_v15, %v2848_v5 }
 0x1d0   : > { %3120 = vst.msk [vmem:[%s4947_s7 + $0xe8] sm:$0xff] %vm312_vm0, %v3088_v32  ;;  %v2659_v37 = vadd.f32 %v2627_v36, %v2557_v61  ;;  %v2971_v54 = vmul.f32 %v3365_v39, %v5773_v12  ;;  %v2972_v57 = vmul.f32 %v3365_v39, %v2934_v31  ;;  %v3057_v4 = vmul.f32 %v3366_v7, %v5786_v21 }
 0x1d1   : > { %v2660_v59 = vadd.f32 %v2628_v24, %v2558_v44  ;;  %v3058_v3 = vmul.f32 %v3366_v7, %v3020_v22 }
 0x1d2   : > { %v2745_v58 = vadd.f32 %v2713_v62, %v2659_v37 }
 0x1d3   : > { %v2746_v52 = vadd.f32 %v2714_v35, %v2660_v59 }
 0x1d4   : > { %v2831_v47 = vadd.f32 %v2799_v29, %v2745_v58 }
 0x1d5   : > { %v2832_v26 = vadd.f32 %v2800_v8, %v2746_v52 }
 0x1d6   : > { %v2917_v17 = vadd.f32 %v2885_v9, %v2831_v47 }
 0x1d7   : > { %v2918_v46 = vadd.f32 %v2886_v45, %v2832_v26 }
 0x1d8   : > { %v3003_v23 = vadd.f32 %v2971_v54, %v2917_v17 }
 0x1d9   : > { %v3004_v48 = vadd.f32 %v2972_v57, %v2918_v46 }
 0x1da   : > { %v3089_v10 = vadd.f32 %v3057_v4, %v3003_v23 }
 0x1db   : > { %v3090_v34 = vadd.f32 %v3058_v3, %v3004_v48 }
 0x1dc   : > { %3121 = vst.msk [vmem:[%s4947_s7 + $0xf0] sm:$0xff] %vm312_vm0, %v3089_v10 }
 0x1dd   : > { %3122 = vst.msk [vmem:[%s4947_s7 + $0xf8] sm:$0xff] %vm312_vm0, %v3090_v34 }
 0x1de PF: > { %s15_s20 = sadd.s32 1, %s3389_s20   ;;  %s5888_s18 = smov %s3385_s19 }
 0x1df   : > { %p12_p5 = scmp.ge.s32.totalorder %s15_s20, 4   ;;  %s5889_s19 = smov %s5891_s21 }
 0x1e1   :  { %14 = sbr.rel (!%p12_p5) target bundleno = 2 (0x2), region = 95 }

</bundles_post_ra>
